<compile_context>
chip_gen: v5e
topology: v5e:2x2
jax: 0.10.0
libtpu: 0.0.40
codegen_flags: <defaults>
</compile_context>

<pallas_src>
import functools

import jax
import jax.numpy as jnp
from jax.experimental import pallas as pl
from jax.experimental.pallas import tpu as pltpu


_STEP_TARGET = 6 * 1024 * 1024      # aim for ~4-8 MiB moved per grid step
_SMALL_BYPASS_BYTES = 512 * 1024    # below this, launch/prologue overhead dominates
_LANE_DENSE_MIN = 128               # output lane dim below this -> masked stores, bypass


# --------------------------------------------------------------------------- #
# Hardware queries (defensive: everything has a safe fallback).
# --------------------------------------------------------------------------- #
@functools.lru_cache(maxsize=None)
def _vmem_capacity_bytes():
    try:
        return int(pltpu.get_tpu_info().vmem_capacity_bytes)
    except Exception:
        return 64 << 20  # conservative default (v7x per-TC VMEM)


@functools.lru_cache(maxsize=None)
def _is_v7x():
    try:
        kind = jax.devices()[0].device_kind.lower()
    except Exception:
        return False
    return "v7" in kind


@functools.lru_cache(maxsize=None)
def _vmem_policy():
    """Returns (budget_bytes, vmem_limit_cap_bytes, allow_triple_buffer)."""
    cap = _vmem_capacity_bytes()
    if cap >= (100 << 20):            # v5e / v6e: 128 MiB physical VMEM
        return 48 << 20, 100 << 20, True
    return 24 << 20, 48 << 20, False  # v7x: 64 MiB physical per TC


# --------------------------------------------------------------------------- #
# Kernels: pure minor-dim swap (XLU), optionally batched over grouped slabs.
# --------------------------------------------------------------------------- #
def _transpose2d_kernel(x_ref, o_ref):
    # x_ref: (a_tile, b_tile) -> o_ref: (b_tile, a_tile)
    o_ref[...] = x_ref[...].T


def _transpose3d_kernel(x_ref, o_ref):
    # x_ref: (nb, a_tile, b_tile) -> o_ref: (nb, b_tile, a_tile)
    o_ref[...] = jnp.swapaxes(x_ref[...], 1, 2)


# --------------------------------------------------------------------------- #
# Planning helpers.
# --------------------------------------------------------------------------- #
def _as_batched_transpose(shape, dims):
    """If `dims` = identity prefix + swap of two contiguous trailing groups,
    return (Nb, A, B) such that the permute is reshape->(Nb,A,B), swap(A,B),
    reshape.  Returns "identity" for the identity permutation, None otherwise."""
    ndim = len(shape)
    p = 0
    while p < ndim and dims[p] == p:
        p += 1
    if p == ndim:
        return "identity"
    rest = tuple(dims[p:])
    k = ndim - p
    for m in range(1, k):
        cand = tuple(range(p + m, ndim)) + tuple(range(p, p + m))
        if rest == cand:
            Nb = 1
            for d in shape[:p]:
                Nb *= d
            A = 1
            for d in shape[p:p + m]:
                A *= d
            B = 1
            for d in shape[p + m:]:
                B *= d
            return (Nb, A, B)
    return None


def _largest_tile_mult128(dim, max_elems):
    """Largest divisor of `dim` that is a multiple of 128 and <= max_elems."""
    n = dim // 128
    for t in range(1, n + 1):
        if n % t == 0:
            cand = 128 * (n // t)
            if cand <= max_elems:
                return cand
    return None


def _choose_tiling(Nb, A, B, itemsize, budget, max_group):
    """Pick (n_block, a_tile, b_tile) or None (caller falls back to XLA)."""
    slab_bytes = A * B * itemsize
    n_block, a_tile, b_tile = 1, A, B
    if 4 * slab_bytes > budget:
        # Slab too big to double-buffer whole: tile one 128-divisible axis so
        # both the input's last dim and the output's last dim stay legal
        # ((8,128)-divisible or full) and output stores stay lane-dense.
        if B % 128 == 0:
            b_tile = _largest_tile_mult128(B, max(budget // (4 * A * itemsize), 0))
            if b_tile is None:
                return None
        elif A % 128 == 0:
            a_tile = _largest_tile_mult128(A, max(budget // (4 * B * itemsize), 0))
            if a_tile is None:
                return None
        else:
            return None
    elif slab_bytes < _STEP_TARGET and Nb > 1:
        # Small slabs: group several batch elements per grid step to amortize
        # the ~0.35us per-step cost up to the 4-8 MiB target.
        max_nb = max(1, min(_STEP_TARGET // max(slab_bytes, 1),
                            budget // (4 * slab_bytes),
                            max_group))
        for d in range(Nb, 0, -1):
            if Nb % d == 0 and d <= max_nb:
                n_block = d
                break
    return n_block, a_tile, b_tile


# --------------------------------------------------------------------------- #
# Batched transpose via Pallas.
# --------------------------------------------------------------------------- #
def _batched_transpose(x3):
    """x3: (Nb, A, B) -> (Nb, B, A) with a Pallas kernel."""
    Nb, A, B = x3.shape
    itemsize = jnp.dtype(x3.dtype).itemsize
    budget, limit_cap, allow_triple = _vmem_policy()
    v7x = _is_v7x()

    # On v7x keep the batch-group axis >= 2 so CORE_PARALLEL can split it.
    max_group = Nb // 2 if (v7x and Nb >= 2) else Nb
    max_group = max(max_group, 1)

    tiling = _choose_tiling(Nb, A, B, itemsize, budget, max_group)
    if tiling is None:
        # TODO(synk): huge slabs with neither trailing axis 128-divisible fall
        # back to XLA transpose instead of risking a VMEM-overflowing block.
        return jnp.swapaxes(x3, 1, 2)
    n_block, a_tile, b_tile = tiling
    grid = (Nb // n_block, A // a_tile, B // b_tile)

    tiled = (a_tile < A) or (b_tile < B)
    block_elems = n_block * a_tile * b_tile
    in_buffers = 3 if (tiled and allow_triple) else 2
    footprint = (in_buffers + 2) * block_elems * itemsize
    if in_buffers == 3 and footprint + (2 << 20) > limit_cap:
        in_buffers = 2
        footprint = 4 * block_elems * itemsize
    vmem_limit = int(min(max(footprint + (2 << 20), 4 << 20), limit_cap))

    if n_block == 1:
        kernel = _transpose2d_kernel
        in_block = (pl.Squeezed(), a_tile, b_tile)
        out_block = (pl.Squeezed(), b_tile, a_tile)
    else:
        kernel = _transpose3d_kernel
        in_block = (n_block, a_tile, b_tile)
        out_block = (n_block, b_tile, a_tile)

    in_map = lambda n, i, j: (n, i, j)
    out_map = lambda n, i, j: (n, j, i)

    in_spec = pl.BlockSpec(in_block, in_map)
    if in_buffers == 3 and hasattr(pl, "Buffered"):
        try:
            in_spec = pl.BlockSpec(in_block, in_map, pipeline_mode=pl.Buffered(3))
        except TypeError:
            in_spec = pl.BlockSpec(in_block, in_map)

    # Megacore: only CORE_PARALLEL actually splits across v7x's two TCs.
    if v7x and grid[0] >= 2 and hasattr(pltpu, "CORE_PARALLEL"):
        dim_sem = (pltpu.CORE_PARALLEL, pltpu.PARALLEL, pltpu.PARALLEL)
    else:
        dim_sem = ("parallel", "parallel", "parallel")

    return pl.pallas_call(
        kernel,
        out_shape=jax.ShapeDtypeStruct((Nb, B, A), x3.dtype),
        grid=grid,
        in_specs=[in_spec],
        out_specs=pl.BlockSpec(out_block, out_map),
        compiler_params=pltpu.CompilerParams(
            dimension_semantics=dim_sem,
            vmem_limit_bytes=vmem_limit,
        ),
        cost_estimate=pl.CostEstimate(
            flops=0,
            transcendentals=0,
            bytes_accessed=2 * Nb * A * B * itemsize),
    )(x3)


# --------------------------------------------------------------------------- #
# Public entry point: torch.Tensor.permute(*dims) equivalent.
# --------------------------------------------------------------------------- #
def pallas_permute(x, dims):
    dims = tuple(int(d) for d in dims)
    assert sorted(dims) == list(range(x.ndim)), "dims must be a permutation"
    out_shape = tuple(x.shape[d] for d in dims)

    plan = _as_batched_transpose(x.shape, dims)
    if plan == "identity":
        return x
    if plan is None:
        # TODO(synk): permutations that are not (batch prefix + group swap) fall back to XLA transpose.
        return jnp.transpose(x, dims)

    Nb, A, B = plan
    itemsize = jnp.dtype(x.dtype).itemsize
    total_bytes = Nb * A * B * itemsize

    # Small-size bypass: kernel launch + pipeline prologue dominate here.
    if total_bytes < _SMALL_BYPASS_BYTES:
        return jnp.transpose(x, dims)
    # Lane-sparse output bypass: output lane dim < 128 (e.g. Swin-T C=96
    # patch-embed, 7*7=49 head permute) forces masked vst.msk stores; XLA's
    # fused transpose is as fast or faster, especially on v5e.
    if A < _LANE_DENSE_MIN:
        return jnp.transpose(x, dims)
    # Degenerate swap: pure relabel, no data movement.
    if A == 1 or B == 1:
        return x.reshape(out_shape)

    y3 = _batched_transpose(x.reshape(Nb, A, B))
    return y3.reshape(out_shape)


# --------------------------------------------------------------------------- #
# Self-test
# --------------------------------------------------------------------------- #
if __name__ == "__main__":
    key = jax.random.PRNGKey(0)
    ks = jax.random.split(key, 6)

    def check(x, dims, name):
        out = jax.block_until_ready(pallas_permute(x, dims))
        ref = jnp.transpose(x, dims)
        assert out.shape == ref.shape and out.dtype == ref.dtype, name
        assert jnp.array_equal(out, ref), f"mismatch: {name}"

    # Small Swin-style permutes (small-size bypass path).
    check(jax.random.normal(ks[0], (2, 4, 16, 16), jnp.float32), (0, 2, 3, 1),
          "small NCHW->NHWC")
    check(jax.random.normal(ks[1], (2, 16, 16, 4), jnp.float32), (0, 3, 1, 2),
          "small NHWC->NCHW")

    # Swin-T patch-embed shape: C=96 output lane dim -> lane-sparse bypass.
    check(jax.random.normal(ks[2], (2, 96, 28, 28), jnp.float32), (0, 2, 3, 1),
          "lane-sparse bypass (C=96)")

    # Swin-B patch-embed shape: lane-dense, exercises the batched 3-D kernel
    # (batch grouping to hit the 4-8 MiB per-step target).
    check(jax.random.normal(ks[3], (2, 128, 56, 56), jnp.float32), (0, 2, 3, 1),
          "pallas 3D batched path")

    # Single-batch slab: exercises the Squeezed 2-D kernel path.
    check(jax.random.normal(ks[4], (1, 256, 64, 64), jnp.float32), (0, 2, 3, 1),
          "pallas 2D squeezed path")

    # Large slab: exercises the lane-axis (B) tiling path (and triple-buffered
    # input on 128-MiB-VMEM parts).
    check(jax.random.normal(ks[5], (1, 256, 112, 112), jnp.float32), (0, 2, 3, 1),
          "pallas lane-tiled path")

    print("KERNEL_OK")
</pallas_src>

<mosaic_0001>
module attributes {stable_mosaic.version = 11 : i64} {
  func.func @_transpose3d_kernel(%arg0: i32, %arg1: i32, %arg2: i32, %arg3: memref<2x128x3136xf32, #tpu.memory_space<vmem>>, %arg4: memref<2x3136x128xf32, #tpu.memory_space<vmem>>) attributes {dimension_semantics = [#tpu.dimension_semantics<parallel>, #tpu.dimension_semantics<parallel>, #tpu.dimension_semantics<parallel>], iteration_bounds = array<i64: 1, 1, 1>, scalar_prefetch = 0 : i64, scratch_operands = 0 : i64, tpu.core_type = #tpu.core_type<tc>, window_params = [{transform_indices = @transform_0, window_bounds = array<i64: 2, 128, 3136>}, {transform_indices = @transform_1, window_bounds = array<i64: 2, 3136, 128>}]} {
    %c0 = arith.constant 0 : index
    %c0_0 = arith.constant 0 : index
    %c0_1 = arith.constant 0 : index
    %0 = vector.load %arg3[%c0, %c0_0, %c0_1] : memref<2x128x3136xf32, #tpu.memory_space<vmem>>, vector<2x128x3136xf32>
    %1 = tpu.transpose %0, [0, 2, 1] : vector<2x128x3136xf32> -> vector<2x3136x128xf32>
    %c0_2 = arith.constant 0 : index
    %c0_3 = arith.constant 0 : index
    %c0_4 = arith.constant 0 : index
    %2 = vector.load %arg4[%c0_2, %c0_3, %c0_4] : memref<2x3136x128xf32, #tpu.memory_space<vmem>>, vector<2x3136x128xf32>
    tpu.vector_store %arg4[%c0_2, %c0_3, %c0_4], %1 {strides = array<i32>} : memref<2x3136x128xf32, #tpu.memory_space<vmem>>, vector<2x3136x128xf32>,
    return
  }
  func.func @transform_0(%arg0: i32, %arg1: i32, %arg2: i32) -> (i32, i32, i32) {
    %c0_i32 = arith.constant 0 : i32
    return %arg0, %arg1, %arg2 : i32, i32, i32
  }
  func.func @transform_1(%arg0: i32, %arg1: i32, %arg2: i32) -> (i32, i32, i32) {
    %c0_i32 = arith.constant 0 : i32
    return %arg0, %arg2, %arg1 : i32, i32, i32
  }
}

</mosaic_0001>

<bundles_post_ra>
// kernel: tpu_custom_call.1
= control target key start
LH: loop header
LB: loop body
LE: loop exit
PB: predicated region body
PF: predicated region fallthrough
CT: control target
= control target key end

     0   :  { %s5656_s0 = inlined_call_operand.vmem [shape: f32[2,128,3136], index: 0, kind: input, shape index: {}]   ;;  %s5657_s1 = inlined_call_operand.hbm [shape: f32[2,3136,128], index: 1, kind: output, shape index: {}]  }
   0x1   :  { %v9_v0 = vld [vmem:[%s5656_s0] sm:$0xff] }
   0x2   :  { %809 = vxpose.xlu0.b32.start [1/16] %v9_v0, 128 }
   0x3   :  { %6 = vsyncpa [#allocation3], 0  ;;  %v34_v1 = vld [vmem:[%s5656_s0 + $0xc8] sm:$0xff]  ;;  %v59_v2 = vld [vmem:[%s5656_s0 + $0x190] sm:$0xff]  ;;  %s3199_s14 = sshll.u32 %s5657_s1, 4  ;;  %s3241_s15 = smov 128   ;;  %s3200_s14 = int_to_ptr.hbm [resolvable:$true] %s3199_s14 }
   0x4   :  { %v84_v3 = vld [vmem:[%s5656_s0 + $0x258] sm:$0xff]  ;;  %v10_v4 = vld [vmem:[%s5656_s0 + $0x8] sm:$0xff]  ;;  %v109_v5 = vld [vmem:[%s5656_s0 + $0x320] sm:$0xff]  ;;  %s3242_s16 = smov 8  }
   0x5   :  { %841 = vxpose.xlu1.b32.start [1/16] %v10_v4, 128  ;;  %v35_v6 = vld [vmem:[%s5656_s0 + $0xd0] sm:$0xff]  ;;  %v134_v7 = vld [vmem:[%s5656_s0 + $0x3e8] sm:$0xff]  ;;  %v60_v8 = vld [vmem:[%s5656_s0 + $0x198] sm:$0xff] }
   0x6   :  { %v159_v9 = vld [vmem:[%s5656_s0 + $0x4b0] sm:$0xff]  ;;  %v85_v10 = vld [vmem:[%s5656_s0 + $0x260] sm:$0xff]  ;;  %v184_v11 = vld [vmem:[%s5656_s0 + $0x578] sm:$0xff] }
   0x7   :  { %v110_v12 = vld [vmem:[%s5656_s0 + $0x328] sm:$0xff]  ;;  %v209_v13 = vld [vmem:[%s5656_s0 + $0x640] sm:$0xff]  ;;  %v135_v14 = vld [vmem:[%s5656_s0 + $0x3f0] sm:$0xff] }
   0x8   :  { %v234_v15 = vld [vmem:[%s5656_s0 + $0x708] sm:$0xff]  ;;  %v160_v16 = vld [vmem:[%s5656_s0 + $0x4b8] sm:$0xff]  ;;  %v259_v17 = vld [vmem:[%s5656_s0 + $0x7d0] sm:$0xff] }
   0x9   :  { %v185_v18 = vld [vmem:[%s5656_s0 + $0x580] sm:$0xff]  ;;  %v284_v19 = vld [vmem:[%s5656_s0 + $0x898] sm:$0xff]  ;;  %v210_v20 = vld [vmem:[%s5656_s0 + $0x648] sm:$0xff] }
   0xa   :  { %810 = vxpose.xlu0.b32.cont [2/16] %v34_v1, 128  ;;  %v309_v21 = vld [vmem:[%s5656_s0 + $0x960] sm:$0xff]  ;;  %v235_v22 = vld [vmem:[%s5656_s0 + $0x710] sm:$0xff]  ;;  %v334_v23 = vld [vmem:[%s5656_s0 + $0xa28] sm:$0xff] }
   0xb   :  { %v11_v24 = vld [vmem:[%s5656_s0 + $0x10] sm:$0xff]  ;;  %v260_v25 = vld [vmem:[%s5656_s0 + $0x7d8] sm:$0xff]  ;;  %v285_v28 = vld [vmem:[%s5656_s0 + $0x8a0] sm:$0xff] }
   0xc   :  { %873 = vxpose.xlu2.b32.start [1/16] %v11_v24, 128  ;;  %v359_v26 = vld [vmem:[%s5656_s0 + $0xaf0] sm:$0xff]  ;;  %v36_v27 = vld [vmem:[%s5656_s0 + $0xd8] sm:$0xff]  ;;  %v61_v30 = vld [vmem:[%s5656_s0 + $0x1a0] sm:$0xff] }
   0xd   :  { %842 = vxpose.xlu1.b32.cont [2/16] %v35_v6, 128  ;;  %v384_v29 = vld [vmem:[%s5656_s0 + $0xbb8] sm:$0xff]  ;;  %v310_v31 = vld [vmem:[%s5656_s0 + $0x968] sm:$0xff]  ;;  %v335_v34 = vld [vmem:[%s5656_s0 + $0xa30] sm:$0xff] }
   0xe   :  { %v12_v32 = vld [vmem:[%s5656_s0 + $0x18] sm:$0xff]  ;;  %v86_v33 = vld [vmem:[%s5656_s0 + $0x268] sm:$0xff]  ;;  %v37_v35 = vld [vmem:[%s5656_s0 + $0xe0] sm:$0xff] }
   0xf   :  { %v111_v36 = vld [vmem:[%s5656_s0 + $0x330] sm:$0xff]  ;;  %v360_v37 = vld [vmem:[%s5656_s0 + $0xaf8] sm:$0xff]  ;;  %v62_v38 = vld [vmem:[%s5656_s0 + $0x1a8] sm:$0xff] }
  0x10   :  { %v136_v39 = vld [vmem:[%s5656_s0 + $0x3f8] sm:$0xff]  ;;  %v385_v40 = vld [vmem:[%s5656_s0 + $0xbc0] sm:$0xff]  ;;  %v87_v41 = vld [vmem:[%s5656_s0 + $0x270] sm:$0xff] }
  0x11   :  { %v161_v42 = vld [vmem:[%s5656_s0 + $0x4c0] sm:$0xff]  ;;  %v112_v44 = vld [vmem:[%s5656_s0 + $0x338] sm:$0xff]  ;;  %v186_v45 = vld [vmem:[%s5656_s0 + $0x588] sm:$0xff] }
  0x12   :  { %811 = vxpose.xlu0.b32.cont [3/16] %v59_v2, 128  ;;  %v13_v43 = vld [vmem:[%s5656_s0 + $0x20] sm:$0xff]  ;;  %v38_v46 = vld [vmem:[%s5656_s0 + $0xe8] sm:$0xff]  ;;  %v211_v48 = vld [vmem:[%s5656_s0 + $0x650] sm:$0xff] }
  0x13   :  { %v137_v47 = vld [vmem:[%s5656_s0 + $0x400] sm:$0xff]  ;;  %v63_v49 = vld [vmem:[%s5656_s0 + $0x1b0] sm:$0xff]  ;;  %v162_v50 = vld [vmem:[%s5656_s0 + $0x4c8] sm:$0xff] }
  0x14   :  { %874 = vxpose.xlu2.b32.cont [2/16] %v36_v27, 128  ;;  %v236_v51 = vld [vmem:[%s5656_s0 + $0x718] sm:$0xff]  ;;  %v187_v53 = vld [vmem:[%s5656_s0 + $0x590] sm:$0xff]  ;;  %v261_v54 = vld [vmem:[%s5656_s0 + $0x7e0] sm:$0xff] }
  0x15   :  { %843 = vxpose.xlu1.b32.cont [3/16] %v60_v8, 128  ;;  %v88_v52 = vld [vmem:[%s5656_s0 + $0x278] sm:$0xff]  ;;  %v113_v55 = vld [vmem:[%s5656_s0 + $0x340] sm:$0xff]  ;;  %v286_v57 = vld [vmem:[%s5656_s0 + $0x8a8] sm:$0xff] }
  0x16   :  { %v212_v56 = vld [vmem:[%s5656_s0 + $0x658] sm:$0xff]  ;;  %v138_v60 = vld [vmem:[%s5656_s0 + $0x408] sm:$0xff]  ;;  %v237_v61 = vld [vmem:[%s5656_s0 + $0x720] sm:$0xff] }
  0x17   :  { %v311_v62 = vld [vmem:[%s5656_s0 + $0x970] sm:$0xff]  ;;  %v262_v2 = vld [vmem:[%s5656_s0 + $0x7e8] sm:$0xff]  ;;  %v188_v6 = vld [vmem:[%s5656_s0 + $0x598] sm:$0xff] }
  0x18   :  { %v163_v1 = vld [vmem:[%s5656_s0 + $0x4d0] sm:$0xff]  ;;  %v361_v8 = vld [vmem:[%s5656_s0 + $0xb00] sm:$0xff] }
  0x19   :  { %v387_v27 = vld [vmem:[%s5656_s0 + $0xbd0] sm:$0xff] }
  0x1a   :  { %812 = vxpose.xlu0.b32.cont [4/16] %v84_v3, 128  ;;  %v336_v3 = vld [vmem:[%s5656_s0 + $0xa38] sm:$0xff] }
  0x1c   :  { %875 = vxpose.xlu2.b32.cont [3/16] %v61_v30, 128 }
  0x1d   :  { %844 = vxpose.xlu1.b32.cont [4/16] %v85_v10, 128 }
  0x22   :  { %813 = vxpose.xlu0.b32.cont [5/16] %v109_v5, 128 }
  0x24   :  { %876 = vxpose.xlu2.b32.cont [4/16] %v86_v33, 128  ;;  %v89_v33 = vld [vmem:[%s5656_s0 + $0x280] sm:$0xff] }
  0x25   :  { %845 = vxpose.xlu1.b32.cont [5/16] %v110_v12, 128  ;;  %v312_v12 = vld [vmem:[%s5656_s0 + $0x978] sm:$0xff] }
  0x2a   :  { %814 = vxpose.xlu0.b32.cont [6/16] %v134_v7, 128  ;;  %v287_v7 = vld [vmem:[%s5656_s0 + $0x8b0] sm:$0xff] }
  0x2c   :  { %877 = vxpose.xlu2.b32.cont [5/16] %v111_v36, 128  ;;  %v338_v36 = vld [vmem:[%s5656_s0 + $0xa48] sm:$0xff] }
  0x2d   :  { %846 = vxpose.xlu1.b32.cont [6/16] %v135_v14, 128 }
  0x32   :  { %815 = vxpose.xlu0.b32.cont [7/16] %v159_v9, 128 }
  0x34   :  { %878 = vxpose.xlu2.b32.cont [6/16] %v136_v39, 128  ;;  %v114_v39 = vld [vmem:[%s5656_s0 + $0x348] sm:$0xff] }
  0x35   :  { %847 = vxpose.xlu1.b32.cont [7/16] %v160_v16, 128  ;;  %v238_v16 = vld [vmem:[%s5656_s0 + $0x728] sm:$0xff] }
  0x3a   :  { %816 = vxpose.xlu0.b32.cont [8/16] %v184_v11, 128  ;;  %v213_v11 = vld [vmem:[%s5656_s0 + $0x660] sm:$0xff] }
  0x3c   :  { %879 = vxpose.xlu2.b32.cont [7/16] %v161_v42, 128  ;;  %v363_v42 = vld [vmem:[%s5656_s0 + $0xb10] sm:$0xff] }
  0x3d   :  { %848 = vxpose.xlu1.b32.cont [8/16] %v185_v18, 128  ;;  %v14_v18 = vld [vmem:[%s5656_s0 + $0x28] sm:$0xff] }
  0x42   :  { %817 = vxpose.xlu0.b32.cont [9/16] %v209_v13, 128  ;;  %v386_v13 = vld [vmem:[%s5656_s0 + $0xbc8] sm:$0xff] }
  0x44   :  { %880 = vxpose.xlu2.b32.cont [8/16] %v186_v45, 128  ;;  %v139_v45 = vld [vmem:[%s5656_s0 + $0x410] sm:$0xff] }
  0x45   :  { %849 = vxpose.xlu1.b32.cont [9/16] %v210_v20, 128 }
  0x4a   :  { %818 = vxpose.xlu0.b32.cont [10/16] %v234_v15, 128 }
  0x4c   :  { %881 = vxpose.xlu2.b32.cont [9/16] %v211_v48, 128  ;;  %v388_v48 = vld [vmem:[%s5656_s0 + $0xbd8] sm:$0xff] }
  0x4d   :  { %850 = vxpose.xlu1.b32.cont [10/16] %v235_v22, 128  ;;  %v362_v22 = vld [vmem:[%s5656_s0 + $0xb08] sm:$0xff] }
  0x52   :  { %819 = vxpose.xlu0.b32.cont [11/16] %v259_v17, 128  ;;  %v337_v17 = vld [vmem:[%s5656_s0 + $0xa40] sm:$0xff] }
  0x54   :  { %882 = vxpose.xlu2.b32.cont [10/16] %v236_v51, 128  ;;  %v164_v51 = vld [vmem:[%s5656_s0 + $0x4d8] sm:$0xff] }
  0x55   :  { %851 = vxpose.xlu1.b32.cont [11/16] %v260_v25, 128 }
  0x5a   :  { %820 = vxpose.xlu0.b32.cont [12/16] %v284_v19, 128 }
  0x5c   :  { %883 = vxpose.xlu2.b32.cont [11/16] %v261_v54, 128  ;;  %v16_v54 = vld [vmem:[%s5656_s0 + $0x38] sm:$0xff] }
  0x5d   :  { %852 = vxpose.xlu1.b32.cont [12/16] %v285_v28, 128  ;;  %v64_v28 = vld [vmem:[%s5656_s0 + $0x1b8] sm:$0xff] }
  0x62   :  { %821 = vxpose.xlu0.b32.cont [13/16] %v309_v21, 128  ;;  %v263_v21 = vld [vmem:[%s5656_s0 + $0x7f0] sm:$0xff] }
  0x64   :  { %884 = vxpose.xlu2.b32.cont [12/16] %v286_v57, 128  ;;  %v189_v57 = vld [vmem:[%s5656_s0 + $0x5a0] sm:$0xff] }
  0x65   :  { %853 = vxpose.xlu1.b32.cont [13/16] %v310_v31, 128  ;;  %v313_v31 = vld [vmem:[%s5656_s0 + $0x980] sm:$0xff] }
  0x6a   :  { %822 = vxpose.xlu0.b32.cont [14/16] %v334_v23, 128  ;;  %v39_v23 = vld [vmem:[%s5656_s0 + $0xf0] sm:$0xff] }
  0x6c   :  { %885 = vxpose.xlu2.b32.cont [13/16] %v311_v62, 128  ;;  %v140_v62 = vld [vmem:[%s5656_s0 + $0x418] sm:$0xff] }
  0x6d   :  { %854 = vxpose.xlu1.b32.cont [14/16] %v335_v34, 128 }
  0x72   :  { %823 = vxpose.xlu0.b32.cont [15/16] %v359_v26, 128  ;;  %v288_v26 = vld [vmem:[%s5656_s0 + $0x8b8] sm:$0xff] }
  0x74   :  { %886 = vxpose.xlu2.b32.cont [14/16] %v336_v3, 128 }
  0x75   :  { %855 = vxpose.xlu1.b32.cont [15/16] %v360_v37, 128 }
  0x7a   :  { %824 = vxpose.xlu0.b32.end [16/16] %v384_v29, 128 }
  0x7c   :  { %887 = vxpose.xlu2.b32.cont [15/16] %v361_v8, 128  ;;  %v91_v8 = vld [vmem:[%s5656_s0 + $0x290] sm:$0xff] }
  0x7d   :  { %856 = vxpose.xlu1.b32.end [16/16] %v385_v40, 128 }
  0x82   :  { %905 = vxpose.xlu0.b32.start [1/16] %v12_v32, 128  ;;  %v15_v32 = vld [vmem:[%s5656_s0 + $0x30] sm:$0xff] }
  0x84   :  { %888 = vxpose.xlu2.b32.end [16/16] %v386_v13, 128 }
  0x85   :  { %937 = vxpose.xlu1.b32.start [1/16] %v13_v43, 128 }
  0x8a   :  { %906 = vxpose.xlu0.b32.cont [2/16] %v37_v35, 128 }
  0x8c   :  { %969 = vxpose.xlu2.b32.start [1/16] %v14_v18, 128 }
  0x8d   :  { %938 = vxpose.xlu1.b32.cont [2/16] %v38_v46, 128 }
  0x92   :  { %907 = vxpose.xlu0.b32.cont [3/16] %v62_v38, 128  ;;  %v40_v38 = vld [vmem:[%s5656_s0 + $0xf8] sm:$0xff] }
  0x94   :  { %970 = vxpose.xlu2.b32.cont [2/16] %v39_v23, 128  ;;  %v314_v23 = vld [vmem:[%s5656_s0 + $0x988] sm:$0xff] }
  0x95   :  { %939 = vxpose.xlu1.b32.cont [3/16] %v63_v49, 128 }
  0x9a   :  { %908 = vxpose.xlu0.b32.cont [4/16] %v87_v41, 128 }
  0x9c   :  { %971 = vxpose.xlu2.b32.cont [3/16] %v64_v28, 128  ;;  %v265_v28 = vld [vmem:[%s5656_s0 + $0x800] sm:$0xff] }
  0x9d   :  { %940 = vxpose.xlu1.b32.cont [4/16] %v88_v52, 128 }
  0xa2   :  { %909 = vxpose.xlu0.b32.cont [5/16] %v112_v44, 128  ;;  %v65_v44 = vld [vmem:[%s5656_s0 + $0x1c0] sm:$0xff] }
  0xa4   :  { %972 = vxpose.xlu2.b32.cont [4/16] %v89_v33, 128 }
  0xa5   :  { %941 = vxpose.xlu1.b32.cont [5/16] %v113_v55, 128  ;;  %v889_v37 = vpop.trf.xlu2 }
  0xa6   :  { %v825_v59 = vpop.trf.xlu0  ;;  %2441 = vst [vmem:[#allocation2 + $0x100] sm:$0xff] %v889_v37 }
  0xa7   :  { %2409 = vst [vmem:[#allocation2] sm:$0xff] %v825_v59 }
  0xa9   :  { %v857_v58 = vpop.trf.xlu1 }
  0xaa   :  { %910 = vxpose.xlu0.b32.cont [6/16] %v137_v47, 128  ;;  %2425 = vst [vmem:[#allocation2 + $0x80] sm:$0xff] %v857_v58 }
  0xac   :  { %973 = vxpose.xlu2.b32.cont [5/16] %v114_v39, 128 }
  0xad   :  { %942 = vxpose.xlu1.b32.cont [6/16] %v138_v60, 128  ;;  %v890_v43 = vpop.trf.xlu2  ;;  %v41_v60 = vld [vmem:[%s5656_s0 + $0x100] sm:$0xff] }
  0xae   :  { %v826_v0 = vpop.trf.xlu0  ;;  %2442 = vst [vmem:[#allocation2 + $0x108] sm:$0xff] %v890_v43 }
  0xaf   :  { %2410 = vst [vmem:[#allocation2 + $0x8] sm:$0xff] %v826_v0 }
  0xb1   :  { %v858_v63 = vpop.trf.xlu1 }
  0xb2   :  { %911 = vxpose.xlu0.b32.cont [7/16] %v162_v50, 128  ;;  %2426 = vst [vmem:[#allocation2 + $0x88] sm:$0xff] %v858_v63  ;;  %v90_v50 = vld [vmem:[%s5656_s0 + $0x288] sm:$0xff] }
  0xb3   :  { %v214_v63 = vld [vmem:[%s5656_s0 + $0x668] sm:$0xff] }
  0xb4   :  { %974 = vxpose.xlu2.b32.cont [6/16] %v139_v45, 128 }
  0xb5   :  { %943 = vxpose.xlu1.b32.cont [7/16] %v163_v1, 128  ;;  %v891_v49 = vpop.trf.xlu2 }
  0xb6   :  { %v827_v5 = vpop.trf.xlu0  ;;  %2443 = vst [vmem:[#allocation2 + $0x110] sm:$0xff] %v891_v49 }
  0xb7   :  { %2411 = vst [vmem:[#allocation2 + $0x10] sm:$0xff] %v827_v5  ;;  %v239_v5 = vld [vmem:[%s5656_s0 + $0x730] sm:$0xff] }
  0xb9   :  { %v859_v4 = vpop.trf.xlu1 }
  0xba   :  { %912 = vxpose.xlu0.b32.cont [8/16] %v187_v53, 128  ;;  %2427 = vst [vmem:[#allocation2 + $0x90] sm:$0xff] %v859_v4  ;;  %v165_v4 = vld [vmem:[%s5656_s0 + $0x4e0] sm:$0xff] }
  0xbc   :  { %975 = vxpose.xlu2.b32.cont [7/16] %v164_v51, 128 }
  0xbd   :  { %944 = vxpose.xlu1.b32.cont [8/16] %v188_v6, 128  ;;  %v892_v55 = vpop.trf.xlu2 }
  0xbe   :  { %v828_v10 = vpop.trf.xlu0  ;;  %2444 = vst [vmem:[#allocation2 + $0x118] sm:$0xff] %v892_v55 }
  0xbf   :  { %2412 = vst [vmem:[#allocation2 + $0x18] sm:$0xff] %v828_v10  ;;  %v190_v10 = vld [vmem:[%s5656_s0 + $0x5a8] sm:$0xff] }
  0xc1   :  { %v860_v9 = vpop.trf.xlu1 }
  0xc2   :  { %913 = vxpose.xlu0.b32.cont [9/16] %v212_v56, 128  ;;  %2428 = vst [vmem:[#allocation2 + $0x98] sm:$0xff] %v860_v9  ;;  %v115_v56 = vld [vmem:[%s5656_s0 + $0x350] sm:$0xff] }
  0xc4   :  { %976 = vxpose.xlu2.b32.cont [8/16] %v189_v57, 128 }
  0xc5   :  { %945 = vxpose.xlu1.b32.cont [9/16] %v213_v11, 128  ;;  %v264_v11 = vld [vmem:[%s5656_s0 + $0x7f8] sm:$0xff] }
  0xc6   :  { %v829_v15 = vpop.trf.xlu0 }
  0xc7   :  { %2413 = vst [vmem:[#allocation2 + $0x20] sm:$0xff] %v829_v15 }
  0xc9   :  { %v861_v14 = vpop.trf.xlu1 }
  0xca   :  { %914 = vxpose.xlu0.b32.cont [10/16] %v237_v61, 128  ;;  %2429 = vst [vmem:[#allocation2 + $0xa0] sm:$0xff] %v861_v14  ;;  %v893_v61 = vpop.trf.xlu2  ;;  %v116_v14 = vld [vmem:[%s5656_s0 + $0x358] sm:$0xff] }
  0xcb   :  { %2445 = vst [vmem:[#allocation2 + $0x120] sm:$0xff] %v893_v61 }
  0xcc   :  { %977 = vxpose.xlu2.b32.cont [9/16] %v214_v63, 128 }
  0xcd   :  { %946 = vxpose.xlu1.b32.cont [10/16] %v238_v16, 128  ;;  %v215_v16 = vld [vmem:[%s5656_s0 + $0x670] sm:$0xff] }
  0xce   :  { %v830_v20 = vpop.trf.xlu0 }
  0xcf   :  { %2414 = vst [vmem:[#allocation2 + $0x28] sm:$0xff] %v830_v20  ;;  %v141_v20 = vld [vmem:[%s5656_s0 + $0x420] sm:$0xff] }
  0xd1   :  { %v862_v19 = vpop.trf.xlu1 }
  0xd2   :  { %915 = vxpose.xlu0.b32.cont [11/16] %v262_v2, 128  ;;  %2430 = vst [vmem:[#allocation2 + $0xa8] sm:$0xff] %v862_v19  ;;  %v66_v2 = vld [vmem:[%s5656_s0 + $0x1c8] sm:$0xff]  ;;  %v894_v3 = vpop.trf.xlu2 }
  0xd3   :  { %2446 = vst [vmem:[#allocation2 + $0x128] sm:$0xff] %v894_v3 }
  0xd4   :  { %978 = vxpose.xlu2.b32.cont [10/16] %v239_v5, 128 }
  0xd5   :  { %947 = vxpose.xlu1.b32.cont [11/16] %v263_v21, 128 }
  0xd6   :  { %v831_v25 = vpop.trf.xlu0 }
  0xd7   :  { %2415 = vst [vmem:[#allocation2 + $0x30] sm:$0xff] %v831_v25 }
  0xd9   :  { %v863_v24 = vpop.trf.xlu1 }
  0xda   :  { %916 = vxpose.xlu0.b32.cont [12/16] %v287_v7, 128  ;;  %2431 = vst [vmem:[#allocation2 + $0xb0] sm:$0xff] %v863_v24  ;;  %v895_v9 = vpop.trf.xlu2 }
  0xdb   :  { %2447 = vst [vmem:[#allocation2 + $0x130] sm:$0xff] %v895_v9 }
  0xdc   :  { %979 = vxpose.xlu2.b32.cont [11/16] %v264_v11, 128 }
  0xdd   :  { %948 = vxpose.xlu1.b32.cont [12/16] %v288_v26, 128  ;;  %v166_v26 = vld [vmem:[%s5656_s0 + $0x4e8] sm:$0xff] }
  0xde   :  { %v832_v30 = vpop.trf.xlu0 }
  0xdf   :  { %2416 = vst [vmem:[#allocation2 + $0x38] sm:$0xff] %v832_v30 }
  0xe1   :  { %v864_v29 = vpop.trf.xlu1 }
  0xe2   :  { %917 = vxpose.xlu0.b32.cont [13/16] %v312_v12, 128  ;;  %2432 = vst [vmem:[#allocation2 + $0xb8] sm:$0xff] %v864_v29  ;;  %v896_v15 = vpop.trf.xlu2  ;;  %v339_v29 = vld [vmem:[%s5656_s0 + $0xa50] sm:$0xff] }
  0xe3   :  { %2448 = vst [vmem:[#allocation2 + $0x138] sm:$0xff] %v896_v15 }
  0xe5   :  { %949 = vxpose.xlu1.b32.cont [13/16] %v313_v31, 128 }
  0xe6   :  { %v833_v35 = vpop.trf.xlu0 }
  0xe7   :  { %2417 = vst [vmem:[#allocation2 + $0x40] sm:$0xff] %v833_v35  ;;  %v364_v35 = vld [vmem:[%s5656_s0 + $0xb18] sm:$0xff] }
  0xe9   :  { %v865_v34 = vpop.trf.xlu1 }
  0xea   :  { %918 = vxpose.xlu0.b32.cont [14/16] %v337_v17, 128  ;;  %2433 = vst [vmem:[#allocation2 + $0xc0] sm:$0xff] %v865_v34  ;;  %v289_v17 = vld [vmem:[%s5656_s0 + $0x8c0] sm:$0xff]  ;;  %v897_v21 = vpop.trf.xlu2  ;;  %v290_v34 = vld [vmem:[%s5656_s0 + $0x8c8] sm:$0xff] }
  0xeb   :  { %980 = vxpose.xlu2.b32.cont [12/16] %v289_v17, 128  ;;  %2449 = vst [vmem:[#allocation2 + $0x140] sm:$0xff] %v897_v21 }
  0xed   :  { %950 = vxpose.xlu1.b32.cont [14/16] %v338_v36, 128 }
  0xee   :  { %v834_v41 = vpop.trf.xlu0 }
  0xef   :  { %2418 = vst [vmem:[#allocation2 + $0x48] sm:$0xff] %v834_v41  ;;  %v389_v41 = vld [vmem:[%s5656_s0 + $0xbe0] sm:$0xff] }
  0xf1   :  { %v866_v40 = vpop.trf.xlu1 }
  0xf2   :  { %919 = vxpose.xlu0.b32.cont [15/16] %v362_v22, 128  ;;  %2434 = vst [vmem:[#allocation2 + $0xc8] sm:$0xff] %v866_v40  ;;  %v240_v22 = vld [vmem:[%s5656_s0 + $0x738] sm:$0xff]  ;;  %v315_v40 = vld [vmem:[%s5656_s0 + $0x990] sm:$0xff] }
  0xf3   :  { %981 = vxpose.xlu2.b32.cont [13/16] %v314_v23, 128 }
  0xf5   :  { %951 = vxpose.xlu1.b32.cont [15/16] %v363_v42, 128 }
  0xf6   :  { %v835_v47 = vpop.trf.xlu0 }
  0xf7   :  { %2419 = vst [vmem:[#allocation2 + $0x50] sm:$0xff] %v835_v47  ;;  %v17_v47 = vld [vmem:[%s5656_s0 + $0x40] sm:$0xff] }
  0xf9   :  { %v867_v46 = vpop.trf.xlu1 }
  0xfa   :  { %920 = vxpose.xlu0.b32.end [16/16] %v387_v27, 128  ;;  %2435 = vst [vmem:[#allocation2 + $0xd0] sm:$0xff] %v867_v46  ;;  %v898_v27 = vpop.trf.xlu2  ;;  %v340_v46 = vld [vmem:[%s5656_s0 + $0xa58] sm:$0xff] }
  0xfb   :  { %2450 = vst [vmem:[#allocation2 + $0x148] sm:$0xff] %v898_v27  ;;  %982 = vxpose.xlu2.b32.cont [14/16] %v339_v29, 128 }
  0xfd   :  { %952 = vxpose.xlu1.b32.end [16/16] %v388_v48, 128 }
  0xfe   :  { %v836_v53 = vpop.trf.xlu0 }
  0xff   :  { %2420 = vst [vmem:[#allocation2 + $0x58] sm:$0xff] %v836_v53  ;;  %v42_v53 = vld [vmem:[%s5656_s0 + $0x108] sm:$0xff] }
 0x101   :  { %v868_v52 = vpop.trf.xlu1 }
 0x102   :  { %1001 = vxpose.xlu0.b32.start [1/16] %v15_v32, 128  ;;  %2436 = vst [vmem:[#allocation2 + $0xd8] sm:$0xff] %v868_v52  ;;  %v191_v32 = vld [vmem:[%s5656_s0 + $0x5b0] sm:$0xff]  ;;  %v899_v33 = vpop.trf.xlu2  ;;  %v365_v52 = vld [vmem:[%s5656_s0 + $0xb20] sm:$0xff] }
 0x103   :  { %2451 = vst [vmem:[#allocation2 + $0x150] sm:$0xff] %v899_v33  ;;  %983 = vxpose.xlu2.b32.cont [15/16] %v364_v35, 128 }
 0x105   :  { %1033 = vxpose.xlu1.b32.start [1/16] %v16_v54, 128 }
 0x106   :  { %v837_v59 = vpop.trf.xlu0 }
 0x107   :  { %2421 = vst [vmem:[#allocation2 + $0x60] sm:$0xff] %v837_v59  ;;  %v67_v59 = vld [vmem:[%s5656_s0 + $0x1d0] sm:$0xff] }
 0x109   :  { %v869_v58 = vpop.trf.xlu1 }
 0x10a   :  { %1002 = vxpose.xlu0.b32.cont [2/16] %v40_v38, 128  ;;  %2437 = vst [vmem:[#allocation2 + $0xe0] sm:$0xff] %v869_v58  ;;  %v216_v38 = vld [vmem:[%s5656_s0 + $0x678] sm:$0xff]  ;;  %v900_v39 = vpop.trf.xlu2  ;;  %v390_v58 = vld [vmem:[%s5656_s0 + $0xbe8] sm:$0xff] }
 0x10b   :  { %2452 = vst [vmem:[#allocation2 + $0x158] sm:$0xff] %v900_v39  ;;  %984 = vxpose.xlu2.b32.end [16/16] %v389_v41, 128 }
 0x10d   :  { %1034 = vxpose.xlu1.b32.cont [2/16] %v41_v60, 128 }
 0x10e   :  { %v838_v1 = vpop.trf.xlu0 }
 0x10f   :  { %2422 = vst [vmem:[#allocation2 + $0x68] sm:$0xff] %v838_v1  ;;  %v92_v1 = vld [vmem:[%s5656_s0 + $0x298] sm:$0xff] }
 0x111   :  { %v870_v0 = vpop.trf.xlu1 }
 0x112   :  { %1003 = vxpose.xlu0.b32.cont [3/16] %v65_v44, 128  ;;  %2438 = vst [vmem:[#allocation2 + $0xe8] sm:$0xff] %v870_v0  ;;  %v241_v44 = vld [vmem:[%s5656_s0 + $0x740] sm:$0xff]  ;;  %v901_v45 = vpop.trf.xlu2  ;;  %v18_v0 = vld [vmem:[%s5656_s0 + $0x48] sm:$0xff] }
 0x113   :  { %2453 = vst [vmem:[#allocation2 + $0x160] sm:$0xff] %v901_v45  ;;  %1065 = vxpose.xlu2.b32.start [1/16] %v17_v47, 128 }
 0x115   :  { %1035 = vxpose.xlu1.b32.cont [3/16] %v66_v2, 128 }
 0x116   :  { %v839_v7 = vpop.trf.xlu0 }
 0x117   :  { %2423 = vst [vmem:[#allocation2 + $0x70] sm:$0xff] %v839_v7  ;;  %v117_v7 = vld [vmem:[%s5656_s0 + $0x360] sm:$0xff] }
 0x119   :  { %v871_v6 = vpop.trf.xlu1 }
 0x11a   :  { %1004 = vxpose.xlu0.b32.cont [4/16] %v90_v50, 128  ;;  %2439 = vst [vmem:[#allocation2 + $0xf0] sm:$0xff] %v871_v6  ;;  %v266_v50 = vld [vmem:[%s5656_s0 + $0x808] sm:$0xff]  ;;  %v902_v51 = vpop.trf.xlu2  ;;  %v43_v6 = vld [vmem:[%s5656_s0 + $0x110] sm:$0xff] }
 0x11b   :  { %2454 = vst [vmem:[#allocation2 + $0x168] sm:$0xff] %v902_v51  ;;  %1066 = vxpose.xlu2.b32.cont [2/16] %v42_v53, 128 }
 0x11d   :  { %1036 = vxpose.xlu1.b32.cont [4/16] %v91_v8, 128 }
 0x11e   :  { %v840_v13 = vpop.trf.xlu0 }
 0x11f   :  { %2424 = vst [vmem:[#allocation2 + $0x78] sm:$0xff] %v840_v13  ;;  %v142_v13 = vld [vmem:[%s5656_s0 + $0x428] sm:$0xff] }
 0x121   :  { %v872_v12 = vpop.trf.xlu1 }
 0x122   :  { %1005 = vxpose.xlu0.b32.cont [5/16] %v115_v56, 128  ;;  %2440 = vst [vmem:[#allocation2 + $0xf8] sm:$0xff] %v872_v12  ;;  %v291_v56 = vld [vmem:[%s5656_s0 + $0x8d0] sm:$0xff]  ;;  %v903_v57 = vpop.trf.xlu2  ;;  %v68_v12 = vld [vmem:[%s5656_s0 + $0x1d8] sm:$0xff] }
 0x123   :  { %2455 = vst [vmem:[#allocation2 + $0x170] sm:$0xff] %v903_v57  ;;  %1067 = vxpose.xlu2.b32.cont [3/16] %v67_v59, 128 }
 0x125   :  { %1037 = vxpose.xlu1.b32.cont [5/16] %v116_v14, 128 }
 0x126   :  { %v921_v19 = vpop.trf.xlu0 }
 0x127   :  { %2457 = vst [vmem:[#allocation2 + $0x180] sm:$0xff] %v921_v19  ;;  %v167_v19 = vld [vmem:[%s5656_s0 + $0x4f0] sm:$0xff] }
 0x129   :  { %v953_v18 = vpop.trf.xlu1 }
 0x12a   :  { %1006 = vxpose.xlu0.b32.cont [6/16] %v140_v62, 128  ;;  %2473 = vst [vmem:[#allocation2 + $0x200] sm:$0xff] %v953_v18  ;;  %v316_v62 = vld [vmem:[%s5656_s0 + $0x998] sm:$0xff]  ;;  %v904_v63 = vpop.trf.xlu2  ;;  %v93_v18 = vld [vmem:[%s5656_s0 + $0x2a0] sm:$0xff] }
 0x12b   :  { %2456 = vst [vmem:[#allocation2 + $0x178] sm:$0xff] %v904_v63  ;;  %1068 = vxpose.xlu2.b32.cont [4/16] %v92_v1, 128 }
 0x12d   :  { %1038 = vxpose.xlu1.b32.cont [6/16] %v141_v20, 128 }
 0x12e   :  { %v922_v25 = vpop.trf.xlu0 }
 0x12f   :  { %2458 = vst [vmem:[#allocation2 + $0x188] sm:$0xff] %v922_v25  ;;  %v192_v25 = vld [vmem:[%s5656_s0 + $0x5b8] sm:$0xff] }
 0x131   :  { %v954_v24 = vpop.trf.xlu1 }
 0x132   :  { %1007 = vxpose.xlu0.b32.cont [7/16] %v165_v4, 128  ;;  %2474 = vst [vmem:[#allocation2 + $0x208] sm:$0xff] %v954_v24  ;;  %v341_v4 = vld [vmem:[%s5656_s0 + $0xa60] sm:$0xff]  ;;  %v985_v5 = vpop.trf.xlu2  ;;  %v118_v24 = vld [vmem:[%s5656_s0 + $0x368] sm:$0xff] }
 0x133   :  { %2489 = vst [vmem:[#allocation2 + $0x280] sm:$0xff] %v985_v5  ;;  %1069 = vxpose.xlu2.b32.cont [5/16] %v117_v7, 128 }
 0x135   :  { %1039 = vxpose.xlu1.b32.cont [7/16] %v166_v26, 128 }
 0x136   :  { %v923_v31 = vpop.trf.xlu0 }
 0x137   :  { %2459 = vst [vmem:[#allocation2 + $0x190] sm:$0xff] %v923_v31  ;;  %v217_v31 = vld [vmem:[%s5656_s0 + $0x680] sm:$0xff] }
 0x139   :  { %v955_v30 = vpop.trf.xlu1 }
 0x13a   :  { %1008 = vxpose.xlu0.b32.cont [8/16] %v190_v10, 128  ;;  %2475 = vst [vmem:[#allocation2 + $0x210] sm:$0xff] %v955_v30  ;;  %v366_v10 = vld [vmem:[%s5656_s0 + $0xb28] sm:$0xff]  ;;  %v986_v11 = vpop.trf.xlu2  ;;  %v143_v30 = vld [vmem:[%s5656_s0 + $0x430] sm:$0xff] }
 0x13b   :  { %2490 = vst [vmem:[#allocation2 + $0x288] sm:$0xff] %v986_v11  ;;  %1070 = vxpose.xlu2.b32.cont [6/16] %v142_v13, 128 }
 0x13d   :  { %1040 = vxpose.xlu1.b32.cont [8/16] %v191_v32, 128 }
 0x13e   :  { %v924_v37 = vpop.trf.xlu0 }
 0x13f   :  { %2460 = vst [vmem:[#allocation2 + $0x198] sm:$0xff] %v924_v37  ;;  %v242_v37 = vld [vmem:[%s5656_s0 + $0x748] sm:$0xff] }
 0x141   :  { %v956_v36 = vpop.trf.xlu1 }
 0x142   :  { %1009 = vxpose.xlu0.b32.cont [9/16] %v215_v16, 128  ;;  %2476 = vst [vmem:[#allocation2 + $0x218] sm:$0xff] %v956_v36  ;;  %v391_v16 = vld [vmem:[%s5656_s0 + $0xbf0] sm:$0xff]  ;;  %v987_v17 = vpop.trf.xlu2  ;;  %v168_v36 = vld [vmem:[%s5656_s0 + $0x4f8] sm:$0xff] }
 0x143   :  { %2491 = vst [vmem:[#allocation2 + $0x290] sm:$0xff] %v987_v17  ;;  %1071 = vxpose.xlu2.b32.cont [7/16] %v167_v19, 128 }
 0x145   :  { %1041 = vxpose.xlu1.b32.cont [9/16] %v216_v38, 128 }
 0x146   :  { %v925_v43 = vpop.trf.xlu0 }
 0x147   :  { %2461 = vst [vmem:[#allocation2 + $0x1a0] sm:$0xff] %v925_v43  ;;  %v267_v43 = vld [vmem:[%s5656_s0 + $0x810] sm:$0xff] }
 0x149   :  { %v957_v42 = vpop.trf.xlu1 }
 0x14a   :  { %1010 = vxpose.xlu0.b32.cont [10/16] %v240_v22, 128  ;;  %2477 = vst [vmem:[#allocation2 + $0x220] sm:$0xff] %v957_v42  ;;  %v19_v22 = vld [vmem:[%s5656_s0 + $0x50] sm:$0xff]  ;;  %v988_v23 = vpop.trf.xlu2  ;;  %v193_v42 = vld [vmem:[%s5656_s0 + $0x5c0] sm:$0xff] }
 0x14b   :  { %2492 = vst [vmem:[#allocation2 + $0x298] sm:$0xff] %v988_v23  ;;  %1072 = vxpose.xlu2.b32.cont [8/16] %v192_v25, 128 }
 0x14d   :  { %1042 = vxpose.xlu1.b32.cont [10/16] %v241_v44, 128 }
 0x14e   :  { %v926_v49 = vpop.trf.xlu0 }
 0x14f   :  { %2462 = vst [vmem:[#allocation2 + $0x1a8] sm:$0xff] %v926_v49  ;;  %v292_v49 = vld [vmem:[%s5656_s0 + $0x8d8] sm:$0xff] }
 0x151   :  { %v958_v48 = vpop.trf.xlu1 }
 0x152   :  { %1011 = vxpose.xlu0.b32.cont [11/16] %v265_v28, 128  ;;  %2478 = vst [vmem:[#allocation2 + $0x228] sm:$0xff] %v958_v48  ;;  %v44_v28 = vld [vmem:[%s5656_s0 + $0x118] sm:$0xff]  ;;  %v989_v29 = vpop.trf.xlu2  ;;  %v218_v48 = vld [vmem:[%s5656_s0 + $0x688] sm:$0xff] }
 0x153   :  { %2493 = vst [vmem:[#allocation2 + $0x2a0] sm:$0xff] %v989_v29  ;;  %1073 = vxpose.xlu2.b32.cont [9/16] %v217_v31, 128 }
 0x155   :  { %1043 = vxpose.xlu1.b32.cont [11/16] %v266_v50, 128 }
 0x156   :  { %v927_v55 = vpop.trf.xlu0 }
 0x157   :  { %2463 = vst [vmem:[#allocation2 + $0x1b0] sm:$0xff] %v927_v55  ;;  %v317_v55 = vld [vmem:[%s5656_s0 + $0x9a0] sm:$0xff] }
 0x159   :  { %v959_v54 = vpop.trf.xlu1 }
 0x15a   :  { %1012 = vxpose.xlu0.b32.cont [12/16] %v290_v34, 128  ;;  %2479 = vst [vmem:[#allocation2 + $0x230] sm:$0xff] %v959_v54  ;;  %v69_v34 = vld [vmem:[%s5656_s0 + $0x1e0] sm:$0xff]  ;;  %v990_v35 = vpop.trf.xlu2  ;;  %v243_v54 = vld [vmem:[%s5656_s0 + $0x750] sm:$0xff] }
 0x15b   :  { %2494 = vst [vmem:[#allocation2 + $0x2a8] sm:$0xff] %v990_v35  ;;  %1074 = vxpose.xlu2.b32.cont [10/16] %v242_v37, 128 }
 0x15d   :  { %1044 = vxpose.xlu1.b32.cont [12/16] %v291_v56, 128 }
 0x15e   :  { %v928_v61 = vpop.trf.xlu0 }
 0x15f   :  { %2464 = vst [vmem:[#allocation2 + $0x1b8] sm:$0xff] %v928_v61  ;;  %v342_v61 = vld [vmem:[%s5656_s0 + $0xa68] sm:$0xff] }
 0x161   :  { %v960_v60 = vpop.trf.xlu1 }
 0x162   :  { %1013 = vxpose.xlu0.b32.cont [13/16] %v315_v40, 128  ;;  %2480 = vst [vmem:[#allocation2 + $0x238] sm:$0xff] %v960_v60  ;;  %v94_v40 = vld [vmem:[%s5656_s0 + $0x2a8] sm:$0xff]  ;;  %v991_v41 = vpop.trf.xlu2  ;;  %v268_v60 = vld [vmem:[%s5656_s0 + $0x818] sm:$0xff] }
 0x163   :  { %2495 = vst [vmem:[#allocation2 + $0x2b0] sm:$0xff] %v991_v41  ;;  %1075 = vxpose.xlu2.b32.cont [11/16] %v267_v43, 128 }
 0x165   :  { %1045 = vxpose.xlu1.b32.cont [13/16] %v316_v62, 128 }
 0x166   :  { %v929_v3 = vpop.trf.xlu0 }
 0x167   :  { %2465 = vst [vmem:[#allocation2 + $0x1c0] sm:$0xff] %v929_v3  ;;  %v367_v3 = vld [vmem:[%s5656_s0 + $0xb30] sm:$0xff] }
 0x169   :  { %v961_v2 = vpop.trf.xlu1 }
 0x16a   :  { %1014 = vxpose.xlu0.b32.cont [14/16] %v340_v46, 128  ;;  %2481 = vst [vmem:[#allocation2 + $0x240] sm:$0xff] %v961_v2  ;;  %v119_v46 = vld [vmem:[%s5656_s0 + $0x370] sm:$0xff]  ;;  %v992_v47 = vpop.trf.xlu2  ;;  %v293_v2 = vld [vmem:[%s5656_s0 + $0x8e0] sm:$0xff] }
 0x16b   :  { %2496 = vst [vmem:[#allocation2 + $0x2b8] sm:$0xff] %v992_v47  ;;  %1076 = vxpose.xlu2.b32.cont [12/16] %v292_v49, 128 }
 0x16d   :  { %1046 = vxpose.xlu1.b32.cont [14/16] %v341_v4, 128 }
 0x16e   :  { %v930_v9 = vpop.trf.xlu0 }
 0x16f   :  { %2466 = vst [vmem:[#allocation2 + $0x1c8] sm:$0xff] %v930_v9  ;;  %v392_v9 = vld [vmem:[%s5656_s0 + $0xbf8] sm:$0xff] }
 0x171   :  { %v962_v8 = vpop.trf.xlu1 }
 0x172   :  { %1015 = vxpose.xlu0.b32.cont [15/16] %v365_v52, 128  ;;  %2482 = vst [vmem:[#allocation2 + $0x248] sm:$0xff] %v962_v8  ;;  %v144_v52 = vld [vmem:[%s5656_s0 + $0x438] sm:$0xff]  ;;  %v993_v53 = vpop.trf.xlu2  ;;  %v318_v8 = vld [vmem:[%s5656_s0 + $0x9a8] sm:$0xff] }
 0x173   :  { %2497 = vst [vmem:[#allocation2 + $0x2c0] sm:$0xff] %v993_v53  ;;  %1077 = vxpose.xlu2.b32.cont [13/16] %v317_v55, 128 }
 0x175   :  { %1047 = vxpose.xlu1.b32.cont [15/16] %v366_v10, 128 }
 0x176   :  { %v931_v15 = vpop.trf.xlu0 }
 0x177   :  { %2467 = vst [vmem:[#allocation2 + $0x1d0] sm:$0xff] %v931_v15  ;;  %v20_v15 = vld [vmem:[%s5656_s0 + $0x58] sm:$0xff] }
 0x179   :  { %v963_v14 = vpop.trf.xlu1 }
 0x17a   :  { %1016 = vxpose.xlu0.b32.end [16/16] %v390_v58, 128  ;;  %2483 = vst [vmem:[#allocation2 + $0x250] sm:$0xff] %v963_v14  ;;  %v169_v58 = vld [vmem:[%s5656_s0 + $0x500] sm:$0xff]  ;;  %v994_v59 = vpop.trf.xlu2  ;;  %v343_v14 = vld [vmem:[%s5656_s0 + $0xa70] sm:$0xff] }
 0x17b   :  { %2498 = vst [vmem:[#allocation2 + $0x2c8] sm:$0xff] %v994_v59  ;;  %1078 = vxpose.xlu2.b32.cont [14/16] %v342_v61, 128 }
 0x17d   :  { %1048 = vxpose.xlu1.b32.end [16/16] %v391_v16, 128 }
 0x17e   :  { %v932_v21 = vpop.trf.xlu0 }
 0x17f   :  { %2468 = vst [vmem:[#allocation2 + $0x1d8] sm:$0xff] %v932_v21  ;;  %v45_v21 = vld [vmem:[%s5656_s0 + $0x120] sm:$0xff] }
 0x181   :  { %v964_v20 = vpop.trf.xlu1 }
 0x182   :  { %1097 = vxpose.xlu0.b32.start [1/16] %v18_v0, 128  ;;  %2484 = vst [vmem:[#allocation2 + $0x258] sm:$0xff] %v964_v20  ;;  %v194_v0 = vld [vmem:[%s5656_s0 + $0x5c8] sm:$0xff]  ;;  %v995_v1 = vpop.trf.xlu2  ;;  %v368_v20 = vld [vmem:[%s5656_s0 + $0xb38] sm:$0xff] }
 0x183   :  { %2499 = vst [vmem:[#allocation2 + $0x2d0] sm:$0xff] %v995_v1  ;;  %1079 = vxpose.xlu2.b32.cont [15/16] %v367_v3, 128 }
 0x185   :  { %1129 = vxpose.xlu1.b32.start [1/16] %v19_v22, 128 }
 0x186   :  { %v933_v27 = vpop.trf.xlu0 }
 0x187   :  { %2469 = vst [vmem:[#allocation2 + $0x1e0] sm:$0xff] %v933_v27  ;;  %v70_v27 = vld [vmem:[%s5656_s0 + $0x1e8] sm:$0xff] }
 0x189   :  { %v965_v26 = vpop.trf.xlu1 }
 0x18a   :  { %1098 = vxpose.xlu0.b32.cont [2/16] %v43_v6, 128  ;;  %2485 = vst [vmem:[#allocation2 + $0x260] sm:$0xff] %v965_v26  ;;  %v219_v6 = vld [vmem:[%s5656_s0 + $0x690] sm:$0xff]  ;;  %v996_v7 = vpop.trf.xlu2  ;;  %v393_v26 = vld [vmem:[%s5656_s0 + $0xc00] sm:$0xff] }
 0x18b   :  { %2500 = vst [vmem:[#allocation2 + $0x2d8] sm:$0xff] %v996_v7  ;;  %1080 = vxpose.xlu2.b32.end [16/16] %v392_v9, 128 }
 0x18d   :  { %1130 = vxpose.xlu1.b32.cont [2/16] %v44_v28, 128 }
 0x18e   :  { %v934_v33 = vpop.trf.xlu0 }
 0x18f   :  { %2470 = vst [vmem:[#allocation2 + $0x1e8] sm:$0xff] %v934_v33  ;;  %v95_v33 = vld [vmem:[%s5656_s0 + $0x2b0] sm:$0xff] }
 0x191   :  { %v966_v32 = vpop.trf.xlu1 }
 0x192   :  { %1099 = vxpose.xlu0.b32.cont [3/16] %v68_v12, 128  ;;  %2486 = vst [vmem:[#allocation2 + $0x268] sm:$0xff] %v966_v32  ;;  %v244_v12 = vld [vmem:[%s5656_s0 + $0x758] sm:$0xff]  ;;  %v997_v13 = vpop.trf.xlu2  ;;  %v21_v32 = vld [vmem:[%s5656_s0 + $0x60] sm:$0xff] }
 0x193   :  { %2501 = vst [vmem:[#allocation2 + $0x2e0] sm:$0xff] %v997_v13  ;;  %1161 = vxpose.xlu2.b32.start [1/16] %v20_v15, 128 }
 0x195   :  { %1131 = vxpose.xlu1.b32.cont [3/16] %v69_v34, 128 }
 0x196   :  { %v935_v39 = vpop.trf.xlu0 }
 0x197   :  { %2471 = vst [vmem:[#allocation2 + $0x1f0] sm:$0xff] %v935_v39  ;;  %v120_v39 = vld [vmem:[%s5656_s0 + $0x378] sm:$0xff] }
 0x199   :  { %v967_v38 = vpop.trf.xlu1 }
 0x19a   :  { %1100 = vxpose.xlu0.b32.cont [4/16] %v93_v18, 128  ;;  %2487 = vst [vmem:[#allocation2 + $0x270] sm:$0xff] %v967_v38  ;;  %v269_v18 = vld [vmem:[%s5656_s0 + $0x820] sm:$0xff]  ;;  %v998_v19 = vpop.trf.xlu2  ;;  %v46_v38 = vld [vmem:[%s5656_s0 + $0x128] sm:$0xff] }
 0x19b   :  { %2502 = vst [vmem:[#allocation2 + $0x2e8] sm:$0xff] %v998_v19  ;;  %1162 = vxpose.xlu2.b32.cont [2/16] %v45_v21, 128 }
 0x19d   :  { %1132 = vxpose.xlu1.b32.cont [4/16] %v94_v40, 128 }
 0x19e   :  { %v936_v45 = vpop.trf.xlu0 }
 0x19f   :  { %2472 = vst [vmem:[#allocation2 + $0x1f8] sm:$0xff] %v936_v45  ;;  %v145_v45 = vld [vmem:[%s5656_s0 + $0x440] sm:$0xff] }
 0x1a1   :  { %v968_v44 = vpop.trf.xlu1 }
 0x1a2   :  { %1101 = vxpose.xlu0.b32.cont [5/16] %v118_v24, 128  ;;  %2488 = vst [vmem:[#allocation2 + $0x278] sm:$0xff] %v968_v44  ;;  %v294_v24 = vld [vmem:[%s5656_s0 + $0x8e8] sm:$0xff]  ;;  %v999_v25 = vpop.trf.xlu2  ;;  %v71_v44 = vld [vmem:[%s5656_s0 + $0x1f0] sm:$0xff] }
 0x1a3   :  { %2503 = vst [vmem:[#allocation2 + $0x2f0] sm:$0xff] %v999_v25  ;;  %1163 = vxpose.xlu2.b32.cont [3/16] %v70_v27, 128 }
 0x1a5   :  { %1133 = vxpose.xlu1.b32.cont [5/16] %v119_v46, 128 }
 0x1a6   :  { %v1017_v51 = vpop.trf.xlu0 }
 0x1a7   :  { %2505 = vst [vmem:[#allocation2 + $0x300] sm:$0xff] %v1017_v51  ;;  %v170_v51 = vld [vmem:[%s5656_s0 + $0x508] sm:$0xff] }
 0x1a9   :  { %v1049_v50 = vpop.trf.xlu1 }
 0x1aa   :  { %1102 = vxpose.xlu0.b32.cont [6/16] %v143_v30, 128  ;;  %2521 = vst [vmem:[#allocation2 + $0x380] sm:$0xff] %v1049_v50  ;;  %v319_v30 = vld [vmem:[%s5656_s0 + $0x9b0] sm:$0xff]  ;;  %v1000_v31 = vpop.trf.xlu2  ;;  %v96_v50 = vld [vmem:[%s5656_s0 + $0x2b8] sm:$0xff] }
 0x1ab   :  { %2504 = vst [vmem:[#allocation2 + $0x2f8] sm:$0xff] %v1000_v31  ;;  %1164 = vxpose.xlu2.b32.cont [4/16] %v95_v33, 128 }
 0x1ad   :  { %1134 = vxpose.xlu1.b32.cont [6/16] %v144_v52, 128 }
 0x1ae   :  { %v1018_v57 = vpop.trf.xlu0 }
 0x1af   :  { %2506 = vst [vmem:[#allocation2 + $0x308] sm:$0xff] %v1018_v57  ;;  %v195_v57 = vld [vmem:[%s5656_s0 + $0x5d0] sm:$0xff] }
 0x1b1   :  { %v1050_v56 = vpop.trf.xlu1 }
 0x1b2   :  { %1103 = vxpose.xlu0.b32.cont [7/16] %v168_v36, 128  ;;  %2522 = vst [vmem:[#allocation2 + $0x388] sm:$0xff] %v1050_v56  ;;  %v344_v36 = vld [vmem:[%s5656_s0 + $0xa78] sm:$0xff]  ;;  %v1081_v37 = vpop.trf.xlu2  ;;  %v121_v56 = vld [vmem:[%s5656_s0 + $0x380] sm:$0xff] }
 0x1b3   :  { %2537 = vst [vmem:[#allocation2 + $0x400] sm:$0xff] %v1081_v37  ;;  %1165 = vxpose.xlu2.b32.cont [5/16] %v120_v39, 128 }
 0x1b5   :  { %1135 = vxpose.xlu1.b32.cont [7/16] %v169_v58, 128 }
 0x1b6   :  { %v1019_v63 = vpop.trf.xlu0 }
 0x1b7   :  { %2507 = vst [vmem:[#allocation2 + $0x310] sm:$0xff] %v1019_v63  ;;  %v220_v63 = vld [vmem:[%s5656_s0 + $0x698] sm:$0xff] }
 0x1b9   :  { %v1051_v62 = vpop.trf.xlu1 }
 0x1ba   :  { %1104 = vxpose.xlu0.b32.cont [8/16] %v193_v42, 128  ;;  %2523 = vst [vmem:[#allocation2 + $0x390] sm:$0xff] %v1051_v62  ;;  %v369_v42 = vld [vmem:[%s5656_s0 + $0xb40] sm:$0xff]  ;;  %v1082_v43 = vpop.trf.xlu2  ;;  %v146_v62 = vld [vmem:[%s5656_s0 + $0x448] sm:$0xff] }
 0x1bb   :  { %2538 = vst [vmem:[#allocation2 + $0x408] sm:$0xff] %v1082_v43  ;;  %1166 = vxpose.xlu2.b32.cont [6/16] %v145_v45, 128 }
 0x1bd   :  { %1136 = vxpose.xlu1.b32.cont [8/16] %v194_v0, 128 }
 0x1be   :  { %v1020_v5 = vpop.trf.xlu0 }
 0x1bf   :  { %2508 = vst [vmem:[#allocation2 + $0x318] sm:$0xff] %v1020_v5  ;;  %v245_v5 = vld [vmem:[%s5656_s0 + $0x760] sm:$0xff] }
 0x1c1   :  { %v1052_v4 = vpop.trf.xlu1 }
 0x1c2   :  { %1105 = vxpose.xlu0.b32.cont [9/16] %v218_v48, 128  ;;  %2524 = vst [vmem:[#allocation2 + $0x398] sm:$0xff] %v1052_v4  ;;  %v394_v48 = vld [vmem:[%s5656_s0 + $0xc08] sm:$0xff]  ;;  %v1083_v49 = vpop.trf.xlu2  ;;  %v171_v4 = vld [vmem:[%s5656_s0 + $0x510] sm:$0xff] }
 0x1c3   :  { %2539 = vst [vmem:[#allocation2 + $0x410] sm:$0xff] %v1083_v49  ;;  %1167 = vxpose.xlu2.b32.cont [7/16] %v170_v51, 128 }
 0x1c5   :  { %1137 = vxpose.xlu1.b32.cont [9/16] %v219_v6, 128 }
 0x1c6   :  { %v1021_v11 = vpop.trf.xlu0 }
 0x1c7   :  { %2509 = vst [vmem:[#allocation2 + $0x320] sm:$0xff] %v1021_v11  ;;  %v270_v11 = vld [vmem:[%s5656_s0 + $0x828] sm:$0xff] }
 0x1c9   :  { %v1053_v10 = vpop.trf.xlu1 }
 0x1ca   :  { %1106 = vxpose.xlu0.b32.cont [10/16] %v243_v54, 128  ;;  %2525 = vst [vmem:[#allocation2 + $0x3a0] sm:$0xff] %v1053_v10  ;;  %v22_v54 = vld [vmem:[%s5656_s0 + $0x68] sm:$0xff]  ;;  %v1084_v55 = vpop.trf.xlu2  ;;  %v196_v10 = vld [vmem:[%s5656_s0 + $0x5d8] sm:$0xff] }
 0x1cb   :  { %2540 = vst [vmem:[#allocation2 + $0x418] sm:$0xff] %v1084_v55  ;;  %1168 = vxpose.xlu2.b32.cont [8/16] %v195_v57, 128 }
 0x1cd   :  { %1138 = vxpose.xlu1.b32.cont [10/16] %v244_v12, 128 }
 0x1ce   :  { %v1022_v17 = vpop.trf.xlu0 }
 0x1cf   :  { %2510 = vst [vmem:[#allocation2 + $0x328] sm:$0xff] %v1022_v17  ;;  %v295_v17 = vld [vmem:[%s5656_s0 + $0x8f0] sm:$0xff] }
 0x1d1   :  { %v1054_v16 = vpop.trf.xlu1 }
 0x1d2   :  { %1107 = vxpose.xlu0.b32.cont [11/16] %v268_v60, 128  ;;  %2526 = vst [vmem:[#allocation2 + $0x3a8] sm:$0xff] %v1054_v16  ;;  %v47_v60 = vld [vmem:[%s5656_s0 + $0x130] sm:$0xff]  ;;  %v1085_v61 = vpop.trf.xlu2  ;;  %v221_v16 = vld [vmem:[%s5656_s0 + $0x6a0] sm:$0xff] }
 0x1d3   :  { %2541 = vst [vmem:[#allocation2 + $0x420] sm:$0xff] %v1085_v61  ;;  %1169 = vxpose.xlu2.b32.cont [9/16] %v220_v63, 128 }
 0x1d5   :  { %1139 = vxpose.xlu1.b32.cont [11/16] %v269_v18, 128 }
 0x1d6   :  { %v1023_v23 = vpop.trf.xlu0 }
 0x1d7   :  { %2511 = vst [vmem:[#allocation2 + $0x330] sm:$0xff] %v1023_v23  ;;  %v320_v23 = vld [vmem:[%s5656_s0 + $0x9b8] sm:$0xff] }
 0x1d9   :  { %v1055_v22 = vpop.trf.xlu1 }
 0x1da   :  { %1108 = vxpose.xlu0.b32.cont [12/16] %v293_v2, 128  ;;  %2527 = vst [vmem:[#allocation2 + $0x3b0] sm:$0xff] %v1055_v22  ;;  %v72_v2 = vld [vmem:[%s5656_s0 + $0x1f8] sm:$0xff]  ;;  %v1086_v3 = vpop.trf.xlu2  ;;  %v246_v22 = vld [vmem:[%s5656_s0 + $0x768] sm:$0xff] }
 0x1db   :  { %2542 = vst [vmem:[#allocation2 + $0x428] sm:$0xff] %v1086_v3  ;;  %1170 = vxpose.xlu2.b32.cont [10/16] %v245_v5, 128 }
 0x1dd   :  { %1140 = vxpose.xlu1.b32.cont [12/16] %v294_v24, 128 }
 0x1de   :  { %v1024_v29 = vpop.trf.xlu0 }
 0x1df   :  { %2512 = vst [vmem:[#allocation2 + $0x338] sm:$0xff] %v1024_v29  ;;  %v345_v29 = vld [vmem:[%s5656_s0 + $0xa80] sm:$0xff] }
 0x1e1   :  { %v1056_v28 = vpop.trf.xlu1 }
 0x1e2   :  { %1109 = vxpose.xlu0.b32.cont [13/16] %v318_v8, 128  ;;  %2528 = vst [vmem:[#allocation2 + $0x3b8] sm:$0xff] %v1056_v28  ;;  %v97_v8 = vld [vmem:[%s5656_s0 + $0x2c0] sm:$0xff]  ;;  %v1087_v9 = vpop.trf.xlu2  ;;  %v271_v28 = vld [vmem:[%s5656_s0 + $0x830] sm:$0xff] }
 0x1e3   :  { %2543 = vst [vmem:[#allocation2 + $0x430] sm:$0xff] %v1087_v9  ;;  %1171 = vxpose.xlu2.b32.cont [11/16] %v270_v11, 128 }
 0x1e5   :  { %1141 = vxpose.xlu1.b32.cont [13/16] %v319_v30, 128 }
 0x1e6   :  { %v1025_v35 = vpop.trf.xlu0 }
 0x1e7   :  { %2513 = vst [vmem:[#allocation2 + $0x340] sm:$0xff] %v1025_v35  ;;  %v370_v35 = vld [vmem:[%s5656_s0 + $0xb48] sm:$0xff] }
 0x1e9   :  { %v1057_v34 = vpop.trf.xlu1 }
 0x1ea   :  { %1110 = vxpose.xlu0.b32.cont [14/16] %v343_v14, 128  ;;  %2529 = vst [vmem:[#allocation2 + $0x3c0] sm:$0xff] %v1057_v34  ;;  %v122_v14 = vld [vmem:[%s5656_s0 + $0x388] sm:$0xff]  ;;  %v1088_v15 = vpop.trf.xlu2  ;;  %v296_v34 = vld [vmem:[%s5656_s0 + $0x8f8] sm:$0xff] }
 0x1eb   :  { %2544 = vst [vmem:[#allocation2 + $0x438] sm:$0xff] %v1088_v15  ;;  %1172 = vxpose.xlu2.b32.cont [12/16] %v295_v17, 128 }
 0x1ed   :  { %1142 = vxpose.xlu1.b32.cont [14/16] %v344_v36, 128 }
 0x1ee   :  { %v1026_v41 = vpop.trf.xlu0 }
 0x1ef   :  { %2514 = vst [vmem:[#allocation2 + $0x348] sm:$0xff] %v1026_v41  ;;  %v395_v41 = vld [vmem:[%s5656_s0 + $0xc10] sm:$0xff] }
 0x1f1   :  { %v1058_v40 = vpop.trf.xlu1 }
 0x1f2   :  { %1111 = vxpose.xlu0.b32.cont [15/16] %v368_v20, 128  ;;  %2530 = vst [vmem:[#allocation2 + $0x3c8] sm:$0xff] %v1058_v40  ;;  %v147_v20 = vld [vmem:[%s5656_s0 + $0x450] sm:$0xff]  ;;  %v1089_v21 = vpop.trf.xlu2  ;;  %v321_v40 = vld [vmem:[%s5656_s0 + $0x9c0] sm:$0xff] }
 0x1f3   :  { %2545 = vst [vmem:[#allocation2 + $0x440] sm:$0xff] %v1089_v21  ;;  %1173 = vxpose.xlu2.b32.cont [13/16] %v320_v23, 128 }
 0x1f5   :  { %1143 = vxpose.xlu1.b32.cont [15/16] %v369_v42, 128 }
 0x1f6   :  { %v1027_v47 = vpop.trf.xlu0 }
 0x1f7   :  { %2515 = vst [vmem:[#allocation2 + $0x350] sm:$0xff] %v1027_v47  ;;  %v23_v47 = vld [vmem:[%s5656_s0 + $0x70] sm:$0xff] }
 0x1f9   :  { %v1059_v46 = vpop.trf.xlu1 }
 0x1fa   :  { %1112 = vxpose.xlu0.b32.end [16/16] %v393_v26, 128  ;;  %2531 = vst [vmem:[#allocation2 + $0x3d0] sm:$0xff] %v1059_v46  ;;  %v172_v26 = vld [vmem:[%s5656_s0 + $0x518] sm:$0xff]  ;;  %v1090_v27 = vpop.trf.xlu2  ;;  %v346_v46 = vld [vmem:[%s5656_s0 + $0xa88] sm:$0xff] }
 0x1fb   :  { %2546 = vst [vmem:[#allocation2 + $0x448] sm:$0xff] %v1090_v27  ;;  %1174 = vxpose.xlu2.b32.cont [14/16] %v345_v29, 128 }
 0x1fd   :  { %1144 = vxpose.xlu1.b32.end [16/16] %v394_v48, 128 }
 0x1fe   :  { %v1028_v53 = vpop.trf.xlu0 }
 0x1ff   :  { %2516 = vst [vmem:[#allocation2 + $0x358] sm:$0xff] %v1028_v53  ;;  %v48_v53 = vld [vmem:[%s5656_s0 + $0x138] sm:$0xff] }
 0x201   :  { %v1060_v52 = vpop.trf.xlu1 }
 0x202   :  { %1193 = vxpose.xlu0.b32.start [1/16] %v21_v32, 128  ;;  %2532 = vst [vmem:[#allocation2 + $0x3d8] sm:$0xff] %v1060_v52  ;;  %v197_v32 = vld [vmem:[%s5656_s0 + $0x5e0] sm:$0xff]  ;;  %v1091_v33 = vpop.trf.xlu2  ;;  %v371_v52 = vld [vmem:[%s5656_s0 + $0xb50] sm:$0xff] }
 0x203   :  { %2547 = vst [vmem:[#allocation2 + $0x450] sm:$0xff] %v1091_v33  ;;  %1175 = vxpose.xlu2.b32.cont [15/16] %v370_v35, 128 }
 0x205   :  { %1225 = vxpose.xlu1.b32.start [1/16] %v22_v54, 128 }
 0x206   :  { %v1029_v59 = vpop.trf.xlu0 }
 0x207   :  { %2517 = vst [vmem:[#allocation2 + $0x360] sm:$0xff] %v1029_v59  ;;  %v73_v59 = vld [vmem:[%s5656_s0 + $0x200] sm:$0xff] }
 0x209   :  { %v1061_v58 = vpop.trf.xlu1 }
 0x20a   :  { %1194 = vxpose.xlu0.b32.cont [2/16] %v46_v38, 128  ;;  %2533 = vst [vmem:[#allocation2 + $0x3e0] sm:$0xff] %v1061_v58  ;;  %v222_v38 = vld [vmem:[%s5656_s0 + $0x6a8] sm:$0xff]  ;;  %v1092_v39 = vpop.trf.xlu2  ;;  %v396_v58 = vld [vmem:[%s5656_s0 + $0xc18] sm:$0xff] }
 0x20b   :  { %2548 = vst [vmem:[#allocation2 + $0x458] sm:$0xff] %v1092_v39  ;;  %1176 = vxpose.xlu2.b32.end [16/16] %v395_v41, 128 }
 0x20d   :  { %1226 = vxpose.xlu1.b32.cont [2/16] %v47_v60, 128 }
 0x20e   :  { %v1030_v1 = vpop.trf.xlu0 }
 0x20f   :  { %2518 = vst [vmem:[#allocation2 + $0x368] sm:$0xff] %v1030_v1  ;;  %v98_v1 = vld [vmem:[%s5656_s0 + $0x2c8] sm:$0xff] }
 0x211   :  { %v1062_v0 = vpop.trf.xlu1 }
 0x212   :  { %1195 = vxpose.xlu0.b32.cont [3/16] %v71_v44, 128  ;;  %2534 = vst [vmem:[#allocation2 + $0x3e8] sm:$0xff] %v1062_v0  ;;  %v247_v44 = vld [vmem:[%s5656_s0 + $0x770] sm:$0xff]  ;;  %v1093_v45 = vpop.trf.xlu2  ;;  %v24_v0 = vld [vmem:[%s5656_s0 + $0x78] sm:$0xff] }
 0x213   :  { %2549 = vst [vmem:[#allocation2 + $0x460] sm:$0xff] %v1093_v45  ;;  %1257 = vxpose.xlu2.b32.start [1/16] %v23_v47, 128 }
 0x215   :  { %1227 = vxpose.xlu1.b32.cont [3/16] %v72_v2, 128 }
 0x216   :  { %v1031_v7 = vpop.trf.xlu0 }
 0x217   :  { %2519 = vst [vmem:[#allocation2 + $0x370] sm:$0xff] %v1031_v7  ;;  %v123_v7 = vld [vmem:[%s5656_s0 + $0x390] sm:$0xff] }
 0x219   :  { %v1063_v6 = vpop.trf.xlu1 }
 0x21a   :  { %1196 = vxpose.xlu0.b32.cont [4/16] %v96_v50, 128  ;;  %2535 = vst [vmem:[#allocation2 + $0x3f0] sm:$0xff] %v1063_v6  ;;  %v272_v50 = vld [vmem:[%s5656_s0 + $0x838] sm:$0xff]  ;;  %v1094_v51 = vpop.trf.xlu2  ;;  %v49_v6 = vld [vmem:[%s5656_s0 + $0x140] sm:$0xff] }
 0x21b   :  { %2550 = vst [vmem:[#allocation2 + $0x468] sm:$0xff] %v1094_v51  ;;  %1258 = vxpose.xlu2.b32.cont [2/16] %v48_v53, 128 }
 0x21d   :  { %1228 = vxpose.xlu1.b32.cont [4/16] %v97_v8, 128 }
 0x21e   :  { %v1032_v13 = vpop.trf.xlu0 }
 0x21f   :  { %2520 = vst [vmem:[#allocation2 + $0x378] sm:$0xff] %v1032_v13  ;;  %v148_v13 = vld [vmem:[%s5656_s0 + $0x458] sm:$0xff] }
 0x221   :  { %v1064_v12 = vpop.trf.xlu1 }
 0x222   :  { %1197 = vxpose.xlu0.b32.cont [5/16] %v121_v56, 128  ;;  %2536 = vst [vmem:[#allocation2 + $0x3f8] sm:$0xff] %v1064_v12  ;;  %v297_v56 = vld [vmem:[%s5656_s0 + $0x900] sm:$0xff]  ;;  %v1095_v57 = vpop.trf.xlu2  ;;  %v74_v12 = vld [vmem:[%s5656_s0 + $0x208] sm:$0xff] }
 0x223   :  { %2551 = vst [vmem:[#allocation2 + $0x470] sm:$0xff] %v1095_v57  ;;  %1259 = vxpose.xlu2.b32.cont [3/16] %v73_v59, 128 }
 0x225   :  { %1229 = vxpose.xlu1.b32.cont [5/16] %v122_v14, 128 }
 0x226   :  { %v1113_v19 = vpop.trf.xlu0 }
 0x227   :  { %2553 = vst [vmem:[#allocation2 + $0x480] sm:$0xff] %v1113_v19  ;;  %v173_v19 = vld [vmem:[%s5656_s0 + $0x520] sm:$0xff] }
 0x229   :  { %v1145_v18 = vpop.trf.xlu1 }
 0x22a   :  { %1198 = vxpose.xlu0.b32.cont [6/16] %v146_v62, 128  ;;  %2569 = vst [vmem:[#allocation2 + $0x500] sm:$0xff] %v1145_v18  ;;  %v322_v62 = vld [vmem:[%s5656_s0 + $0x9c8] sm:$0xff]  ;;  %v1096_v63 = vpop.trf.xlu2  ;;  %v99_v18 = vld [vmem:[%s5656_s0 + $0x2d0] sm:$0xff] }
 0x22b   :  { %2552 = vst [vmem:[#allocation2 + $0x478] sm:$0xff] %v1096_v63  ;;  %1260 = vxpose.xlu2.b32.cont [4/16] %v98_v1, 128 }
 0x22d   :  { %1230 = vxpose.xlu1.b32.cont [6/16] %v147_v20, 128 }
 0x22e   :  { %v1114_v25 = vpop.trf.xlu0 }
 0x22f   :  { %2554 = vst [vmem:[#allocation2 + $0x488] sm:$0xff] %v1114_v25  ;;  %v198_v25 = vld [vmem:[%s5656_s0 + $0x5e8] sm:$0xff] }
 0x231   :  { %v1146_v24 = vpop.trf.xlu1 }
 0x232   :  { %1199 = vxpose.xlu0.b32.cont [7/16] %v171_v4, 128  ;;  %2570 = vst [vmem:[#allocation2 + $0x508] sm:$0xff] %v1146_v24  ;;  %v347_v4 = vld [vmem:[%s5656_s0 + $0xa90] sm:$0xff]  ;;  %v1177_v5 = vpop.trf.xlu2  ;;  %v124_v24 = vld [vmem:[%s5656_s0 + $0x398] sm:$0xff] }
 0x233   :  { %2585 = vst [vmem:[#allocation2 + $0x580] sm:$0xff] %v1177_v5  ;;  %1261 = vxpose.xlu2.b32.cont [5/16] %v123_v7, 128 }
 0x235   :  { %1231 = vxpose.xlu1.b32.cont [7/16] %v172_v26, 128 }
 0x236   :  { %v1115_v31 = vpop.trf.xlu0 }
 0x237   :  { %2555 = vst [vmem:[#allocation2 + $0x490] sm:$0xff] %v1115_v31  ;;  %v223_v31 = vld [vmem:[%s5656_s0 + $0x6b0] sm:$0xff] }
 0x239   :  { %v1147_v30 = vpop.trf.xlu1 }
 0x23a   :  { %1200 = vxpose.xlu0.b32.cont [8/16] %v196_v10, 128  ;;  %2571 = vst [vmem:[#allocation2 + $0x510] sm:$0xff] %v1147_v30  ;;  %v372_v10 = vld [vmem:[%s5656_s0 + $0xb58] sm:$0xff]  ;;  %v1178_v11 = vpop.trf.xlu2  ;;  %v149_v30 = vld [vmem:[%s5656_s0 + $0x460] sm:$0xff] }
 0x23b   :  { %2586 = vst [vmem:[#allocation2 + $0x588] sm:$0xff] %v1178_v11  ;;  %1262 = vxpose.xlu2.b32.cont [6/16] %v148_v13, 128 }
 0x23d   :  { %1232 = vxpose.xlu1.b32.cont [8/16] %v197_v32, 128 }
 0x23e   :  { %v1116_v37 = vpop.trf.xlu0 }
 0x23f   :  { %2556 = vst [vmem:[#allocation2 + $0x498] sm:$0xff] %v1116_v37  ;;  %v248_v37 = vld [vmem:[%s5656_s0 + $0x778] sm:$0xff] }
 0x241   :  { %v1148_v36 = vpop.trf.xlu1 }
 0x242   :  { %1201 = vxpose.xlu0.b32.cont [9/16] %v221_v16, 128  ;;  %2572 = vst [vmem:[#allocation2 + $0x518] sm:$0xff] %v1148_v36  ;;  %v397_v16 = vld [vmem:[%s5656_s0 + $0xc20] sm:$0xff]  ;;  %v1179_v17 = vpop.trf.xlu2  ;;  %v174_v36 = vld [vmem:[%s5656_s0 + $0x528] sm:$0xff] }
 0x243   :  { %2587 = vst [vmem:[#allocation2 + $0x590] sm:$0xff] %v1179_v17  ;;  %1263 = vxpose.xlu2.b32.cont [7/16] %v173_v19, 128 }
 0x245   :  { %1233 = vxpose.xlu1.b32.cont [9/16] %v222_v38, 128 }
 0x246   :  { %v1117_v43 = vpop.trf.xlu0 }
 0x247   :  { %2557 = vst [vmem:[#allocation2 + $0x4a0] sm:$0xff] %v1117_v43  ;;  %v273_v43 = vld [vmem:[%s5656_s0 + $0x840] sm:$0xff] }
 0x249   :  { %v1149_v42 = vpop.trf.xlu1 }
 0x24a   :  { %1202 = vxpose.xlu0.b32.cont [10/16] %v246_v22, 128  ;;  %2573 = vst [vmem:[#allocation2 + $0x520] sm:$0xff] %v1149_v42  ;;  %v25_v22 = vld [vmem:[%s5656_s0 + $0x80] sm:$0xff]  ;;  %v1180_v23 = vpop.trf.xlu2  ;;  %v199_v42 = vld [vmem:[%s5656_s0 + $0x5f0] sm:$0xff] }
 0x24b   :  { %2588 = vst [vmem:[#allocation2 + $0x598] sm:$0xff] %v1180_v23  ;;  %1264 = vxpose.xlu2.b32.cont [8/16] %v198_v25, 128 }
 0x24d   :  { %1234 = vxpose.xlu1.b32.cont [10/16] %v247_v44, 128 }
 0x24e   :  { %v1118_v49 = vpop.trf.xlu0 }
 0x24f   :  { %2558 = vst [vmem:[#allocation2 + $0x4a8] sm:$0xff] %v1118_v49  ;;  %v298_v49 = vld [vmem:[%s5656_s0 + $0x908] sm:$0xff] }
 0x251   :  { %v1150_v48 = vpop.trf.xlu1 }
 0x252   :  { %1203 = vxpose.xlu0.b32.cont [11/16] %v271_v28, 128  ;;  %2574 = vst [vmem:[#allocation2 + $0x528] sm:$0xff] %v1150_v48  ;;  %v50_v28 = vld [vmem:[%s5656_s0 + $0x148] sm:$0xff]  ;;  %v1181_v29 = vpop.trf.xlu2  ;;  %v224_v48 = vld [vmem:[%s5656_s0 + $0x6b8] sm:$0xff] }
 0x253   :  { %2589 = vst [vmem:[#allocation2 + $0x5a0] sm:$0xff] %v1181_v29  ;;  %1265 = vxpose.xlu2.b32.cont [9/16] %v223_v31, 128 }
 0x255   :  { %1235 = vxpose.xlu1.b32.cont [11/16] %v272_v50, 128 }
 0x256   :  { %v1119_v55 = vpop.trf.xlu0 }
 0x257   :  { %2559 = vst [vmem:[#allocation2 + $0x4b0] sm:$0xff] %v1119_v55  ;;  %v323_v55 = vld [vmem:[%s5656_s0 + $0x9d0] sm:$0xff] }
 0x259   :  { %v1151_v54 = vpop.trf.xlu1 }
 0x25a   :  { %1204 = vxpose.xlu0.b32.cont [12/16] %v296_v34, 128  ;;  %2575 = vst [vmem:[#allocation2 + $0x530] sm:$0xff] %v1151_v54  ;;  %v75_v34 = vld [vmem:[%s5656_s0 + $0x210] sm:$0xff]  ;;  %v1182_v35 = vpop.trf.xlu2  ;;  %v249_v54 = vld [vmem:[%s5656_s0 + $0x780] sm:$0xff] }
 0x25b   :  { %2590 = vst [vmem:[#allocation2 + $0x5a8] sm:$0xff] %v1182_v35  ;;  %1266 = vxpose.xlu2.b32.cont [10/16] %v248_v37, 128 }
 0x25d   :  { %1236 = vxpose.xlu1.b32.cont [12/16] %v297_v56, 128 }
 0x25e   :  { %v1120_v61 = vpop.trf.xlu0 }
 0x25f   :  { %2560 = vst [vmem:[#allocation2 + $0x4b8] sm:$0xff] %v1120_v61  ;;  %v348_v61 = vld [vmem:[%s5656_s0 + $0xa98] sm:$0xff] }
 0x261   :  { %v1152_v60 = vpop.trf.xlu1 }
 0x262   :  { %1205 = vxpose.xlu0.b32.cont [13/16] %v321_v40, 128  ;;  %2576 = vst [vmem:[#allocation2 + $0x538] sm:$0xff] %v1152_v60  ;;  %v100_v40 = vld [vmem:[%s5656_s0 + $0x2d8] sm:$0xff]  ;;  %v1183_v41 = vpop.trf.xlu2  ;;  %v274_v60 = vld [vmem:[%s5656_s0 + $0x848] sm:$0xff] }
 0x263   :  { %2591 = vst [vmem:[#allocation2 + $0x5b0] sm:$0xff] %v1183_v41  ;;  %1267 = vxpose.xlu2.b32.cont [11/16] %v273_v43, 128 }
 0x265   :  { %1237 = vxpose.xlu1.b32.cont [13/16] %v322_v62, 128 }
 0x266   :  { %v1121_v3 = vpop.trf.xlu0 }
 0x267   :  { %2561 = vst [vmem:[#allocation2 + $0x4c0] sm:$0xff] %v1121_v3  ;;  %v373_v3 = vld [vmem:[%s5656_s0 + $0xb60] sm:$0xff] }
 0x269   :  { %v1153_v2 = vpop.trf.xlu1 }
 0x26a   :  { %1206 = vxpose.xlu0.b32.cont [14/16] %v346_v46, 128  ;;  %2577 = vst [vmem:[#allocation2 + $0x540] sm:$0xff] %v1153_v2  ;;  %v125_v46 = vld [vmem:[%s5656_s0 + $0x3a0] sm:$0xff]  ;;  %v1184_v47 = vpop.trf.xlu2  ;;  %v299_v2 = vld [vmem:[%s5656_s0 + $0x910] sm:$0xff] }
 0x26b   :  { %2592 = vst [vmem:[#allocation2 + $0x5b8] sm:$0xff] %v1184_v47  ;;  %1268 = vxpose.xlu2.b32.cont [12/16] %v298_v49, 128 }
 0x26d   :  { %1238 = vxpose.xlu1.b32.cont [14/16] %v347_v4, 128 }
 0x26e   :  { %v1122_v9 = vpop.trf.xlu0 }
 0x26f   :  { %2562 = vst [vmem:[#allocation2 + $0x4c8] sm:$0xff] %v1122_v9  ;;  %v398_v9 = vld [vmem:[%s5656_s0 + $0xc28] sm:$0xff] }
 0x271   :  { %v1154_v8 = vpop.trf.xlu1 }
 0x272   :  { %1207 = vxpose.xlu0.b32.cont [15/16] %v371_v52, 128  ;;  %2578 = vst [vmem:[#allocation2 + $0x548] sm:$0xff] %v1154_v8  ;;  %v150_v52 = vld [vmem:[%s5656_s0 + $0x468] sm:$0xff]  ;;  %v1185_v53 = vpop.trf.xlu2  ;;  %v324_v8 = vld [vmem:[%s5656_s0 + $0x9d8] sm:$0xff] }
 0x273   :  { %2593 = vst [vmem:[#allocation2 + $0x5c0] sm:$0xff] %v1185_v53  ;;  %1269 = vxpose.xlu2.b32.cont [13/16] %v323_v55, 128 }
 0x275   :  { %1239 = vxpose.xlu1.b32.cont [15/16] %v372_v10, 128 }
 0x276   :  { %v1123_v15 = vpop.trf.xlu0 }
 0x277   :  { %2563 = vst [vmem:[#allocation2 + $0x4d0] sm:$0xff] %v1123_v15  ;;  %v26_v15 = vld [vmem:[%s5656_s0 + $0x88] sm:$0xff] }
 0x279   :  { %v1155_v14 = vpop.trf.xlu1 }
 0x27a   :  { %1208 = vxpose.xlu0.b32.end [16/16] %v396_v58, 128  ;;  %2579 = vst [vmem:[#allocation2 + $0x550] sm:$0xff] %v1155_v14  ;;  %v175_v58 = vld [vmem:[%s5656_s0 + $0x530] sm:$0xff]  ;;  %v1186_v59 = vpop.trf.xlu2  ;;  %v349_v14 = vld [vmem:[%s5656_s0 + $0xaa0] sm:$0xff] }
 0x27b   :  { %2594 = vst [vmem:[#allocation2 + $0x5c8] sm:$0xff] %v1186_v59  ;;  %1270 = vxpose.xlu2.b32.cont [14/16] %v348_v61, 128 }
 0x27d   :  { %1240 = vxpose.xlu1.b32.end [16/16] %v397_v16, 128 }
 0x27e   :  { %v1124_v21 = vpop.trf.xlu0 }
 0x27f   :  { %2564 = vst [vmem:[#allocation2 + $0x4d8] sm:$0xff] %v1124_v21  ;;  %v51_v21 = vld [vmem:[%s5656_s0 + $0x150] sm:$0xff] }
 0x281   :  { %v1156_v20 = vpop.trf.xlu1 }
 0x282   :  { %1289 = vxpose.xlu0.b32.start [1/16] %v24_v0, 128  ;;  %2580 = vst [vmem:[#allocation2 + $0x558] sm:$0xff] %v1156_v20  ;;  %v200_v0 = vld [vmem:[%s5656_s0 + $0x5f8] sm:$0xff]  ;;  %v1187_v1 = vpop.trf.xlu2  ;;  %v374_v20 = vld [vmem:[%s5656_s0 + $0xb68] sm:$0xff] }
 0x283   :  { %2595 = vst [vmem:[#allocation2 + $0x5d0] sm:$0xff] %v1187_v1  ;;  %1271 = vxpose.xlu2.b32.cont [15/16] %v373_v3, 128 }
 0x285   :  { %1321 = vxpose.xlu1.b32.start [1/16] %v25_v22, 128 }
 0x286   :  { %v1125_v27 = vpop.trf.xlu0 }
 0x287   :  { %2565 = vst [vmem:[#allocation2 + $0x4e0] sm:$0xff] %v1125_v27  ;;  %v76_v27 = vld [vmem:[%s5656_s0 + $0x218] sm:$0xff] }
 0x289   :  { %v1157_v26 = vpop.trf.xlu1 }
 0x28a   :  { %1290 = vxpose.xlu0.b32.cont [2/16] %v49_v6, 128  ;;  %2581 = vst [vmem:[#allocation2 + $0x560] sm:$0xff] %v1157_v26  ;;  %v225_v6 = vld [vmem:[%s5656_s0 + $0x6c0] sm:$0xff]  ;;  %v1188_v7 = vpop.trf.xlu2  ;;  %v399_v26 = vld [vmem:[%s5656_s0 + $0xc30] sm:$0xff] }
 0x28b   :  { %2596 = vst [vmem:[#allocation2 + $0x5d8] sm:$0xff] %v1188_v7  ;;  %1272 = vxpose.xlu2.b32.end [16/16] %v398_v9, 128 }
 0x28d   :  { %1322 = vxpose.xlu1.b32.cont [2/16] %v50_v28, 128 }
 0x28e   :  { %v1126_v33 = vpop.trf.xlu0 }
 0x28f   :  { %2566 = vst [vmem:[#allocation2 + $0x4e8] sm:$0xff] %v1126_v33  ;;  %v101_v33 = vld [vmem:[%s5656_s0 + $0x2e0] sm:$0xff] }
 0x291   :  { %v1158_v32 = vpop.trf.xlu1 }
 0x292   :  { %1291 = vxpose.xlu0.b32.cont [3/16] %v74_v12, 128  ;;  %2582 = vst [vmem:[#allocation2 + $0x568] sm:$0xff] %v1158_v32  ;;  %v250_v12 = vld [vmem:[%s5656_s0 + $0x788] sm:$0xff]  ;;  %v1189_v13 = vpop.trf.xlu2  ;;  %v27_v32 = vld [vmem:[%s5656_s0 + $0x90] sm:$0xff] }
 0x293   :  { %2597 = vst [vmem:[#allocation2 + $0x5e0] sm:$0xff] %v1189_v13  ;;  %1353 = vxpose.xlu2.b32.start [1/16] %v26_v15, 128 }
 0x295   :  { %1323 = vxpose.xlu1.b32.cont [3/16] %v75_v34, 128 }
 0x296   :  { %v1127_v39 = vpop.trf.xlu0 }
 0x297   :  { %2567 = vst [vmem:[#allocation2 + $0x4f0] sm:$0xff] %v1127_v39  ;;  %v126_v39 = vld [vmem:[%s5656_s0 + $0x3a8] sm:$0xff] }
 0x299   :  { %v1159_v38 = vpop.trf.xlu1 }
 0x29a   :  { %1292 = vxpose.xlu0.b32.cont [4/16] %v99_v18, 128  ;;  %2583 = vst [vmem:[#allocation2 + $0x570] sm:$0xff] %v1159_v38  ;;  %v275_v18 = vld [vmem:[%s5656_s0 + $0x850] sm:$0xff]  ;;  %v1190_v19 = vpop.trf.xlu2  ;;  %v52_v38 = vld [vmem:[%s5656_s0 + $0x158] sm:$0xff] }
 0x29b   :  { %2598 = vst [vmem:[#allocation2 + $0x5e8] sm:$0xff] %v1190_v19  ;;  %1354 = vxpose.xlu2.b32.cont [2/16] %v51_v21, 128 }
 0x29d   :  { %1324 = vxpose.xlu1.b32.cont [4/16] %v100_v40, 128 }
 0x29e   :  { %v1128_v45 = vpop.trf.xlu0 }
 0x29f   :  { %2568 = vst [vmem:[#allocation2 + $0x4f8] sm:$0xff] %v1128_v45  ;;  %v151_v45 = vld [vmem:[%s5656_s0 + $0x470] sm:$0xff] }
 0x2a1   :  { %v1160_v44 = vpop.trf.xlu1 }
 0x2a2   :  { %1293 = vxpose.xlu0.b32.cont [5/16] %v124_v24, 128  ;;  %2584 = vst [vmem:[#allocation2 + $0x578] sm:$0xff] %v1160_v44  ;;  %v300_v24 = vld [vmem:[%s5656_s0 + $0x918] sm:$0xff]  ;;  %v1191_v25 = vpop.trf.xlu2  ;;  %v77_v44 = vld [vmem:[%s5656_s0 + $0x220] sm:$0xff] }
 0x2a3   :  { %2599 = vst [vmem:[#allocation2 + $0x5f0] sm:$0xff] %v1191_v25  ;;  %1355 = vxpose.xlu2.b32.cont [3/16] %v76_v27, 128 }
 0x2a5   :  { %1325 = vxpose.xlu1.b32.cont [5/16] %v125_v46, 128 }
 0x2a6   :  { %v1209_v51 = vpop.trf.xlu0 }
 0x2a7   :  { %2601 = vst [vmem:[#allocation2 + $0x600] sm:$0xff] %v1209_v51  ;;  %v176_v51 = vld [vmem:[%s5656_s0 + $0x538] sm:$0xff] }
 0x2a9   :  { %v1241_v50 = vpop.trf.xlu1 }
 0x2aa   :  { %1294 = vxpose.xlu0.b32.cont [6/16] %v149_v30, 128  ;;  %2617 = vst [vmem:[#allocation2 + $0x680] sm:$0xff] %v1241_v50  ;;  %v325_v30 = vld [vmem:[%s5656_s0 + $0x9e0] sm:$0xff]  ;;  %v1192_v31 = vpop.trf.xlu2  ;;  %v102_v50 = vld [vmem:[%s5656_s0 + $0x2e8] sm:$0xff] }
 0x2ab   :  { %2600 = vst [vmem:[#allocation2 + $0x5f8] sm:$0xff] %v1192_v31  ;;  %1356 = vxpose.xlu2.b32.cont [4/16] %v101_v33, 128 }
 0x2ad   :  { %1326 = vxpose.xlu1.b32.cont [6/16] %v150_v52, 128 }
 0x2ae   :  { %v1210_v57 = vpop.trf.xlu0 }
 0x2af   :  { %2602 = vst [vmem:[#allocation2 + $0x608] sm:$0xff] %v1210_v57  ;;  %v201_v57 = vld [vmem:[%s5656_s0 + $0x600] sm:$0xff] }
 0x2b1   :  { %v1242_v56 = vpop.trf.xlu1 }
 0x2b2   :  { %1295 = vxpose.xlu0.b32.cont [7/16] %v174_v36, 128  ;;  %2618 = vst [vmem:[#allocation2 + $0x688] sm:$0xff] %v1242_v56  ;;  %v350_v36 = vld [vmem:[%s5656_s0 + $0xaa8] sm:$0xff]  ;;  %v1273_v37 = vpop.trf.xlu2  ;;  %v127_v56 = vld [vmem:[%s5656_s0 + $0x3b0] sm:$0xff] }
 0x2b3   :  { %2633 = vst [vmem:[#allocation2 + $0x700] sm:$0xff] %v1273_v37  ;;  %1357 = vxpose.xlu2.b32.cont [5/16] %v126_v39, 128 }
 0x2b5   :  { %1327 = vxpose.xlu1.b32.cont [7/16] %v175_v58, 128 }
 0x2b6   :  { %v1211_v63 = vpop.trf.xlu0 }
 0x2b7   :  { %2603 = vst [vmem:[#allocation2 + $0x610] sm:$0xff] %v1211_v63  ;;  %v226_v63 = vld [vmem:[%s5656_s0 + $0x6c8] sm:$0xff] }
 0x2b9   :  { %v1243_v62 = vpop.trf.xlu1 }
 0x2ba   :  { %1296 = vxpose.xlu0.b32.cont [8/16] %v199_v42, 128  ;;  %2619 = vst [vmem:[#allocation2 + $0x690] sm:$0xff] %v1243_v62  ;;  %v375_v42 = vld [vmem:[%s5656_s0 + $0xb70] sm:$0xff]  ;;  %v1274_v43 = vpop.trf.xlu2  ;;  %v152_v62 = vld [vmem:[%s5656_s0 + $0x478] sm:$0xff] }
 0x2bb   :  { %2634 = vst [vmem:[#allocation2 + $0x708] sm:$0xff] %v1274_v43  ;;  %1358 = vxpose.xlu2.b32.cont [6/16] %v151_v45, 128 }
 0x2bd   :  { %1328 = vxpose.xlu1.b32.cont [8/16] %v200_v0, 128 }
 0x2be   :  { %v1212_v5 = vpop.trf.xlu0 }
 0x2bf   :  { %2604 = vst [vmem:[#allocation2 + $0x618] sm:$0xff] %v1212_v5  ;;  %v251_v5 = vld [vmem:[%s5656_s0 + $0x790] sm:$0xff] }
 0x2c1   :  { %v1244_v4 = vpop.trf.xlu1 }
 0x2c2   :  { %1297 = vxpose.xlu0.b32.cont [9/16] %v224_v48, 128  ;;  %2620 = vst [vmem:[#allocation2 + $0x698] sm:$0xff] %v1244_v4  ;;  %v400_v48 = vld [vmem:[%s5656_s0 + $0xc38] sm:$0xff]  ;;  %v1275_v49 = vpop.trf.xlu2  ;;  %v177_v4 = vld [vmem:[%s5656_s0 + $0x540] sm:$0xff] }
 0x2c3   :  { %2635 = vst [vmem:[#allocation2 + $0x710] sm:$0xff] %v1275_v49  ;;  %1359 = vxpose.xlu2.b32.cont [7/16] %v176_v51, 128 }
 0x2c5   :  { %1329 = vxpose.xlu1.b32.cont [9/16] %v225_v6, 128 }
 0x2c6   :  { %v1213_v11 = vpop.trf.xlu0 }
 0x2c7   :  { %2605 = vst [vmem:[#allocation2 + $0x620] sm:$0xff] %v1213_v11  ;;  %v276_v11 = vld [vmem:[%s5656_s0 + $0x858] sm:$0xff] }
 0x2c9   :  { %v1245_v10 = vpop.trf.xlu1 }
 0x2ca   :  { %1298 = vxpose.xlu0.b32.cont [10/16] %v249_v54, 128  ;;  %2621 = vst [vmem:[#allocation2 + $0x6a0] sm:$0xff] %v1245_v10  ;;  %v28_v54 = vld [vmem:[%s5656_s0 + $0x98] sm:$0xff]  ;;  %v1276_v55 = vpop.trf.xlu2  ;;  %v202_v10 = vld [vmem:[%s5656_s0 + $0x608] sm:$0xff] }
 0x2cb   :  { %2636 = vst [vmem:[#allocation2 + $0x718] sm:$0xff] %v1276_v55  ;;  %1360 = vxpose.xlu2.b32.cont [8/16] %v201_v57, 128 }
 0x2cd   :  { %1330 = vxpose.xlu1.b32.cont [10/16] %v250_v12, 128 }
 0x2ce   :  { %v1214_v17 = vpop.trf.xlu0 }
 0x2cf   :  { %2606 = vst [vmem:[#allocation2 + $0x628] sm:$0xff] %v1214_v17  ;;  %v301_v17 = vld [vmem:[%s5656_s0 + $0x920] sm:$0xff] }
 0x2d1   :  { %v1246_v16 = vpop.trf.xlu1 }
 0x2d2   :  { %1299 = vxpose.xlu0.b32.cont [11/16] %v274_v60, 128  ;;  %2622 = vst [vmem:[#allocation2 + $0x6a8] sm:$0xff] %v1246_v16  ;;  %v53_v60 = vld [vmem:[%s5656_s0 + $0x160] sm:$0xff]  ;;  %v1277_v61 = vpop.trf.xlu2  ;;  %v227_v16 = vld [vmem:[%s5656_s0 + $0x6d0] sm:$0xff] }
 0x2d3   :  { %2637 = vst [vmem:[#allocation2 + $0x720] sm:$0xff] %v1277_v61  ;;  %1361 = vxpose.xlu2.b32.cont [9/16] %v226_v63, 128 }
 0x2d5   :  { %1331 = vxpose.xlu1.b32.cont [11/16] %v275_v18, 128 }
 0x2d6   :  { %v1215_v23 = vpop.trf.xlu0 }
 0x2d7   :  { %2607 = vst [vmem:[#allocation2 + $0x630] sm:$0xff] %v1215_v23  ;;  %v326_v23 = vld [vmem:[%s5656_s0 + $0x9e8] sm:$0xff] }
 0x2d9   :  { %v1247_v22 = vpop.trf.xlu1 }
 0x2da   :  { %1300 = vxpose.xlu0.b32.cont [12/16] %v299_v2, 128  ;;  %2623 = vst [vmem:[#allocation2 + $0x6b0] sm:$0xff] %v1247_v22  ;;  %v78_v2 = vld [vmem:[%s5656_s0 + $0x228] sm:$0xff]  ;;  %v1278_v3 = vpop.trf.xlu2  ;;  %v252_v22 = vld [vmem:[%s5656_s0 + $0x798] sm:$0xff] }
 0x2db   :  { %2638 = vst [vmem:[#allocation2 + $0x728] sm:$0xff] %v1278_v3  ;;  %1362 = vxpose.xlu2.b32.cont [10/16] %v251_v5, 128 }
 0x2dd   :  { %1332 = vxpose.xlu1.b32.cont [12/16] %v300_v24, 128 }
 0x2de   :  { %v1216_v29 = vpop.trf.xlu0 }
 0x2df   :  { %2608 = vst [vmem:[#allocation2 + $0x638] sm:$0xff] %v1216_v29  ;;  %v351_v29 = vld [vmem:[%s5656_s0 + $0xab0] sm:$0xff] }
 0x2e1   :  { %v1248_v28 = vpop.trf.xlu1 }
 0x2e2   :  { %1301 = vxpose.xlu0.b32.cont [13/16] %v324_v8, 128  ;;  %2624 = vst [vmem:[#allocation2 + $0x6b8] sm:$0xff] %v1248_v28  ;;  %v103_v8 = vld [vmem:[%s5656_s0 + $0x2f0] sm:$0xff]  ;;  %v1279_v9 = vpop.trf.xlu2  ;;  %v277_v28 = vld [vmem:[%s5656_s0 + $0x860] sm:$0xff] }
 0x2e3   :  { %2639 = vst [vmem:[#allocation2 + $0x730] sm:$0xff] %v1279_v9  ;;  %1363 = vxpose.xlu2.b32.cont [11/16] %v276_v11, 128 }
 0x2e5   :  { %1333 = vxpose.xlu1.b32.cont [13/16] %v325_v30, 128 }
 0x2e6   :  { %v1217_v35 = vpop.trf.xlu0 }
 0x2e7   :  { %2609 = vst [vmem:[#allocation2 + $0x640] sm:$0xff] %v1217_v35  ;;  %v376_v35 = vld [vmem:[%s5656_s0 + $0xb78] sm:$0xff] }
 0x2e9   :  { %v1249_v34 = vpop.trf.xlu1 }
 0x2ea   :  { %1302 = vxpose.xlu0.b32.cont [14/16] %v349_v14, 128  ;;  %2625 = vst [vmem:[#allocation2 + $0x6c0] sm:$0xff] %v1249_v34  ;;  %v128_v14 = vld [vmem:[%s5656_s0 + $0x3b8] sm:$0xff]  ;;  %v1280_v15 = vpop.trf.xlu2  ;;  %v302_v34 = vld [vmem:[%s5656_s0 + $0x928] sm:$0xff] }
 0x2eb   :  { %2640 = vst [vmem:[#allocation2 + $0x738] sm:$0xff] %v1280_v15  ;;  %1364 = vxpose.xlu2.b32.cont [12/16] %v301_v17, 128 }
 0x2ed   :  { %1334 = vxpose.xlu1.b32.cont [14/16] %v350_v36, 128 }
 0x2ee   :  { %v1218_v41 = vpop.trf.xlu0 }
 0x2ef   :  { %2610 = vst [vmem:[#allocation2 + $0x648] sm:$0xff] %v1218_v41  ;;  %v401_v41 = vld [vmem:[%s5656_s0 + $0xc40] sm:$0xff] }
 0x2f1   :  { %v1250_v40 = vpop.trf.xlu1 }
 0x2f2   :  { %1303 = vxpose.xlu0.b32.cont [15/16] %v374_v20, 128  ;;  %2626 = vst [vmem:[#allocation2 + $0x6c8] sm:$0xff] %v1250_v40  ;;  %v153_v20 = vld [vmem:[%s5656_s0 + $0x480] sm:$0xff]  ;;  %v1281_v21 = vpop.trf.xlu2  ;;  %v327_v40 = vld [vmem:[%s5656_s0 + $0x9f0] sm:$0xff] }
 0x2f3   :  { %2641 = vst [vmem:[#allocation2 + $0x740] sm:$0xff] %v1281_v21  ;;  %1365 = vxpose.xlu2.b32.cont [13/16] %v326_v23, 128 }
 0x2f5   :  { %1335 = vxpose.xlu1.b32.cont [15/16] %v375_v42, 128 }
 0x2f6   :  { %v1219_v47 = vpop.trf.xlu0 }
 0x2f7   :  { %2611 = vst [vmem:[#allocation2 + $0x650] sm:$0xff] %v1219_v47  ;;  %v29_v47 = vld [vmem:[%s5656_s0 + $0xa0] sm:$0xff] }
 0x2f9   :  { %v1251_v46 = vpop.trf.xlu1 }
 0x2fa   :  { %1304 = vxpose.xlu0.b32.end [16/16] %v399_v26, 128  ;;  %2627 = vst [vmem:[#allocation2 + $0x6d0] sm:$0xff] %v1251_v46  ;;  %v178_v26 = vld [vmem:[%s5656_s0 + $0x548] sm:$0xff]  ;;  %v1282_v27 = vpop.trf.xlu2  ;;  %v352_v46 = vld [vmem:[%s5656_s0 + $0xab8] sm:$0xff] }
 0x2fb   :  { %2642 = vst [vmem:[#allocation2 + $0x748] sm:$0xff] %v1282_v27  ;;  %1366 = vxpose.xlu2.b32.cont [14/16] %v351_v29, 128 }
 0x2fd   :  { %1336 = vxpose.xlu1.b32.end [16/16] %v400_v48, 128 }
 0x2fe   :  { %v1220_v53 = vpop.trf.xlu0 }
 0x2ff   :  { %2612 = vst [vmem:[#allocation2 + $0x658] sm:$0xff] %v1220_v53  ;;  %v54_v53 = vld [vmem:[%s5656_s0 + $0x168] sm:$0xff] }
 0x301   :  { %v1252_v52 = vpop.trf.xlu1 }
 0x302   :  { %1385 = vxpose.xlu0.b32.start [1/16] %v27_v32, 128  ;;  %2628 = vst [vmem:[#allocation2 + $0x6d8] sm:$0xff] %v1252_v52  ;;  %v203_v32 = vld [vmem:[%s5656_s0 + $0x610] sm:$0xff]  ;;  %v1283_v33 = vpop.trf.xlu2  ;;  %v377_v52 = vld [vmem:[%s5656_s0 + $0xb80] sm:$0xff] }
 0x303   :  { %2643 = vst [vmem:[#allocation2 + $0x750] sm:$0xff] %v1283_v33  ;;  %1367 = vxpose.xlu2.b32.cont [15/16] %v376_v35, 128 }
 0x305   :  { %1417 = vxpose.xlu1.b32.start [1/16] %v28_v54, 128 }
 0x306   :  { %v1221_v59 = vpop.trf.xlu0 }
 0x307   :  { %2613 = vst [vmem:[#allocation2 + $0x660] sm:$0xff] %v1221_v59  ;;  %v79_v59 = vld [vmem:[%s5656_s0 + $0x230] sm:$0xff] }
 0x309   :  { %v1253_v58 = vpop.trf.xlu1 }
 0x30a   :  { %1386 = vxpose.xlu0.b32.cont [2/16] %v52_v38, 128  ;;  %2629 = vst [vmem:[#allocation2 + $0x6e0] sm:$0xff] %v1253_v58  ;;  %v228_v38 = vld [vmem:[%s5656_s0 + $0x6d8] sm:$0xff]  ;;  %v1284_v39 = vpop.trf.xlu2  ;;  %v402_v58 = vld [vmem:[%s5656_s0 + $0xc48] sm:$0xff] }
 0x30b   :  { %2644 = vst [vmem:[#allocation2 + $0x758] sm:$0xff] %v1284_v39  ;;  %1368 = vxpose.xlu2.b32.end [16/16] %v401_v41, 128 }
 0x30d   :  { %1418 = vxpose.xlu1.b32.cont [2/16] %v53_v60, 128 }
 0x30e   :  { %v1222_v1 = vpop.trf.xlu0 }
 0x30f   :  { %2614 = vst [vmem:[#allocation2 + $0x668] sm:$0xff] %v1222_v1  ;;  %v104_v1 = vld [vmem:[%s5656_s0 + $0x2f8] sm:$0xff] }
 0x311   :  { %v1254_v0 = vpop.trf.xlu1 }
 0x312   :  { %1387 = vxpose.xlu0.b32.cont [3/16] %v77_v44, 128  ;;  %2630 = vst [vmem:[#allocation2 + $0x6e8] sm:$0xff] %v1254_v0  ;;  %v253_v44 = vld [vmem:[%s5656_s0 + $0x7a0] sm:$0xff]  ;;  %v1285_v45 = vpop.trf.xlu2  ;;  %v30_v0 = vld [vmem:[%s5656_s0 + $0xa8] sm:$0xff] }
 0x313   :  { %2645 = vst [vmem:[#allocation2 + $0x760] sm:$0xff] %v1285_v45  ;;  %1449 = vxpose.xlu2.b32.start [1/16] %v29_v47, 128 }
 0x315   :  { %1419 = vxpose.xlu1.b32.cont [3/16] %v78_v2, 128 }
 0x316   :  { %v1223_v7 = vpop.trf.xlu0 }
 0x317   :  { %2615 = vst [vmem:[#allocation2 + $0x670] sm:$0xff] %v1223_v7  ;;  %v129_v7 = vld [vmem:[%s5656_s0 + $0x3c0] sm:$0xff] }
 0x319   :  { %v1255_v6 = vpop.trf.xlu1 }
 0x31a   :  { %1388 = vxpose.xlu0.b32.cont [4/16] %v102_v50, 128  ;;  %2631 = vst [vmem:[#allocation2 + $0x6f0] sm:$0xff] %v1255_v6  ;;  %v278_v50 = vld [vmem:[%s5656_s0 + $0x868] sm:$0xff]  ;;  %v1286_v51 = vpop.trf.xlu2  ;;  %v55_v6 = vld [vmem:[%s5656_s0 + $0x170] sm:$0xff] }
 0x31b   :  { %2646 = vst [vmem:[#allocation2 + $0x768] sm:$0xff] %v1286_v51  ;;  %1450 = vxpose.xlu2.b32.cont [2/16] %v54_v53, 128 }
 0x31d   :  { %1420 = vxpose.xlu1.b32.cont [4/16] %v103_v8, 128 }
 0x31e   :  { %v1224_v13 = vpop.trf.xlu0 }
 0x31f   :  { %2616 = vst [vmem:[#allocation2 + $0x678] sm:$0xff] %v1224_v13  ;;  %v154_v13 = vld [vmem:[%s5656_s0 + $0x488] sm:$0xff] }
 0x321   :  { %v1256_v12 = vpop.trf.xlu1 }
 0x322   :  { %1389 = vxpose.xlu0.b32.cont [5/16] %v127_v56, 128  ;;  %2632 = vst [vmem:[#allocation2 + $0x6f8] sm:$0xff] %v1256_v12  ;;  %v303_v56 = vld [vmem:[%s5656_s0 + $0x930] sm:$0xff]  ;;  %v1287_v57 = vpop.trf.xlu2  ;;  %v80_v12 = vld [vmem:[%s5656_s0 + $0x238] sm:$0xff] }
 0x323   :  { %2647 = vst [vmem:[#allocation2 + $0x770] sm:$0xff] %v1287_v57  ;;  %1451 = vxpose.xlu2.b32.cont [3/16] %v79_v59, 128 }
 0x325   :  { %1421 = vxpose.xlu1.b32.cont [5/16] %v128_v14, 128 }
 0x326   :  { %v1305_v19 = vpop.trf.xlu0 }
 0x327   :  { %2649 = vst [vmem:[#allocation2 + $0x780] sm:$0xff] %v1305_v19  ;;  %v179_v19 = vld [vmem:[%s5656_s0 + $0x550] sm:$0xff] }
 0x329   :  { %v1337_v18 = vpop.trf.xlu1 }
 0x32a   :  { %1390 = vxpose.xlu0.b32.cont [6/16] %v152_v62, 128  ;;  %2665 = vst [vmem:[#allocation2 + $0x800] sm:$0xff] %v1337_v18  ;;  %v328_v62 = vld [vmem:[%s5656_s0 + $0x9f8] sm:$0xff]  ;;  %v1288_v63 = vpop.trf.xlu2  ;;  %v105_v18 = vld [vmem:[%s5656_s0 + $0x300] sm:$0xff] }
 0x32b   :  { %2648 = vst [vmem:[#allocation2 + $0x778] sm:$0xff] %v1288_v63  ;;  %1452 = vxpose.xlu2.b32.cont [4/16] %v104_v1, 128 }
 0x32d   :  { %1422 = vxpose.xlu1.b32.cont [6/16] %v153_v20, 128 }
 0x32e   :  { %v1306_v25 = vpop.trf.xlu0 }
 0x32f   :  { %2650 = vst [vmem:[#allocation2 + $0x788] sm:$0xff] %v1306_v25  ;;  %v204_v25 = vld [vmem:[%s5656_s0 + $0x618] sm:$0xff] }
 0x331   :  { %v1338_v24 = vpop.trf.xlu1 }
 0x332   :  { %1391 = vxpose.xlu0.b32.cont [7/16] %v177_v4, 128  ;;  %2666 = vst [vmem:[#allocation2 + $0x808] sm:$0xff] %v1338_v24  ;;  %v353_v4 = vld [vmem:[%s5656_s0 + $0xac0] sm:$0xff]  ;;  %v1369_v5 = vpop.trf.xlu2  ;;  %v130_v24 = vld [vmem:[%s5656_s0 + $0x3c8] sm:$0xff] }
 0x333   :  { %2681 = vst [vmem:[#allocation2 + $0x880] sm:$0xff] %v1369_v5  ;;  %1453 = vxpose.xlu2.b32.cont [5/16] %v129_v7, 128 }
 0x335   :  { %1423 = vxpose.xlu1.b32.cont [7/16] %v178_v26, 128 }
 0x336   :  { %v1307_v31 = vpop.trf.xlu0 }
 0x337   :  { %2651 = vst [vmem:[#allocation2 + $0x790] sm:$0xff] %v1307_v31  ;;  %v229_v31 = vld [vmem:[%s5656_s0 + $0x6e0] sm:$0xff] }
 0x339   :  { %v1339_v30 = vpop.trf.xlu1 }
 0x33a   :  { %1392 = vxpose.xlu0.b32.cont [8/16] %v202_v10, 128  ;;  %2667 = vst [vmem:[#allocation2 + $0x810] sm:$0xff] %v1339_v30  ;;  %v378_v10 = vld [vmem:[%s5656_s0 + $0xb88] sm:$0xff]  ;;  %v1370_v11 = vpop.trf.xlu2  ;;  %v155_v30 = vld [vmem:[%s5656_s0 + $0x490] sm:$0xff] }
 0x33b   :  { %2682 = vst [vmem:[#allocation2 + $0x888] sm:$0xff] %v1370_v11  ;;  %1454 = vxpose.xlu2.b32.cont [6/16] %v154_v13, 128 }
 0x33d   :  { %1424 = vxpose.xlu1.b32.cont [8/16] %v203_v32, 128 }
 0x33e   :  { %v1308_v37 = vpop.trf.xlu0 }
 0x33f   :  { %2652 = vst [vmem:[#allocation2 + $0x798] sm:$0xff] %v1308_v37  ;;  %v254_v37 = vld [vmem:[%s5656_s0 + $0x7a8] sm:$0xff] }
 0x341   :  { %v1340_v36 = vpop.trf.xlu1 }
 0x342   :  { %1393 = vxpose.xlu0.b32.cont [9/16] %v227_v16, 128  ;;  %2668 = vst [vmem:[#allocation2 + $0x818] sm:$0xff] %v1340_v36  ;;  %v403_v16 = vld [vmem:[%s5656_s0 + $0xc50] sm:$0xff]  ;;  %v1371_v17 = vpop.trf.xlu2  ;;  %v180_v36 = vld [vmem:[%s5656_s0 + $0x558] sm:$0xff] }
 0x343   :  { %2683 = vst [vmem:[#allocation2 + $0x890] sm:$0xff] %v1371_v17  ;;  %1455 = vxpose.xlu2.b32.cont [7/16] %v179_v19, 128 }
 0x345   :  { %1425 = vxpose.xlu1.b32.cont [9/16] %v228_v38, 128 }
 0x346   :  { %v1309_v43 = vpop.trf.xlu0 }
 0x347   :  { %2653 = vst [vmem:[#allocation2 + $0x7a0] sm:$0xff] %v1309_v43  ;;  %v279_v43 = vld [vmem:[%s5656_s0 + $0x870] sm:$0xff] }
 0x349   :  { %v1341_v42 = vpop.trf.xlu1 }
 0x34a   :  { %1394 = vxpose.xlu0.b32.cont [10/16] %v252_v22, 128  ;;  %2669 = vst [vmem:[#allocation2 + $0x820] sm:$0xff] %v1341_v42  ;;  %v31_v22 = vld [vmem:[%s5656_s0 + $0xb0] sm:$0xff]  ;;  %v1372_v23 = vpop.trf.xlu2  ;;  %v205_v42 = vld [vmem:[%s5656_s0 + $0x620] sm:$0xff] }
 0x34b   :  { %2684 = vst [vmem:[#allocation2 + $0x898] sm:$0xff] %v1372_v23  ;;  %1456 = vxpose.xlu2.b32.cont [8/16] %v204_v25, 128 }
 0x34d   :  { %1426 = vxpose.xlu1.b32.cont [10/16] %v253_v44, 128 }
 0x34e   :  { %v1310_v49 = vpop.trf.xlu0 }
 0x34f   :  { %2654 = vst [vmem:[#allocation2 + $0x7a8] sm:$0xff] %v1310_v49  ;;  %v304_v49 = vld [vmem:[%s5656_s0 + $0x938] sm:$0xff] }
 0x351   :  { %v1342_v48 = vpop.trf.xlu1 }
 0x352   :  { %1395 = vxpose.xlu0.b32.cont [11/16] %v277_v28, 128  ;;  %2670 = vst [vmem:[#allocation2 + $0x828] sm:$0xff] %v1342_v48  ;;  %v56_v28 = vld [vmem:[%s5656_s0 + $0x178] sm:$0xff]  ;;  %v1373_v29 = vpop.trf.xlu2  ;;  %v230_v48 = vld [vmem:[%s5656_s0 + $0x6e8] sm:$0xff] }
 0x353   :  { %2685 = vst [vmem:[#allocation2 + $0x8a0] sm:$0xff] %v1373_v29  ;;  %1457 = vxpose.xlu2.b32.cont [9/16] %v229_v31, 128 }
 0x355   :  { %1427 = vxpose.xlu1.b32.cont [11/16] %v278_v50, 128 }
 0x356   :  { %v1311_v55 = vpop.trf.xlu0 }
 0x357   :  { %2655 = vst [vmem:[#allocation2 + $0x7b0] sm:$0xff] %v1311_v55  ;;  %v329_v55 = vld [vmem:[%s5656_s0 + $0xa00] sm:$0xff] }
 0x359   :  { %v1343_v54 = vpop.trf.xlu1 }
 0x35a   :  { %1396 = vxpose.xlu0.b32.cont [12/16] %v302_v34, 128  ;;  %2671 = vst [vmem:[#allocation2 + $0x830] sm:$0xff] %v1343_v54  ;;  %v81_v34 = vld [vmem:[%s5656_s0 + $0x240] sm:$0xff]  ;;  %v1374_v35 = vpop.trf.xlu2  ;;  %v255_v54 = vld [vmem:[%s5656_s0 + $0x7b0] sm:$0xff] }
 0x35b   :  { %2686 = vst [vmem:[#allocation2 + $0x8a8] sm:$0xff] %v1374_v35  ;;  %1458 = vxpose.xlu2.b32.cont [10/16] %v254_v37, 128 }
 0x35d   :  { %1428 = vxpose.xlu1.b32.cont [12/16] %v303_v56, 128 }
 0x35e   :  { %v1312_v61 = vpop.trf.xlu0 }
 0x35f   :  { %2656 = vst [vmem:[#allocation2 + $0x7b8] sm:$0xff] %v1312_v61  ;;  %v354_v61 = vld [vmem:[%s5656_s0 + $0xac8] sm:$0xff] }
 0x361   :  { %v1344_v60 = vpop.trf.xlu1 }
 0x362   :  { %1397 = vxpose.xlu0.b32.cont [13/16] %v327_v40, 128  ;;  %2672 = vst [vmem:[#allocation2 + $0x838] sm:$0xff] %v1344_v60  ;;  %v106_v40 = vld [vmem:[%s5656_s0 + $0x308] sm:$0xff]  ;;  %v1375_v41 = vpop.trf.xlu2  ;;  %v280_v60 = vld [vmem:[%s5656_s0 + $0x878] sm:$0xff] }
 0x363   :  { %2687 = vst [vmem:[#allocation2 + $0x8b0] sm:$0xff] %v1375_v41  ;;  %1459 = vxpose.xlu2.b32.cont [11/16] %v279_v43, 128 }
 0x365   :  { %1429 = vxpose.xlu1.b32.cont [13/16] %v328_v62, 128 }
 0x366   :  { %v1313_v3 = vpop.trf.xlu0 }
 0x367   :  { %2657 = vst [vmem:[#allocation2 + $0x7c0] sm:$0xff] %v1313_v3  ;;  %v379_v3 = vld [vmem:[%s5656_s0 + $0xb90] sm:$0xff] }
 0x369   :  { %v1345_v2 = vpop.trf.xlu1 }
 0x36a   :  { %1398 = vxpose.xlu0.b32.cont [14/16] %v352_v46, 128  ;;  %2673 = vst [vmem:[#allocation2 + $0x840] sm:$0xff] %v1345_v2  ;;  %v131_v46 = vld [vmem:[%s5656_s0 + $0x3d0] sm:$0xff]  ;;  %v1376_v47 = vpop.trf.xlu2  ;;  %v305_v2 = vld [vmem:[%s5656_s0 + $0x940] sm:$0xff] }
 0x36b   :  { %2688 = vst [vmem:[#allocation2 + $0x8b8] sm:$0xff] %v1376_v47  ;;  %1460 = vxpose.xlu2.b32.cont [12/16] %v304_v49, 128 }
 0x36d   :  { %1430 = vxpose.xlu1.b32.cont [14/16] %v353_v4, 128 }
 0x36e   :  { %v1314_v9 = vpop.trf.xlu0 }
 0x36f   :  { %2658 = vst [vmem:[#allocation2 + $0x7c8] sm:$0xff] %v1314_v9  ;;  %v404_v9 = vld [vmem:[%s5656_s0 + $0xc58] sm:$0xff] }
 0x371   :  { %v1346_v8 = vpop.trf.xlu1 }
 0x372   :  { %1399 = vxpose.xlu0.b32.cont [15/16] %v377_v52, 128  ;;  %2674 = vst [vmem:[#allocation2 + $0x848] sm:$0xff] %v1346_v8  ;;  %v156_v52 = vld [vmem:[%s5656_s0 + $0x498] sm:$0xff]  ;;  %v1377_v53 = vpop.trf.xlu2  ;;  %v330_v8 = vld [vmem:[%s5656_s0 + $0xa08] sm:$0xff] }
 0x373   :  { %2689 = vst [vmem:[#allocation2 + $0x8c0] sm:$0xff] %v1377_v53  ;;  %1461 = vxpose.xlu2.b32.cont [13/16] %v329_v55, 128 }
 0x375   :  { %1431 = vxpose.xlu1.b32.cont [15/16] %v378_v10, 128 }
 0x376   :  { %v1315_v15 = vpop.trf.xlu0 }
 0x377   :  { %2659 = vst [vmem:[#allocation2 + $0x7d0] sm:$0xff] %v1315_v15  ;;  %v32_v15 = vld [vmem:[%s5656_s0 + $0xb8] sm:$0xff] }
 0x379   :  { %v1347_v14 = vpop.trf.xlu1 }
 0x37a   :  { %1400 = vxpose.xlu0.b32.end [16/16] %v402_v58, 128  ;;  %2675 = vst [vmem:[#allocation2 + $0x850] sm:$0xff] %v1347_v14  ;;  %v181_v58 = vld [vmem:[%s5656_s0 + $0x560] sm:$0xff]  ;;  %v1378_v59 = vpop.trf.xlu2  ;;  %v355_v14 = vld [vmem:[%s5656_s0 + $0xad0] sm:$0xff] }
 0x37b   :  { %2690 = vst [vmem:[#allocation2 + $0x8c8] sm:$0xff] %v1378_v59  ;;  %1462 = vxpose.xlu2.b32.cont [14/16] %v354_v61, 128 }
 0x37d   :  { %1432 = vxpose.xlu1.b32.end [16/16] %v403_v16, 128 }
 0x37e   :  { %v1316_v21 = vpop.trf.xlu0 }
 0x37f   :  { %2660 = vst [vmem:[#allocation2 + $0x7d8] sm:$0xff] %v1316_v21  ;;  %v57_v21 = vld [vmem:[%s5656_s0 + $0x180] sm:$0xff] }
 0x381   :  { %v1348_v20 = vpop.trf.xlu1 }
 0x382   :  { %1481 = vxpose.xlu0.b32.start [1/16] %v30_v0, 128  ;;  %2676 = vst [vmem:[#allocation2 + $0x858] sm:$0xff] %v1348_v20  ;;  %v206_v0 = vld [vmem:[%s5656_s0 + $0x628] sm:$0xff]  ;;  %v1379_v1 = vpop.trf.xlu2  ;;  %v380_v20 = vld [vmem:[%s5656_s0 + $0xb98] sm:$0xff] }
 0x383   :  { %2691 = vst [vmem:[#allocation2 + $0x8d0] sm:$0xff] %v1379_v1  ;;  %1463 = vxpose.xlu2.b32.cont [15/16] %v379_v3, 128 }
 0x385   :  { %1513 = vxpose.xlu1.b32.start [1/16] %v31_v22, 128 }
 0x386   :  { %v1317_v27 = vpop.trf.xlu0 }
 0x387   :  { %2661 = vst [vmem:[#allocation2 + $0x7e0] sm:$0xff] %v1317_v27  ;;  %v82_v27 = vld [vmem:[%s5656_s0 + $0x248] sm:$0xff] }
 0x389   :  { %v1349_v26 = vpop.trf.xlu1 }
 0x38a   :  { %1482 = vxpose.xlu0.b32.cont [2/16] %v55_v6, 128  ;;  %2677 = vst [vmem:[#allocation2 + $0x860] sm:$0xff] %v1349_v26  ;;  %v231_v6 = vld [vmem:[%s5656_s0 + $0x6f0] sm:$0xff]  ;;  %v1380_v7 = vpop.trf.xlu2  ;;  %v405_v26 = vld [vmem:[%s5656_s0 + $0xc60] sm:$0xff] }
 0x38b   :  { %2692 = vst [vmem:[#allocation2 + $0x8d8] sm:$0xff] %v1380_v7  ;;  %1464 = vxpose.xlu2.b32.end [16/16] %v404_v9, 128 }
 0x38d   :  { %1514 = vxpose.xlu1.b32.cont [2/16] %v56_v28, 128 }
 0x38e   :  { %v1318_v33 = vpop.trf.xlu0 }
 0x38f   :  { %2662 = vst [vmem:[#allocation2 + $0x7e8] sm:$0xff] %v1318_v33  ;;  %v107_v33 = vld [vmem:[%s5656_s0 + $0x310] sm:$0xff] }
 0x391   :  { %v1350_v32 = vpop.trf.xlu1 }
 0x392   :  { %1483 = vxpose.xlu0.b32.cont [3/16] %v80_v12, 128  ;;  %2678 = vst [vmem:[#allocation2 + $0x868] sm:$0xff] %v1350_v32  ;;  %v256_v12 = vld [vmem:[%s5656_s0 + $0x7b8] sm:$0xff]  ;;  %v1381_v13 = vpop.trf.xlu2  ;;  %v33_v32 = vld [vmem:[%s5656_s0 + $0xc0] sm:$0xff] }
 0x393   :  { %2693 = vst [vmem:[#allocation2 + $0x8e0] sm:$0xff] %v1381_v13  ;;  %1545 = vxpose.xlu2.b32.start [1/16] %v32_v15, 128 }
 0x395   :  { %1515 = vxpose.xlu1.b32.cont [3/16] %v81_v34, 128 }
 0x396   :  { %v1319_v39 = vpop.trf.xlu0 }
 0x397   :  { %2663 = vst [vmem:[#allocation2 + $0x7f0] sm:$0xff] %v1319_v39  ;;  %v132_v39 = vld [vmem:[%s5656_s0 + $0x3d8] sm:$0xff] }
 0x399   :  { %v1351_v38 = vpop.trf.xlu1 }
 0x39a   :  { %1484 = vxpose.xlu0.b32.cont [4/16] %v105_v18, 128  ;;  %2679 = vst [vmem:[#allocation2 + $0x870] sm:$0xff] %v1351_v38  ;;  %v281_v18 = vld [vmem:[%s5656_s0 + $0x880] sm:$0xff]  ;;  %v1382_v19 = vpop.trf.xlu2  ;;  %v58_v38 = vld [vmem:[%s5656_s0 + $0x188] sm:$0xff] }
 0x39b   :  { %2694 = vst [vmem:[#allocation2 + $0x8e8] sm:$0xff] %v1382_v19  ;;  %1546 = vxpose.xlu2.b32.cont [2/16] %v57_v21, 128 }
 0x39d   :  { %1516 = vxpose.xlu1.b32.cont [4/16] %v106_v40, 128 }
 0x39e   :  { %v1320_v45 = vpop.trf.xlu0 }
 0x39f   :  { %2664 = vst [vmem:[#allocation2 + $0x7f8] sm:$0xff] %v1320_v45  ;;  %v157_v45 = vld [vmem:[%s5656_s0 + $0x4a0] sm:$0xff] }
 0x3a1   :  { %v1352_v44 = vpop.trf.xlu1 }
 0x3a2   :  { %1485 = vxpose.xlu0.b32.cont [5/16] %v130_v24, 128  ;;  %2680 = vst [vmem:[#allocation2 + $0x878] sm:$0xff] %v1352_v44  ;;  %v306_v24 = vld [vmem:[%s5656_s0 + $0x948] sm:$0xff]  ;;  %v1383_v25 = vpop.trf.xlu2  ;;  %v83_v44 = vld [vmem:[%s5656_s0 + $0x250] sm:$0xff] }
 0x3a3   :  { %2695 = vst [vmem:[#allocation2 + $0x8f0] sm:$0xff] %v1383_v25  ;;  %1547 = vxpose.xlu2.b32.cont [3/16] %v82_v27, 128 }
 0x3a5   :  { %1517 = vxpose.xlu1.b32.cont [5/16] %v131_v46, 128 }
 0x3a6   :  { %v1401_v51 = vpop.trf.xlu0 }
 0x3a7   :  { %2697 = vst [vmem:[#allocation2 + $0x900] sm:$0xff] %v1401_v51  ;;  %v182_v51 = vld [vmem:[%s5656_s0 + $0x568] sm:$0xff] }
 0x3a9   :  { %v1433_v50 = vpop.trf.xlu1 }
 0x3aa   :  { %1486 = vxpose.xlu0.b32.cont [6/16] %v155_v30, 128  ;;  %2713 = vst [vmem:[#allocation2 + $0x980] sm:$0xff] %v1433_v50  ;;  %v331_v30 = vld [vmem:[%s5656_s0 + $0xa10] sm:$0xff]  ;;  %v1384_v31 = vpop.trf.xlu2  ;;  %v108_v50 = vld [vmem:[%s5656_s0 + $0x318] sm:$0xff] }
 0x3ab   :  { %2696 = vst [vmem:[#allocation2 + $0x8f8] sm:$0xff] %v1384_v31  ;;  %1548 = vxpose.xlu2.b32.cont [4/16] %v107_v33, 128 }
 0x3ad   :  { %1518 = vxpose.xlu1.b32.cont [6/16] %v156_v52, 128 }
 0x3ae   :  { %v1402_v57 = vpop.trf.xlu0 }
 0x3af   :  { %2698 = vst [vmem:[#allocation2 + $0x908] sm:$0xff] %v1402_v57  ;;  %v207_v57 = vld [vmem:[%s5656_s0 + $0x630] sm:$0xff] }
 0x3b1   :  { %v1434_v56 = vpop.trf.xlu1 }
 0x3b2   :  { %1487 = vxpose.xlu0.b32.cont [7/16] %v180_v36, 128  ;;  %2714 = vst [vmem:[#allocation2 + $0x988] sm:$0xff] %v1434_v56  ;;  %v356_v36 = vld [vmem:[%s5656_s0 + $0xad8] sm:$0xff]  ;;  %v1465_v37 = vpop.trf.xlu2  ;;  %v133_v56 = vld [vmem:[%s5656_s0 + $0x3e0] sm:$0xff] }
 0x3b3   :  { %2729 = vst [vmem:[#allocation2 + $0xa00] sm:$0xff] %v1465_v37  ;;  %1549 = vxpose.xlu2.b32.cont [5/16] %v132_v39, 128 }
 0x3b5   :  { %1519 = vxpose.xlu1.b32.cont [7/16] %v181_v58, 128 }
 0x3b6   :  { %v1403_v63 = vpop.trf.xlu0 }
 0x3b7   :  { %2699 = vst [vmem:[#allocation2 + $0x910] sm:$0xff] %v1403_v63  ;;  %v232_v63 = vld [vmem:[%s5656_s0 + $0x6f8] sm:$0xff] }
 0x3b9   :  { %v1435_v62 = vpop.trf.xlu1 }
 0x3ba   :  { %1488 = vxpose.xlu0.b32.cont [8/16] %v205_v42, 128  ;;  %2715 = vst [vmem:[#allocation2 + $0x990] sm:$0xff] %v1435_v62  ;;  %v381_v42 = vld [vmem:[%s5656_s0 + $0xba0] sm:$0xff]  ;;  %v1466_v43 = vpop.trf.xlu2  ;;  %v158_v62 = vld [vmem:[%s5656_s0 + $0x4a8] sm:$0xff] }
 0x3bb   :  { %2730 = vst [vmem:[#allocation2 + $0xa08] sm:$0xff] %v1466_v43  ;;  %1550 = vxpose.xlu2.b32.cont [6/16] %v157_v45, 128 }
 0x3bd   :  { %1520 = vxpose.xlu1.b32.cont [8/16] %v206_v0, 128 }
 0x3be   :  { %v1404_v5 = vpop.trf.xlu0 }
 0x3bf   :  { %2700 = vst [vmem:[#allocation2 + $0x918] sm:$0xff] %v1404_v5  ;;  %v257_v5 = vld [vmem:[%s5656_s0 + $0x7c0] sm:$0xff] }
 0x3c1   :  { %v1436_v4 = vpop.trf.xlu1 }
 0x3c2   :  { %1489 = vxpose.xlu0.b32.cont [9/16] %v230_v48, 128  ;;  %2716 = vst [vmem:[#allocation2 + $0x998] sm:$0xff] %v1436_v4  ;;  %v406_v48 = vld [vmem:[%s5656_s0 + $0xc68] sm:$0xff]  ;;  %v1467_v49 = vpop.trf.xlu2  ;;  %v183_v4 = vld [vmem:[%s5656_s0 + $0x570] sm:$0xff] }
 0x3c3   :  { %2731 = vst [vmem:[#allocation2 + $0xa10] sm:$0xff] %v1467_v49  ;;  %1551 = vxpose.xlu2.b32.cont [7/16] %v182_v51, 128 }
 0x3c5   :  { %1521 = vxpose.xlu1.b32.cont [9/16] %v231_v6, 128 }
 0x3c6   :  { %v1405_v11 = vpop.trf.xlu0 }
 0x3c7   :  { %2701 = vst [vmem:[#allocation2 + $0x920] sm:$0xff] %v1405_v11  ;;  %v282_v11 = vld [vmem:[%s5656_s0 + $0x888] sm:$0xff] }
 0x3c9   :  { %v1437_v10 = vpop.trf.xlu1 }
 0x3ca   :  { %1490 = vxpose.xlu0.b32.cont [10/16] %v255_v54, 128  ;;  %2717 = vst [vmem:[#allocation2 + $0x9a0] sm:$0xff] %v1437_v10  ;;  %v409_v54 = vld [vmem:[%s5656_s0 + $0xc80] sm:$0xff]  ;;  %v1468_v55 = vpop.trf.xlu2  ;;  %v208_v10 = vld [vmem:[%s5656_s0 + $0x638] sm:$0xff] }
 0x3cb   :  { %2732 = vst [vmem:[#allocation2 + $0xa18] sm:$0xff] %v1468_v55  ;;  %1552 = vxpose.xlu2.b32.cont [8/16] %v207_v57, 128 }
 0x3cd   :  { %1522 = vxpose.xlu1.b32.cont [10/16] %v256_v12, 128 }
 0x3ce   :  { %v1406_v17 = vpop.trf.xlu0 }
 0x3cf   :  { %2702 = vst [vmem:[#allocation2 + $0x928] sm:$0xff] %v1406_v17  ;;  %v307_v17 = vld [vmem:[%s5656_s0 + $0x950] sm:$0xff] }
 0x3d1   :  { %v1438_v16 = vpop.trf.xlu1 }
 0x3d2   :  { %1491 = vxpose.xlu0.b32.cont [11/16] %v280_v60, 128  ;;  %2718 = vst [vmem:[#allocation2 + $0x9a8] sm:$0xff] %v1438_v16  ;;  %v434_v60 = vld [vmem:[%s5656_s0 + $0xd48] sm:$0xff]  ;;  %v1469_v61 = vpop.trf.xlu2  ;;  %v233_v16 = vld [vmem:[%s5656_s0 + $0x700] sm:$0xff] }
 0x3d3   :  { %2733 = vst [vmem:[#allocation2 + $0xa20] sm:$0xff] %v1469_v61  ;;  %1553 = vxpose.xlu2.b32.cont [9/16] %v232_v63, 128 }
 0x3d5   :  { %1523 = vxpose.xlu1.b32.cont [11/16] %v281_v18, 128 }
 0x3d6   :  { %v1407_v23 = vpop.trf.xlu0 }
 0x3d7   :  { %2703 = vst [vmem:[#allocation2 + $0x930] sm:$0xff] %v1407_v23  ;;  %v332_v23 = vld [vmem:[%s5656_s0 + $0xa18] sm:$0xff] }
 0x3d9   :  { %v1439_v22 = vpop.trf.xlu1 }
 0x3da   :  { %1492 = vxpose.xlu0.b32.cont [12/16] %v305_v2, 128  ;;  %2719 = vst [vmem:[#allocation2 + $0x9b0] sm:$0xff] %v1439_v22  ;;  %v459_v2 = vld [vmem:[%s5656_s0 + $0xe10] sm:$0xff]  ;;  %v1470_v3 = vpop.trf.xlu2  ;;  %v258_v22 = vld [vmem:[%s5656_s0 + $0x7c8] sm:$0xff] }
 0x3db   :  { %2734 = vst [vmem:[#allocation2 + $0xa28] sm:$0xff] %v1470_v3  ;;  %1554 = vxpose.xlu2.b32.cont [10/16] %v257_v5, 128 }
 0x3dd   :  { %1524 = vxpose.xlu1.b32.cont [12/16] %v306_v24, 128 }
 0x3de   :  { %v1408_v29 = vpop.trf.xlu0 }
 0x3df   :  { %2704 = vst [vmem:[#allocation2 + $0x938] sm:$0xff] %v1408_v29  ;;  %v357_v29 = vld [vmem:[%s5656_s0 + $0xae0] sm:$0xff] }
 0x3e1   :  { %v1440_v28 = vpop.trf.xlu1 }
 0x3e2   :  { %1493 = vxpose.xlu0.b32.cont [13/16] %v330_v8, 128  ;;  %2720 = vst [vmem:[#allocation2 + $0x9b8] sm:$0xff] %v1440_v28  ;;  %v484_v8 = vld [vmem:[%s5656_s0 + $0xed8] sm:$0xff]  ;;  %v1471_v9 = vpop.trf.xlu2  ;;  %v283_v28 = vld [vmem:[%s5656_s0 + $0x890] sm:$0xff] }
 0x3e3   :  { %2735 = vst [vmem:[#allocation2 + $0xa30] sm:$0xff] %v1471_v9  ;;  %1555 = vxpose.xlu2.b32.cont [11/16] %v282_v11, 128 }
 0x3e5   :  { %1525 = vxpose.xlu1.b32.cont [13/16] %v331_v30, 128 }
 0x3e6   :  { %v1409_v35 = vpop.trf.xlu0 }
 0x3e7   :  { %2705 = vst [vmem:[#allocation2 + $0x940] sm:$0xff] %v1409_v35  ;;  %v382_v35 = vld [vmem:[%s5656_s0 + $0xba8] sm:$0xff] }
 0x3e9   :  { %v1441_v34 = vpop.trf.xlu1 }
 0x3ea   :  { %1494 = vxpose.xlu0.b32.cont [14/16] %v355_v14, 128  ;;  %2721 = vst [vmem:[#allocation2 + $0x9c0] sm:$0xff] %v1441_v34  ;;  %v509_v14 = vld [vmem:[%s5656_s0 + $0xfa0] sm:$0xff]  ;;  %v1472_v15 = vpop.trf.xlu2  ;;  %v308_v34 = vld [vmem:[%s5656_s0 + $0x958] sm:$0xff] }
 0x3eb   :  { %2736 = vst [vmem:[#allocation2 + $0xa38] sm:$0xff] %v1472_v15  ;;  %1556 = vxpose.xlu2.b32.cont [12/16] %v307_v17, 128 }
 0x3ed   :  { %1526 = vxpose.xlu1.b32.cont [14/16] %v356_v36, 128 }
 0x3ee   :  { %v1410_v41 = vpop.trf.xlu0 }
 0x3ef   :  { %2706 = vst [vmem:[#allocation2 + $0x948] sm:$0xff] %v1410_v41  ;;  %v407_v41 = vld [vmem:[%s5656_s0 + $0xc70] sm:$0xff] }
 0x3f1   :  { %v1442_v40 = vpop.trf.xlu1 }
 0x3f2   :  { %1495 = vxpose.xlu0.b32.cont [15/16] %v380_v20, 128  ;;  %2722 = vst [vmem:[#allocation2 + $0x9c8] sm:$0xff] %v1442_v40  ;;  %v534_v20 = vld [vmem:[%s5656_s0 + $0x1068] sm:$0xff]  ;;  %v1473_v21 = vpop.trf.xlu2  ;;  %v333_v40 = vld [vmem:[%s5656_s0 + $0xa20] sm:$0xff] }
 0x3f3   :  { %2737 = vst [vmem:[#allocation2 + $0xa40] sm:$0xff] %v1473_v21  ;;  %1557 = vxpose.xlu2.b32.cont [13/16] %v332_v23, 128 }
 0x3f5   :  { %1527 = vxpose.xlu1.b32.cont [15/16] %v381_v42, 128 }
 0x3f6   :  { %v1411_v47 = vpop.trf.xlu0 }
 0x3f7   :  { %2707 = vst [vmem:[#allocation2 + $0x950] sm:$0xff] %v1411_v47  ;;  %v410_v47 = vld [vmem:[%s5656_s0 + $0xc88] sm:$0xff] }
 0x3f9   :  { %v1443_v46 = vpop.trf.xlu1 }
 0x3fa   :  { %1496 = vxpose.xlu0.b32.end [16/16] %v405_v26, 128  ;;  %2723 = vst [vmem:[#allocation2 + $0x9d0] sm:$0xff] %v1443_v46  ;;  %v559_v26 = vld [vmem:[%s5656_s0 + $0x1130] sm:$0xff]  ;;  %v1474_v27 = vpop.trf.xlu2  ;;  %v358_v46 = vld [vmem:[%s5656_s0 + $0xae8] sm:$0xff] }
 0x3fb   :  { %2738 = vst [vmem:[#allocation2 + $0xa48] sm:$0xff] %v1474_v27  ;;  %1558 = vxpose.xlu2.b32.cont [14/16] %v357_v29, 128 }
 0x3fd   :  { %1528 = vxpose.xlu1.b32.end [16/16] %v406_v48, 128 }
 0x3fe   :  { %v1412_v53 = vpop.trf.xlu0 }
 0x3ff   :  { %2708 = vst [vmem:[#allocation2 + $0x958] sm:$0xff] %v1412_v53  ;;  %v435_v53 = vld [vmem:[%s5656_s0 + $0xd50] sm:$0xff] }
 0x401   :  { %v1444_v52 = vpop.trf.xlu1 }
 0x402   :  { %1577 = vxpose.xlu0.b32.start [1/16] (narrow) %v33_v32, 64  ;;  %2724 = vst [vmem:[#allocation2 + $0x9d8] sm:$0xff] %v1444_v52  ;;  %v584_v32 = vld [vmem:[%s5656_s0 + $0x11f8] sm:$0xff]  ;;  %v1475_v33 = vpop.trf.xlu2  ;;  %v383_v52 = vld [vmem:[%s5656_s0 + $0xbb0] sm:$0xff] }
 0x403   :  { %2739 = vst [vmem:[#allocation2 + $0xa50] sm:$0xff] %v1475_v33  ;;  %1559 = vxpose.xlu2.b32.cont [15/16] %v382_v35, 128 }
 0x405   :  { %1609 = vxpose.xlu1.b32.start [1/16] %v409_v54, 128 }
 0x406   :  { %v1413_v59 = vpop.trf.xlu0 }
 0x407   :  { %2709 = vst [vmem:[#allocation2 + $0x960] sm:$0xff] %v1413_v59  ;;  %v460_v59 = vld [vmem:[%s5656_s0 + $0xe18] sm:$0xff] }
 0x409   :  { %v1445_v58 = vpop.trf.xlu1 }
 0x40a   :  { %1578 = vxpose.xlu0.b32.cont [2/16] (narrow) %v58_v38, 64  ;;  %2725 = vst [vmem:[#allocation2 + $0x9e0] sm:$0xff] %v1445_v58  ;;  %v609_v38 = vld [vmem:[%s5656_s0 + $0x12c0] sm:$0xff]  ;;  %v1476_v39 = vpop.trf.xlu2  ;;  %v408_v58 = vld [vmem:[%s5656_s0 + $0xc78] sm:$0xff] }
 0x40b   :  { %2740 = vst [vmem:[#allocation2 + $0xa58] sm:$0xff] %v1476_v39  ;;  %1560 = vxpose.xlu2.b32.end [16/16] %v407_v41, 128 }
 0x40d   :  { %1610 = vxpose.xlu1.b32.cont [2/16] %v434_v60, 128 }
 0x40e   :  { %v1414_v1 = vpop.trf.xlu0 }
 0x40f   :  { %2710 = vst [vmem:[#allocation2 + $0x968] sm:$0xff] %v1414_v1  ;;  %v485_v1 = vld [vmem:[%s5656_s0 + $0xee0] sm:$0xff] }
 0x411   :  { %v1446_v0 = vpop.trf.xlu1 }
 0x412   :  { %1579 = vxpose.xlu0.b32.cont [3/16] (narrow) %v83_v44, 64  ;;  %2726 = vst [vmem:[#allocation2 + $0x9e8] sm:$0xff] %v1446_v0  ;;  %v634_v44 = vld [vmem:[%s5656_s0 + $0x1388] sm:$0xff]  ;;  %v1477_v45 = vpop.trf.xlu2  ;;  %v411_v0 = vld [vmem:[%s5656_s0 + $0xc90] sm:$0xff] }
 0x413   :  { %2741 = vst [vmem:[#allocation2 + $0xa60] sm:$0xff] %v1477_v45  ;;  %1641 = vxpose.xlu2.b32.start [1/16] %v410_v47, 128 }
 0x415   :  { %1611 = vxpose.xlu1.b32.cont [3/16] %v459_v2, 128 }
 0x416   :  { %v1415_v7 = vpop.trf.xlu0 }
 0x417   :  { %2711 = vst [vmem:[#allocation2 + $0x970] sm:$0xff] %v1415_v7  ;;  %v510_v7 = vld [vmem:[%s5656_s0 + $0xfa8] sm:$0xff] }
 0x419   :  { %v1447_v6 = vpop.trf.xlu1 }
 0x41a   :  { %1580 = vxpose.xlu0.b32.cont [4/16] (narrow) %v108_v50, 64  ;;  %2727 = vst [vmem:[#allocation2 + $0x9f0] sm:$0xff] %v1447_v6  ;;  %v659_v50 = vld [vmem:[%s5656_s0 + $0x1450] sm:$0xff]  ;;  %v1478_v51 = vpop.trf.xlu2  ;;  %v436_v6 = vld [vmem:[%s5656_s0 + $0xd58] sm:$0xff] }
 0x41b   :  { %2742 = vst [vmem:[#allocation2 + $0xa68] sm:$0xff] %v1478_v51  ;;  %1642 = vxpose.xlu2.b32.cont [2/16] %v435_v53, 128 }
 0x41d   :  { %1612 = vxpose.xlu1.b32.cont [4/16] %v484_v8, 128 }
 0x41e   :  { %v1416_v13 = vpop.trf.xlu0 }
 0x41f   :  { %2712 = vst [vmem:[#allocation2 + $0x978] sm:$0xff] %v1416_v13  ;;  %v535_v13 = vld [vmem:[%s5656_s0 + $0x1070] sm:$0xff] }
 0x421   :  { %v1448_v12 = vpop.trf.xlu1 }
 0x422   :  { %1581 = vxpose.xlu0.b32.cont [5/16] (narrow) %v133_v56, 64  ;;  %2728 = vst [vmem:[#allocation2 + $0x9f8] sm:$0xff] %v1448_v12  ;;  %v684_v56 = vld [vmem:[%s5656_s0 + $0x1518] sm:$0xff]  ;;  %v1479_v57 = vpop.trf.xlu2  ;;  %v461_v12 = vld [vmem:[%s5656_s0 + $0xe20] sm:$0xff] }
 0x423   :  { %2743 = vst [vmem:[#allocation2 + $0xa70] sm:$0xff] %v1479_v57  ;;  %1643 = vxpose.xlu2.b32.cont [3/16] %v460_v59, 128 }
 0x425   :  { %1613 = vxpose.xlu1.b32.cont [5/16] %v509_v14, 128 }
 0x426   :  { %v1497_v19 = vpop.trf.xlu0 }
 0x427   :  { %2745 = vst [vmem:[#allocation2 + $0xa80] sm:$0xff] %v1497_v19  ;;  %v560_v19 = vld [vmem:[%s5656_s0 + $0x1138] sm:$0xff] }
 0x429   :  { %v1529_v18 = vpop.trf.xlu1 }
 0x42a   :  { %1582 = vxpose.xlu0.b32.cont [6/16] (narrow) %v158_v62, 64  ;;  %2761 = vst [vmem:[#allocation2 + $0xb00] sm:$0xff] %v1529_v18  ;;  %v709_v62 = vld [vmem:[%s5656_s0 + $0x15e0] sm:$0xff]  ;;  %v1480_v63 = vpop.trf.xlu2  ;;  %v486_v18 = vld [vmem:[%s5656_s0 + $0xee8] sm:$0xff] }
 0x42b   :  { %2744 = vst [vmem:[#allocation2 + $0xa78] sm:$0xff] %v1480_v63  ;;  %1644 = vxpose.xlu2.b32.cont [4/16] %v485_v1, 128 }
 0x42d   :  { %1614 = vxpose.xlu1.b32.cont [6/16] %v534_v20, 128 }
 0x42e   :  { %v1498_v25 = vpop.trf.xlu0 }
 0x42f   :  { %2746 = vst [vmem:[#allocation2 + $0xa88] sm:$0xff] %v1498_v25  ;;  %v585_v25 = vld [vmem:[%s5656_s0 + $0x1200] sm:$0xff] }
 0x431   :  { %v1530_v24 = vpop.trf.xlu1 }
 0x432   :  { %1583 = vxpose.xlu0.b32.cont [7/16] (narrow) %v183_v4, 64  ;;  %2762 = vst [vmem:[#allocation2 + $0xb08] sm:$0xff] %v1530_v24  ;;  %v734_v4 = vld [vmem:[%s5656_s0 + $0x16a8] sm:$0xff]  ;;  %v1561_v5 = vpop.trf.xlu2  ;;  %v511_v24 = vld [vmem:[%s5656_s0 + $0xfb0] sm:$0xff] }
 0x433   :  { %2777 = vst [vmem:[#allocation2 + $0xb80] sm:$0xff] %v1561_v5  ;;  %1645 = vxpose.xlu2.b32.cont [5/16] %v510_v7, 128 }
 0x435   :  { %1615 = vxpose.xlu1.b32.cont [7/16] %v559_v26, 128 }
 0x436   :  { %v1499_v31 = vpop.trf.xlu0 }
 0x437   :  { %2747 = vst [vmem:[#allocation2 + $0xa90] sm:$0xff] %v1499_v31  ;;  %v610_v31 = vld [vmem:[%s5656_s0 + $0x12c8] sm:$0xff] }
 0x439   :  { %v1531_v30 = vpop.trf.xlu1 }
 0x43a   :  { %1584 = vxpose.xlu0.b32.cont [8/16] (narrow) %v208_v10, 64  ;;  %2763 = vst [vmem:[#allocation2 + $0xb10] sm:$0xff] %v1531_v30  ;;  %v759_v10 = vld [vmem:[%s5656_s0 + $0x1770] sm:$0xff]  ;;  %v1562_v11 = vpop.trf.xlu2  ;;  %v536_v30 = vld [vmem:[%s5656_s0 + $0x1078] sm:$0xff] }
 0x43b   :  { %2778 = vst [vmem:[#allocation2 + $0xb88] sm:$0xff] %v1562_v11  ;;  %1646 = vxpose.xlu2.b32.cont [6/16] %v535_v13, 128 }
 0x43d   :  { %1616 = vxpose.xlu1.b32.cont [8/16] %v584_v32, 128 }
 0x43e   :  { %v1500_v37 = vpop.trf.xlu0 }
 0x43f   :  { %2748 = vst [vmem:[#allocation2 + $0xa98] sm:$0xff] %v1500_v37  ;;  %v635_v37 = vld [vmem:[%s5656_s0 + $0x1390] sm:$0xff] }
 0x441   :  { %v1532_v36 = vpop.trf.xlu1 }
 0x442   :  { %1585 = vxpose.xlu0.b32.cont [9/16] (narrow) %v233_v16, 64  ;;  %2764 = vst [vmem:[#allocation2 + $0xb18] sm:$0xff] %v1532_v36  ;;  %v784_v16 = vld [vmem:[%s5656_s0 + $0x1838] sm:$0xff]  ;;  %v1563_v17 = vpop.trf.xlu2  ;;  %v561_v36 = vld [vmem:[%s5656_s0 + $0x1140] sm:$0xff] }
 0x443   :  { %2779 = vst [vmem:[#allocation2 + $0xb90] sm:$0xff] %v1563_v17  ;;  %1647 = vxpose.xlu2.b32.cont [7/16] %v560_v19, 128 }
 0x445   :  { %1617 = vxpose.xlu1.b32.cont [9/16] %v609_v38, 128 }
 0x446   :  { %v1501_v43 = vpop.trf.xlu0 }
 0x447   :  { %2749 = vst [vmem:[#allocation2 + $0xaa0] sm:$0xff] %v1501_v43  ;;  %v660_v43 = vld [vmem:[%s5656_s0 + $0x1458] sm:$0xff] }
 0x449   :  { %v1533_v42 = vpop.trf.xlu1 }
 0x44a   :  { %1586 = vxpose.xlu0.b32.cont [10/16] (narrow) %v258_v22, 64  ;;  %2765 = vst [vmem:[#allocation2 + $0xb20] sm:$0xff] %v1533_v42  ;;  %v412_v22 = vld [vmem:[%s5656_s0 + $0xc98] sm:$0xff]  ;;  %v1564_v23 = vpop.trf.xlu2  ;;  %v586_v42 = vld [vmem:[%s5656_s0 + $0x1208] sm:$0xff] }
 0x44b   :  { %2780 = vst [vmem:[#allocation2 + $0xb98] sm:$0xff] %v1564_v23  ;;  %1648 = vxpose.xlu2.b32.cont [8/16] %v585_v25, 128 }
 0x44d   :  { %1618 = vxpose.xlu1.b32.cont [10/16] %v634_v44, 128 }
 0x44e   :  { %v1502_v49 = vpop.trf.xlu0 }
 0x44f   :  { %2750 = vst [vmem:[#allocation2 + $0xaa8] sm:$0xff] %v1502_v49  ;;  %v685_v49 = vld [vmem:[%s5656_s0 + $0x1520] sm:$0xff] }
 0x451   :  { %v1534_v48 = vpop.trf.xlu1 }
 0x452   :  { %1587 = vxpose.xlu0.b32.cont [11/16] (narrow) %v283_v28, 64  ;;  %2766 = vst [vmem:[#allocation2 + $0xb28] sm:$0xff] %v1534_v48  ;;  %v437_v28 = vld [vmem:[%s5656_s0 + $0xd60] sm:$0xff]  ;;  %v1565_v29 = vpop.trf.xlu2  ;;  %v611_v48 = vld [vmem:[%s5656_s0 + $0x12d0] sm:$0xff] }
 0x453   :  { %2781 = vst [vmem:[#allocation2 + $0xba0] sm:$0xff] %v1565_v29  ;;  %1649 = vxpose.xlu2.b32.cont [9/16] %v610_v31, 128 }
 0x455   :  { %1619 = vxpose.xlu1.b32.cont [11/16] %v659_v50, 128 }
 0x456   :  { %v1503_v55 = vpop.trf.xlu0 }
 0x457   :  { %2751 = vst [vmem:[#allocation2 + $0xab0] sm:$0xff] %v1503_v55  ;;  %v710_v55 = vld [vmem:[%s5656_s0 + $0x15e8] sm:$0xff] }
 0x459   :  { %v1535_v54 = vpop.trf.xlu1 }
 0x45a   :  { %1588 = vxpose.xlu0.b32.cont [12/16] (narrow) %v308_v34, 64  ;;  %2767 = vst [vmem:[#allocation2 + $0xb30] sm:$0xff] %v1535_v54  ;;  %v462_v34 = vld [vmem:[%s5656_s0 + $0xe28] sm:$0xff]  ;;  %v1566_v35 = vpop.trf.xlu2  ;;  %v636_v54 = vld [vmem:[%s5656_s0 + $0x1398] sm:$0xff] }
 0x45b   :  { %2782 = vst [vmem:[#allocation2 + $0xba8] sm:$0xff] %v1566_v35  ;;  %1650 = vxpose.xlu2.b32.cont [10/16] %v635_v37, 128  ;;  %v737_v37 = vld [vmem:[%s5656_s0 + $0x16c0] sm:$0xff] }
 0x45d   :  { %1620 = vxpose.xlu1.b32.cont [12/16] %v684_v56, 128 }
 0x45e   :  { %v1504_v61 = vpop.trf.xlu0 }
 0x45f   :  { %2752 = vst [vmem:[#allocation2 + $0xab8] sm:$0xff] %v1504_v61  ;;  %v735_v61 = vld [vmem:[%s5656_s0 + $0x16b0] sm:$0xff] }
 0x461   :  { %v1536_v60 = vpop.trf.xlu1 }
 0x462   :  { %1589 = vxpose.xlu0.b32.cont [13/16] (narrow) %v333_v40, 64  ;;  %2768 = vst [vmem:[#allocation2 + $0xb38] sm:$0xff] %v1536_v60  ;;  %v487_v40 = vld [vmem:[%s5656_s0 + $0xef0] sm:$0xff]  ;;  %v1567_v41 = vpop.trf.xlu2  ;;  %v661_v60 = vld [vmem:[%s5656_s0 + $0x1460] sm:$0xff] }
 0x463   :  { %2783 = vst [vmem:[#allocation2 + $0xbb0] sm:$0xff] %v1567_v41  ;;  %1651 = vxpose.xlu2.b32.cont [11/16] %v660_v43, 128  ;;  %v464_v41 = vld [vmem:[%s5656_s0 + $0xe38] sm:$0xff]  ;;  %v538_v43 = vld [vmem:[%s5656_s0 + $0x1088] sm:$0xff] }
 0x465   :  { %1621 = vxpose.xlu1.b32.cont [13/16] %v709_v62, 128 }
 0x466   :  { %v1505_v3 = vpop.trf.xlu0 }
 0x467   :  { %2753 = vst [vmem:[#allocation2 + $0xac0] sm:$0xff] %v1505_v3  ;;  %v760_v3 = vld [vmem:[%s5656_s0 + $0x1778] sm:$0xff] }
 0x469   :  { %v1537_v2 = vpop.trf.xlu1 }
 0x46a   :  { %1590 = vxpose.xlu0.b32.cont [14/16] (narrow) %v358_v46, 64  ;;  %2769 = vst [vmem:[#allocation2 + $0xb40] sm:$0xff] %v1537_v2  ;;  %v512_v46 = vld [vmem:[%s5656_s0 + $0xfb8] sm:$0xff]  ;;  %v1568_v47 = vpop.trf.xlu2  ;;  %v686_v2 = vld [vmem:[%s5656_s0 + $0x1528] sm:$0xff] }
 0x46b   :  { %2784 = vst [vmem:[#allocation2 + $0xbb8] sm:$0xff] %v1568_v47  ;;  %1652 = vxpose.xlu2.b32.cont [12/16] %v685_v49, 128  ;;  %v787_v47 = vld [vmem:[%s5656_s0 + $0x1850] sm:$0xff] }
 0x46d   :  { %1622 = vxpose.xlu1.b32.cont [14/16] %v734_v4, 128 }
 0x46e   :  { %v1506_v9 = vpop.trf.xlu0 }
 0x46f   :  { %2754 = vst [vmem:[#allocation2 + $0xac8] sm:$0xff] %v1506_v9  ;;  %v785_v9 = vld [vmem:[%s5656_s0 + $0x1840] sm:$0xff] }
 0x471   :  { %v1538_v8 = vpop.trf.xlu1 }
 0x472   :  { %1591 = vxpose.xlu0.b32.cont [15/16] (narrow) %v383_v52, 64  ;;  %2770 = vst [vmem:[#allocation2 + $0xb48] sm:$0xff] %v1538_v8  ;;  %v537_v52 = vld [vmem:[%s5656_s0 + $0x1080] sm:$0xff]  ;;  %v1569_v53 = vpop.trf.xlu2  ;;  %v711_v8 = vld [vmem:[%s5656_s0 + $0x15f0] sm:$0xff] }
 0x473   :  { %2785 = vst [vmem:[#allocation2 + $0xbc0] sm:$0xff] %v1569_v53  ;;  %1653 = vxpose.xlu2.b32.cont [13/16] %v710_v55, 128  ;;  %v588_v53 = vld [vmem:[%s5656_s0 + $0x1218] sm:$0xff] }
 0x475   :  { %1623 = vxpose.xlu1.b32.cont [15/16] %v759_v10, 128 }
 0x476   :  { %v1507_v15 = vpop.trf.xlu0 }
 0x477   :  { %2755 = vst [vmem:[#allocation2 + $0xad0] sm:$0xff] %v1507_v15  ;;  %v413_v15 = vld [vmem:[%s5656_s0 + $0xca0] sm:$0xff] }
 0x479   :  { %v1539_v14 = vpop.trf.xlu1 }
 0x47a   :  { %1592 = vxpose.xlu0.b32.end [16/16] (narrow) %v408_v58, 64  ;;  %2771 = vst [vmem:[#allocation2 + $0xb50] sm:$0xff] %v1539_v14  ;;  %v562_v58 = vld [vmem:[%s5656_s0 + $0x1148] sm:$0xff]  ;;  %v1570_v59 = vpop.trf.xlu2  ;;  %v736_v14 = vld [vmem:[%s5656_s0 + $0x16b8] sm:$0xff] }
 0x47b   :  { %2786 = vst [vmem:[#allocation2 + $0xbc8] sm:$0xff] %v1570_v59  ;;  %1654 = vxpose.xlu2.b32.cont [14/16] %v735_v61, 128  ;;  %v613_v59 = vld [vmem:[%s5656_s0 + $0x12e0] sm:$0xff] }
 0x47d   :  { %1624 = vxpose.xlu1.b32.end [16/16] %v784_v16, 128 }
 0x47e   :  { %v1508_v21 = vpop.trf.xlu0 }
 0x47f   :  { %2756 = vst [vmem:[#allocation2 + $0xad8] sm:$0xff] %v1508_v21  ;;  %v438_v21 = vld [vmem:[%s5656_s0 + $0xd68] sm:$0xff] }
 0x481   :  { %v1540_v20 = vpop.trf.xlu1 }
 0x482   :  { %1673 = vxpose.xlu0.b32.start [1/16] %v411_v0, 128  ;;  %2772 = vst [vmem:[#allocation2 + $0xb58] sm:$0xff] %v1540_v20  ;;  %v587_v0 = vld [vmem:[%s5656_s0 + $0x1210] sm:$0xff]  ;;  %v1571_v1 = vpop.trf.xlu2  ;;  %v761_v20 = vld [vmem:[%s5656_s0 + $0x1780] sm:$0xff] }
 0x483   :  { %2787 = vst [vmem:[#allocation2 + $0xbd0] sm:$0xff] %v1571_v1  ;;  %1655 = vxpose.xlu2.b32.cont [15/16] %v760_v3, 128  ;;  %v638_v1 = vld [vmem:[%s5656_s0 + $0x13a8] sm:$0xff] }
 0x485   :  { %1705 = vxpose.xlu1.b32.start [1/16] %v412_v22, 128 }
 0x486   :  { %v1509_v27 = vpop.trf.xlu0 }
 0x487   :  { %2757 = vst [vmem:[#allocation2 + $0xae0] sm:$0xff] %v1509_v27  ;;  %v463_v27 = vld [vmem:[%s5656_s0 + $0xe30] sm:$0xff] }
 0x489   :  { %v1541_v26 = vpop.trf.xlu1 }
 0x48a   :  { %1674 = vxpose.xlu0.b32.cont [2/16] %v436_v6, 128  ;;  %2773 = vst [vmem:[#allocation2 + $0xb60] sm:$0xff] %v1541_v26  ;;  %v612_v6 = vld [vmem:[%s5656_s0 + $0x12d8] sm:$0xff]  ;;  %v1572_v7 = vpop.trf.xlu2  ;;  %v786_v26 = vld [vmem:[%s5656_s0 + $0x1848] sm:$0xff] }
 0x48b   :  { %2788 = vst [vmem:[#allocation2 + $0xbd8] sm:$0xff] %v1572_v7  ;;  %1656 = vxpose.xlu2.b32.end [16/16] %v785_v9, 128  ;;  %v663_v7 = vld [vmem:[%s5656_s0 + $0x1470] sm:$0xff] }
 0x48d   :  { %1706 = vxpose.xlu1.b32.cont [2/16] %v437_v28, 128 }
 0x48e   :  { %v1510_v33 = vpop.trf.xlu0 }
 0x48f   :  { %2758 = vst [vmem:[#allocation2 + $0xae8] sm:$0xff] %v1510_v33  ;;  %v488_v33 = vld [vmem:[%s5656_s0 + $0xef8] sm:$0xff] }
 0x491   :  { %v1542_v32 = vpop.trf.xlu1 }
 0x492   :  { %1675 = vxpose.xlu0.b32.cont [3/16] %v461_v12, 128  ;;  %2774 = vst [vmem:[#allocation2 + $0xb68] sm:$0xff] %v1542_v32  ;;  %v637_v12 = vld [vmem:[%s5656_s0 + $0x13a0] sm:$0xff]  ;;  %v1573_v13 = vpop.trf.xlu2  ;;  %v414_v32 = vld [vmem:[%s5656_s0 + $0xca8] sm:$0xff] }
 0x493   :  { %2789 = vst [vmem:[#allocation2 + $0xbe0] sm:$0xff] %v1573_v13  ;;  %1737 = vxpose.xlu2.b32.start [1/16] %v413_v15, 128  ;;  %v688_v13 = vld [vmem:[%s5656_s0 + $0x1538] sm:$0xff] }
 0x495   :  { %1707 = vxpose.xlu1.b32.cont [3/16] %v462_v34, 128 }
 0x496   :  { %v1511_v39 = vpop.trf.xlu0 }
 0x497   :  { %2759 = vst [vmem:[#allocation2 + $0xaf0] sm:$0xff] %v1511_v39 }
 0x499   :  { %v1543_v38 = vpop.trf.xlu1 }
 0x49a   :  { %1676 = vxpose.xlu0.b32.cont [4/16] %v486_v18, 128  ;;  %2775 = vst [vmem:[#allocation2 + $0xb70] sm:$0xff] %v1543_v38  ;;  %v662_v18 = vld [vmem:[%s5656_s0 + $0x1468] sm:$0xff]  ;;  %v1574_v19 = vpop.trf.xlu2  ;;  %v513_v38 = vld [vmem:[%s5656_s0 + $0xfc0] sm:$0xff] }
 0x49b   :  { %2790 = vst [vmem:[#allocation2 + $0xbe8] sm:$0xff] %v1574_v19  ;;  %1738 = vxpose.xlu2.b32.cont [2/16] %v438_v21, 128  ;;  %v713_v19 = vld [vmem:[%s5656_s0 + $0x1600] sm:$0xff] }
 0x49d   :  { %1708 = vxpose.xlu1.b32.cont [4/16] %v487_v40, 128 }
 0x49e   :  { %v1512_v45 = vpop.trf.xlu0 }
 0x49f   :  { %2760 = vst [vmem:[#allocation2 + $0xaf8] sm:$0xff] %v1512_v45 }
 0x4a1   :  { %v1544_v44 = vpop.trf.xlu1 }
 0x4a2   :  { %1677 = vxpose.xlu0.b32.cont [5/16] %v511_v24, 128  ;;  %2776 = vst [vmem:[#allocation2 + $0xb78] sm:$0xff] %v1544_v44  ;;  %v687_v24 = vld [vmem:[%s5656_s0 + $0x1530] sm:$0xff]  ;;  %v1575_v25 = vpop.trf.xlu2 }
 0x4a3   :  { %2791 = vst [vmem:[#allocation2 + $0xbf0] sm:$0xff] %v1575_v25  ;;  %1739 = vxpose.xlu2.b32.cont [3/16] %v463_v27, 128  ;;  %v738_v25 = vld [vmem:[%s5656_s0 + $0x16c8] sm:$0xff] }
 0x4a5   :  { %1709 = vxpose.xlu1.b32.cont [5/16] %v512_v46, 128  ;;  %v489_v46 = vld [vmem:[%s5656_s0 + $0xf00] sm:$0xff] }
 0x4a6   :  { %v1593_v51 = vpop.trf.xlu0 }
 0x4a7   :  { %2793 = vst [vmem:[#allocation2 + $0xc00] sm:$0xff] %v1593_v51  ;;  %v514_v51 = vld [vmem:[%s5656_s0 + $0xfc8] sm:$0xff] }
 0x4a9   :  { %v1625_v50 = vpop.trf.xlu1 }
 0x4aa   :  { %1678 = vxpose.xlu0.b32.cont [6/16] %v536_v30, 128  ;;  %2801 = vst [vmem:[#allocation2 + $0xc40] sm:$0xff] %v1625_v50  ;;  %v712_v30 = vld [vmem:[%s5656_s0 + $0x15f8] sm:$0xff]  ;;  %v1576_v31 = vpop.trf.xlu2 }
 0x4ab   :  { %2792 = vst [vmem:[#allocation2 + $0xbf8] sm:$0xff] %v1576_v31  ;;  %1740 = vxpose.xlu2.b32.cont [4/16] %v488_v33, 128  ;;  %v763_v31 = vld [vmem:[%s5656_s0 + $0x1790] sm:$0xff] }
 0x4ad   :  { %1710 = vxpose.xlu1.b32.cont [6/16] %v537_v52, 128  ;;  %v415_v52 = vld [vmem:[%s5656_s0 + $0xcb0] sm:$0xff] }
 0x4ae   :  { %v1594_v57 = vpop.trf.xlu0 }
 0x4af   :  { %2794 = vst [vmem:[#allocation2 + $0xc08] sm:$0xff] %v1594_v57  ;;  %v539_v57 = vld [vmem:[%s5656_s0 + $0x1090] sm:$0xff] }
 0x4b1   :  { %v1626_v56 = vpop.trf.xlu1 }
 0x4b2   :  { %1679 = vxpose.xlu0.b32.cont [7/16] %v561_v36, 128  ;;  %2802 = vst [vmem:[#allocation2 + $0xc48] sm:$0xff] %v1626_v56  ;;  %v1657_v35 = vpop.trf.xlu2  ;;  %v439_v36 = vld [vmem:[%s5656_s0 + $0xd70] sm:$0xff] }
 0x4b3   :  { %2817 = vst [vmem:[#allocation2 + $0xcc0] sm:$0xff] %v1657_v35  ;;  %1741 = vxpose.xlu2.b32.cont [5/16] %v513_v38, 128  ;;  %v714_v35 = vld [vmem:[%s5656_s0 + $0x1608] sm:$0xff] }
 0x4b5   :  { %1711 = vxpose.xlu1.b32.cont [7/16] %v562_v58, 128  ;;  %v440_v58 = vld [vmem:[%s5656_s0 + $0xd78] sm:$0xff] }
 0x4b6   :  { %v1595_v63 = vpop.trf.xlu0 }
 0x4b7   :  { %2795 = vst [vmem:[#allocation2 + $0xc10] sm:$0xff] %v1595_v63  ;;  %v564_v63 = vld [vmem:[%s5656_s0 + $0x1158] sm:$0xff] }
 0x4b9   :  { %v1627_v62 = vpop.trf.xlu1 }
 0x4ba   :  { %1680 = vxpose.xlu0.b32.cont [8/16] %v586_v42, 128  ;;  %2803 = vst [vmem:[#allocation2 + $0xc50] sm:$0xff] %v1627_v62  ;;  %v1658_v40 = vpop.trf.xlu2  ;;  %v762_v42 = vld [vmem:[%s5656_s0 + $0x1788] sm:$0xff] }
 0x4bb   :  { %2818 = vst [vmem:[#allocation2 + $0xcc8] sm:$0xff] %v1658_v40  ;;  %1742 = vxpose.xlu2.b32.cont [6/16] %v538_v43, 128  ;;  %v416_v43 = vld [vmem:[%s5656_s0 + $0xcb8] sm:$0xff] }
 0x4bd   :  { %1712 = vxpose.xlu1.b32.cont [8/16] %v587_v0, 128  ;;  %v465_v0 = vld [vmem:[%s5656_s0 + $0xe40] sm:$0xff] }
 0x4be   :  { %v1596_v5 = vpop.trf.xlu0 }
 0x4bf   :  { %2796 = vst [vmem:[#allocation2 + $0xc18] sm:$0xff] %v1596_v5  ;;  %v589_v5 = vld [vmem:[%s5656_s0 + $0x1220] sm:$0xff] }
 0x4c1   :  { %v1628_v4 = vpop.trf.xlu1 }
 0x4c2   :  { %1681 = vxpose.xlu0.b32.cont [9/16] %v611_v48, 128  ;;  %2804 = vst [vmem:[#allocation2 + $0xc58] sm:$0xff] %v1628_v4  ;;  %v1659_v45 = vpop.trf.xlu2  ;;  %v563_v48 = vld [vmem:[%s5656_s0 + $0x1150] sm:$0xff] }
 0x4c3   :  { %2819 = vst [vmem:[#allocation2 + $0xcd0] sm:$0xff] %v1659_v45  ;;  %1743 = vxpose.xlu2.b32.cont [7/16] %v563_v48, 128  ;;  %v665_v48 = vld [vmem:[%s5656_s0 + $0x1480] sm:$0xff] }
 0x4c5   :  { %1713 = vxpose.xlu1.b32.cont [9/16] %v612_v6, 128  ;;  %v490_v6 = vld [vmem:[%s5656_s0 + $0xf08] sm:$0xff] }
 0x4c6   :  { %v1597_v11 = vpop.trf.xlu0 }
 0x4c7   :  { %2797 = vst [vmem:[#allocation2 + $0xc20] sm:$0xff] %v1597_v11  ;;  %v614_v11 = vld [vmem:[%s5656_s0 + $0x12e8] sm:$0xff] }
 0x4c9   :  { %v1629_v10 = vpop.trf.xlu1 }
 0x4ca   :  { %1682 = vxpose.xlu0.b32.cont [10/16] %v636_v54, 128  ;;  %2805 = vst [vmem:[#allocation2 + $0xc60] sm:$0xff] %v1629_v10  ;;  %v1660_v50 = vpop.trf.xlu2 }
 0x4cb   :  { %2820 = vst [vmem:[#allocation2 + $0xcd8] sm:$0xff] %v1660_v50  ;;  %1744 = vxpose.xlu2.b32.cont [8/16] %v588_v53, 128  ;;  %v789_v53 = vld [vmem:[%s5656_s0 + $0x1860] sm:$0xff] }
 0x4cd   :  { %1714 = vxpose.xlu1.b32.cont [10/16] %v637_v12, 128  ;;  %v515_v12 = vld [vmem:[%s5656_s0 + $0xfd0] sm:$0xff] }
 0x4ce   :  { %v1598_v17 = vpop.trf.xlu0 }
 0x4cf   :  { %2798 = vst [vmem:[#allocation2 + $0xc28] sm:$0xff] %v1598_v17  ;;  %v639_v17 = vld [vmem:[%s5656_s0 + $0x13b0] sm:$0xff] }
 0x4d1   :  { %v1630_v16 = vpop.trf.xlu1 }
 0x4d2   :  { %1683 = vxpose.xlu0.b32.cont [11/16] %v661_v60, 128  ;;  %2806 = vst [vmem:[#allocation2 + $0xc68] sm:$0xff] %v1630_v16  ;;  %v1661_v55 = vpop.trf.xlu2 }
 0x4d3   :  { %2821 = vst [vmem:[#allocation2 + $0xce0] sm:$0xff] %v1661_v55  ;;  %1745 = vxpose.xlu2.b32.cont [9/16] %v613_v59, 128  ;;  %v466_v55 = vld [vmem:[%s5656_s0 + $0xe48] sm:$0xff]  ;;  %v417_v59 = vld [vmem:[%s5656_s0 + $0xcc0] sm:$0xff] }
 0x4d5   :  { %1715 = vxpose.xlu1.b32.cont [11/16] %v662_v18, 128  ;;  %v540_v18 = vld [vmem:[%s5656_s0 + $0x1098] sm:$0xff] }
 0x4d6   :  { %v1599_v23 = vpop.trf.xlu0 }
 0x4d7   :  { %2799 = vst [vmem:[#allocation2 + $0xc30] sm:$0xff] %v1599_v23  ;;  %v664_v23 = vld [vmem:[%s5656_s0 + $0x1478] sm:$0xff] }
 0x4d9   :  { %v1631_v22 = vpop.trf.xlu1 }
 0x4da   :  { %1684 = vxpose.xlu0.b32.cont [12/16] %v686_v2, 128  ;;  %2807 = vst [vmem:[#allocation2 + $0xc70] sm:$0xff] %v1631_v22  ;;  %v1662_v61 = vpop.trf.xlu2 }
 0x4db   :  { %2822 = vst [vmem:[#allocation2 + $0xce8] sm:$0xff] %v1662_v61  ;;  %1746 = vxpose.xlu2.b32.cont [10/16] %v638_v1, 128  ;;  %v491_v61 = vld [vmem:[%s5656_s0 + $0xf10] sm:$0xff]  ;;  %v442_v1 = vld [vmem:[%s5656_s0 + $0xd88] sm:$0xff] }
 0x4dd   :  { %1716 = vxpose.xlu1.b32.cont [12/16] %v687_v24, 128  ;;  %v565_v24 = vld [vmem:[%s5656_s0 + $0x1160] sm:$0xff] }
 0x4de   :  { %v1600_v29 = vpop.trf.xlu0 }
 0x4df   :  { %2800 = vst [vmem:[#allocation2 + $0xc38] sm:$0xff] %v1600_v29  ;;  %v689_v29 = vld [vmem:[%s5656_s0 + $0x1540] sm:$0xff] }
 0x4e1   :  { %v1632_v28 = vpop.trf.xlu1 }
 0x4e2   :  { %1685 = vxpose.xlu0.b32.cont [13/16] %v711_v8, 128  ;;  %2808 = vst [vmem:[#allocation2 + $0xc78] sm:$0xff] %v1632_v28  ;;  %v1663_v3 = vpop.trf.xlu2 }
 0x4e3   :  { %2823 = vst [vmem:[#allocation2 + $0xcf0] sm:$0xff] %v1663_v3  ;;  %1747 = vxpose.xlu2.b32.cont [11/16] %v663_v7, 128  ;;  %v516_v3 = vld [vmem:[%s5656_s0 + $0xfd8] sm:$0xff]  ;;  %v467_v7 = vld [vmem:[%s5656_s0 + $0xe50] sm:$0xff] }
 0x4e5   :  { %1717 = vxpose.xlu1.b32.cont [13/16] %v712_v30, 128  ;;  %v590_v30 = vld [vmem:[%s5656_s0 + $0x1228] sm:$0xff] }
 0x4e9   :  { %v1633_v34 = vpop.trf.xlu1 }
 0x4ea   :  { %1686 = vxpose.xlu0.b32.cont [14/16] %v736_v14, 128  ;;  %2809 = vst [vmem:[#allocation2 + $0xc80] sm:$0xff] %v1633_v34  ;;  %v1664_v9 = vpop.trf.xlu2 }
 0x4eb   :  { %2824 = vst [vmem:[#allocation2 + $0xcf8] sm:$0xff] %v1664_v9  ;;  %1748 = vxpose.xlu2.b32.cont [12/16] %v688_v13, 128  ;;  %v541_v9 = vld [vmem:[%s5656_s0 + $0x10a0] sm:$0xff]  ;;  %v492_v13 = vld [vmem:[%s5656_s0 + $0xf18] sm:$0xff] }
 0x4ed   :  { %1718 = vxpose.xlu1.b32.cont [14/16] %v737_v37, 128  ;;  %v788_v37 = vld [vmem:[%s5656_s0 + $0x1858] sm:$0xff] }
 0x4f1   :  { %v1634_v39 = vpop.trf.xlu1 }
 0x4f2   :  { %1687 = vxpose.xlu0.b32.cont [15/16] %v761_v20, 128  ;;  %2810 = vst [vmem:[#allocation2 + $0xc88] sm:$0xff] %v1634_v39  ;;  %v1665_v14 = vpop.trf.xlu2 }
 0x4f3   :  { %2825 = vst [vmem:[#allocation2 + $0xd00] sm:$0xff] %v1665_v14  ;;  %1749 = vxpose.xlu2.b32.cont [13/16] %v713_v19, 128  ;;  %v790_v14 = vld [vmem:[%s5656_s0 + $0x1868] sm:$0xff]  ;;  %v517_v19 = vld [vmem:[%s5656_s0 + $0xfe0] sm:$0xff] }
 0x4f5   :  { %1719 = vxpose.xlu1.b32.cont [15/16] %v762_v42, 128  ;;  %v640_v42 = vld [vmem:[%s5656_s0 + $0x13b8] sm:$0xff] }
 0x4f9   :  { %v1635_v44 = vpop.trf.xlu1 }
 0x4fa   :  { %1688 = vxpose.xlu0.b32.end [16/16] %v786_v26, 128  ;;  %2811 = vst [vmem:[#allocation2 + $0xc90] sm:$0xff] %v1635_v44  ;;  %v1666_v20 = vpop.trf.xlu2 }
 0x4fb   :  { %2826 = vst [vmem:[#allocation2 + $0xd08] sm:$0xff] %v1666_v20  ;;  %1750 = vxpose.xlu2.b32.cont [14/16] %v738_v25, 128  ;;  %v418_v20 = vld [vmem:[%s5656_s0 + $0xcc8] sm:$0xff] }
 0x4fc   :  { %v542_v25 = vld [vmem:[%s5656_s0 + $0x10a8] sm:$0xff] }
 0x4fd   :  { %1720 = vxpose.xlu1.b32.end [16/16] %v787_v47, 128  ;;  %v764_v47 = vld [vmem:[%s5656_s0 + $0x1798] sm:$0xff] }
 0x501   :  { %v1636_v49 = vpop.trf.xlu1 }
 0x502   :  { %1769 = vxpose.xlu0.b32.start [1/16] %v414_v32, 128  ;;  %2812 = vst [vmem:[#allocation2 + $0xc98] sm:$0xff] %v1636_v49  ;;  %v1667_v26 = vpop.trf.xlu2  ;;  %v441_v49 = vld [vmem:[%s5656_s0 + $0xd80] sm:$0xff] }
 0x503   :  { %2827 = vst [vmem:[#allocation2 + $0xd10] sm:$0xff] %v1667_v26  ;;  %1751 = vxpose.xlu2.b32.cont [15/16] %v763_v31, 128  ;;  %v443_v26 = vld [vmem:[%s5656_s0 + $0xd90] sm:$0xff] }
 0x504   :  { %v567_v31 = vld [vmem:[%s5656_s0 + $0x1170] sm:$0xff] }
 0x505   :  { %1801 = vxpose.xlu1.b32.start [1/16] %v415_v52, 128 }
 0x509   :  { %v1637_v54 = vpop.trf.xlu1 }
 0x50a   :  { %1770 = vxpose.xlu0.b32.cont [2/16] %v439_v36, 128  ;;  %2813 = vst [vmem:[#allocation2 + $0xca0] sm:$0xff] %v1637_v54  ;;  %v1668_v32 = vpop.trf.xlu2  ;;  %v615_v36 = vld [vmem:[%s5656_s0 + $0x12f0] sm:$0xff]  ;;  %v690_v54 = vld [vmem:[%s5656_s0 + $0x1548] sm:$0xff] }
 0x50b   :  { %2828 = vst [vmem:[#allocation2 + $0xd18] sm:$0xff] %v1668_v32  ;;  %1752 = vxpose.xlu2.b32.end [16/16] %v788_v37, 128  ;;  %v468_v32 = vld [vmem:[%s5656_s0 + $0xe58] sm:$0xff] }
 0x50c   :  { %v592_v37 = vld [vmem:[%s5656_s0 + $0x1238] sm:$0xff] }
 0x50d   :  { %1802 = vxpose.xlu1.b32.cont [2/16] %v440_v58, 128 }
 0x511   :  { %v1638_v60 = vpop.trf.xlu1 }
 0x512   :  { %1771 = vxpose.xlu0.b32.cont [3/16] %v464_v41, 128  ;;  %2814 = vst [vmem:[#allocation2 + $0xca8] sm:$0xff] %v1638_v60  ;;  %v1669_v38 = vpop.trf.xlu2  ;;  %v739_v41 = vld [vmem:[%s5656_s0 + $0x16d0] sm:$0xff] }
 0x513   :  { %2829 = vst [vmem:[#allocation2 + $0xd20] sm:$0xff] %v1669_v38  ;;  %1833 = vxpose.xlu2.b32.start [1/16] %v416_v43, 128  ;;  %v715_v60 = vld [vmem:[%s5656_s0 + $0x1610] sm:$0xff]  ;;  %v493_v38 = vld [vmem:[%s5656_s0 + $0xf20] sm:$0xff] }
 0x514   :  { %v617_v43 = vld [vmem:[%s5656_s0 + $0x1300] sm:$0xff] }
 0x515   :  { %1803 = vxpose.xlu1.b32.cont [3/16] %v465_v0, 128 }
 0x519   :  { %v1639_v2 = vpop.trf.xlu1 }
 0x51a   :  { %1772 = vxpose.xlu0.b32.cont [4/16] %v489_v46, 128  ;;  %2815 = vst [vmem:[#allocation2 + $0xcb0] sm:$0xff] %v1639_v2  ;;  %v1670_v44 = vpop.trf.xlu2  ;;  %v740_v2 = vld [vmem:[%s5656_s0 + $0x16d8] sm:$0xff] }
 0x51b   :  { %2830 = vst [vmem:[#allocation2 + $0xd28] sm:$0xff] %v1670_v44  ;;  %1834 = vxpose.xlu2.b32.cont [2/16] %v441_v49, 128  ;;  %v518_v44 = vld [vmem:[%s5656_s0 + $0xfe8] sm:$0xff] }
 0x51c   :  { %v642_v49 = vld [vmem:[%s5656_s0 + $0x13c8] sm:$0xff] }
 0x51d   :  { %1804 = vxpose.xlu1.b32.cont [4/16] %v490_v6, 128 }
 0x521   :  { %v1640_v8 = vpop.trf.xlu1 }
 0x522   :  { %1773 = vxpose.xlu0.b32.cont [5/16] %v514_v51, 128  ;;  %2816 = vst [vmem:[#allocation2 + $0xcb8] sm:$0xff] %v1640_v8  ;;  %v1671_v50 = vpop.trf.xlu2  ;;  %v765_v8 = vld [vmem:[%s5656_s0 + $0x17a0] sm:$0xff] }
 0x523   :  { %2831 = vst [vmem:[#allocation2 + $0xd30] sm:$0xff] %v1671_v50  ;;  %1835 = vxpose.xlu2.b32.cont [3/16] %v466_v55, 128  ;;  %v543_v50 = vld [vmem:[%s5656_s0 + $0x10b0] sm:$0xff] }
 0x524   :  { %v667_v55 = vld [vmem:[%s5656_s0 + $0x1490] sm:$0xff] }
 0x525   :  { %1805 = vxpose.xlu1.b32.cont [5/16] %v515_v12, 128 }
 0x526   :  { %v1689_v56 = vpop.trf.xlu0 }
 0x527   :  { %2833 = vst [vmem:[#allocation2 + $0xd40] sm:$0xff] %v1689_v56 }
 0x529   :  { %v1721_v15 = vpop.trf.xlu1 }
 0x52a   :  { %1774 = vxpose.xlu0.b32.cont [6/16] %v539_v57, 128  ;;  %2849 = vst [vmem:[#allocation2 + $0xdc0] sm:$0xff] %v1721_v15  ;;  %v1672_v56 = vpop.trf.xlu2  ;;  %v566_v15 = vld [vmem:[%s5656_s0 + $0x1168] sm:$0xff] }
 0x52b   :  { %2832 = vst [vmem:[#allocation2 + $0xd38] sm:$0xff] %v1672_v56  ;;  %1836 = vxpose.xlu2.b32.cont [4/16] %v491_v61, 128  ;;  %v568_v56 = vld [vmem:[%s5656_s0 + $0x1178] sm:$0xff] }
 0x52c   :  { %v692_v61 = vld [vmem:[%s5656_s0 + $0x1558] sm:$0xff] }
 0x52d   :  { %1806 = vxpose.xlu1.b32.cont [6/16] %v540_v18, 128 }
 0x52e   :  { %v1690_v62 = vpop.trf.xlu0 }
 0x52f   :  { %2834 = vst [vmem:[#allocation2 + $0xd48] sm:$0xff] %v1690_v62 }
 0x531   :  { %v1722_v21 = vpop.trf.xlu1 }
 0x532   :  { %1775 = vxpose.xlu0.b32.cont [7/16] %v564_v63, 128  ;;  %2850 = vst [vmem:[#allocation2 + $0xdc8] sm:$0xff] %v1722_v21  ;;  %v1753_v62 = vpop.trf.xlu2  ;;  %v591_v21 = vld [vmem:[%s5656_s0 + $0x1230] sm:$0xff] }
 0x533   :  { %2865 = vst [vmem:[#allocation2 + $0xe40] sm:$0xff] %v1753_v62  ;;  %1837 = vxpose.xlu2.b32.cont [5/16] %v516_v3, 128  ;;  %v593_v62 = vld [vmem:[%s5656_s0 + $0x1240] sm:$0xff] }
 0x534   :  { %v717_v3 = vld [vmem:[%s5656_s0 + $0x1620] sm:$0xff] }
 0x535   :  { %1807 = vxpose.xlu1.b32.cont [7/16] %v565_v24, 128 }
 0x536   :  { %v1691_v4 = vpop.trf.xlu0 }
 0x537   :  { %2835 = vst [vmem:[#allocation2 + $0xd50] sm:$0xff] %v1691_v4 }
 0x539   :  { %v1723_v27 = vpop.trf.xlu1 }
 0x53a   :  { %1776 = vxpose.xlu0.b32.cont [8/16] %v589_v5, 128  ;;  %2851 = vst [vmem:[#allocation2 + $0xdd0] sm:$0xff] %v1723_v27  ;;  %v1754_v4 = vpop.trf.xlu2  ;;  %v616_v27 = vld [vmem:[%s5656_s0 + $0x12f8] sm:$0xff] }
 0x53b   :  { %2866 = vst [vmem:[#allocation2 + $0xe48] sm:$0xff] %v1754_v4  ;;  %1838 = vxpose.xlu2.b32.cont [6/16] %v541_v9, 128  ;;  %v618_v4 = vld [vmem:[%s5656_s0 + $0x1308] sm:$0xff] }
 0x53c   :  { %v742_v9 = vld [vmem:[%s5656_s0 + $0x16e8] sm:$0xff] }
 0x53d   :  { %1808 = vxpose.xlu1.b32.cont [8/16] %v590_v30, 128 }
 0x53e   :  { %v1692_v10 = vpop.trf.xlu0 }
 0x53f   :  { %2836 = vst [vmem:[#allocation2 + $0xd58] sm:$0xff] %v1692_v10 }
 0x541   :  { %v1724_v33 = vpop.trf.xlu1 }
 0x542   :  { %1777 = vxpose.xlu0.b32.cont [9/16] %v614_v11, 128  ;;  %2852 = vst [vmem:[#allocation2 + $0xdd8] sm:$0xff] %v1724_v33  ;;  %v1755_v10 = vpop.trf.xlu2  ;;  %v641_v33 = vld [vmem:[%s5656_s0 + $0x13c0] sm:$0xff] }
 0x543   :  { %2867 = vst [vmem:[#allocation2 + $0xe50] sm:$0xff] %v1755_v10  ;;  %1839 = vxpose.xlu2.b32.cont [7/16] %v566_v15, 128  ;;  %v643_v10 = vld [vmem:[%s5656_s0 + $0x13d0] sm:$0xff] }
 0x544   :  { %v767_v15 = vld [vmem:[%s5656_s0 + $0x17b0] sm:$0xff] }
 0x545   :  { %1809 = vxpose.xlu1.b32.cont [9/16] %v615_v36, 128 }
 0x546   :  { %v1693_v16 = vpop.trf.xlu0 }
 0x547   :  { %2837 = vst [vmem:[#allocation2 + $0xd60] sm:$0xff] %v1693_v16 }
 0x549   :  { %v1725_v39 = vpop.trf.xlu1 }
 0x54a   :  { %1778 = vxpose.xlu0.b32.cont [10/16] %v639_v17, 128  ;;  %2853 = vst [vmem:[#allocation2 + $0xde0] sm:$0xff] %v1725_v39  ;;  %v1756_v16 = vpop.trf.xlu2  ;;  %v666_v39 = vld [vmem:[%s5656_s0 + $0x1488] sm:$0xff] }
 0x54b   :  { %2868 = vst [vmem:[#allocation2 + $0xe58] sm:$0xff] %v1756_v16  ;;  %1840 = vxpose.xlu2.b32.cont [8/16] %v591_v21, 128  ;;  %v668_v16 = vld [vmem:[%s5656_s0 + $0x1498] sm:$0xff] }
 0x54c   :  { %v792_v21 = vld [vmem:[%s5656_s0 + $0x1878] sm:$0xff] }
 0x54d   :  { %1810 = vxpose.xlu1.b32.cont [10/16] %v640_v42, 128 }
 0x54e   :  { %v1694_v22 = vpop.trf.xlu0 }
 0x54f   :  { %2838 = vst [vmem:[#allocation2 + $0xd68] sm:$0xff] %v1694_v22 }
 0x551   :  { %v1726_v45 = vpop.trf.xlu1 }
 0x552   :  { %1779 = vxpose.xlu0.b32.cont [11/16] %v664_v23, 128  ;;  %2854 = vst [vmem:[#allocation2 + $0xde8] sm:$0xff] %v1726_v45  ;;  %v1757_v22 = vpop.trf.xlu2  ;;  %v691_v45 = vld [vmem:[%s5656_s0 + $0x1550] sm:$0xff] }
 0x553   :  { %2869 = vst [vmem:[#allocation2 + $0xe60] sm:$0xff] %v1757_v22  ;;  %1841 = vxpose.xlu2.b32.cont [9/16] %v616_v27, 128  ;;  %v693_v22 = vld [vmem:[%s5656_s0 + $0x1560] sm:$0xff]  ;;  %v420_v27 = vld [vmem:[%s5656_s0 + $0xcd8] sm:$0xff] }
 0x555   :  { %1811 = vxpose.xlu1.b32.cont [11/16] %v665_v48, 128 }
 0x556   :  { %v1695_v28 = vpop.trf.xlu0 }
 0x557   :  { %2839 = vst [vmem:[#allocation2 + $0xd70] sm:$0xff] %v1695_v28 }
 0x559   :  { %v1727_v51 = vpop.trf.xlu1 }
 0x55a   :  { %1780 = vxpose.xlu0.b32.cont [12/16] %v689_v29, 128  ;;  %2855 = vst [vmem:[#allocation2 + $0xdf0] sm:$0xff] %v1727_v51  ;;  %v1758_v28 = vpop.trf.xlu2  ;;  %v716_v51 = vld [vmem:[%s5656_s0 + $0x1618] sm:$0xff] }
 0x55b   :  { %2870 = vst [vmem:[#allocation2 + $0xe68] sm:$0xff] %v1758_v28  ;;  %1842 = vxpose.xlu2.b32.cont [10/16] %v641_v33, 128  ;;  %v718_v28 = vld [vmem:[%s5656_s0 + $0x1628] sm:$0xff]  ;;  %v445_v33 = vld [vmem:[%s5656_s0 + $0xda0] sm:$0xff] }
 0x55d   :  { %1812 = vxpose.xlu1.b32.cont [12/16] %v690_v54, 128 }
 0x55e   :  { %v1696_v34 = vpop.trf.xlu0 }
 0x55f   :  { %2840 = vst [vmem:[#allocation2 + $0xd78] sm:$0xff] %v1696_v34 }
 0x561   :  { %v1728_v57 = vpop.trf.xlu1 }
 0x562   :  { %1781 = vxpose.xlu0.b32.cont [13/16] %v714_v35, 128  ;;  %2856 = vst [vmem:[#allocation2 + $0xdf8] sm:$0xff] %v1728_v57  ;;  %v1759_v34 = vpop.trf.xlu2  ;;  %v741_v57 = vld [vmem:[%s5656_s0 + $0x16e0] sm:$0xff] }
 0x563   :  { %2871 = vst [vmem:[#allocation2 + $0xe70] sm:$0xff] %v1759_v34  ;;  %1843 = vxpose.xlu2.b32.cont [11/16] %v666_v39, 128  ;;  %v743_v34 = vld [vmem:[%s5656_s0 + $0x16f0] sm:$0xff]  ;;  %v470_v39 = vld [vmem:[%s5656_s0 + $0xe68] sm:$0xff] }
 0x565   :  { %1813 = vxpose.xlu1.b32.cont [13/16] %v715_v60, 128 }
 0x566   :  { %v1697_v40 = vpop.trf.xlu0 }
 0x567   :  { %2841 = vst [vmem:[#allocation2 + $0xd80] sm:$0xff] %v1697_v40 }
 0x569   :  { %v1729_v63 = vpop.trf.xlu1 }
 0x56a   :  { %1782 = vxpose.xlu0.b32.cont [14/16] %v739_v41, 128  ;;  %2857 = vst [vmem:[#allocation2 + $0xe00] sm:$0xff] %v1729_v63  ;;  %v1760_v40 = vpop.trf.xlu2  ;;  %v766_v63 = vld [vmem:[%s5656_s0 + $0x17a8] sm:$0xff] }
 0x56b   :  { %2872 = vst [vmem:[#allocation2 + $0xe78] sm:$0xff] %v1760_v40  ;;  %1844 = vxpose.xlu2.b32.cont [12/16] %v691_v45, 128  ;;  %v768_v40 = vld [vmem:[%s5656_s0 + $0x17b8] sm:$0xff]  ;;  %v495_v45 = vld [vmem:[%s5656_s0 + $0xf30] sm:$0xff] }
 0x56d   :  { %1814 = vxpose.xlu1.b32.cont [14/16] %v740_v2, 128 }
 0x56e   :  { %v1698_v46 = vpop.trf.xlu0 }
 0x56f   :  { %2842 = vst [vmem:[#allocation2 + $0xd88] sm:$0xff] %v1698_v46 }
 0x571   :  { %v1730_v5 = vpop.trf.xlu1 }
 0x572   :  { %1783 = vxpose.xlu0.b32.cont [15/16] %v764_v47, 128  ;;  %2858 = vst [vmem:[#allocation2 + $0xe08] sm:$0xff] %v1730_v5  ;;  %v1761_v46 = vpop.trf.xlu2  ;;  %v791_v5 = vld [vmem:[%s5656_s0 + $0x1870] sm:$0xff] }
 0x573   :  { %2873 = vst [vmem:[#allocation2 + $0xe80] sm:$0xff] %v1761_v46  ;;  %1845 = vxpose.xlu2.b32.cont [13/16] %v716_v51, 128  ;;  %v793_v46 = vld [vmem:[%s5656_s0 + $0x1880] sm:$0xff]  ;;  %v520_v51 = vld [vmem:[%s5656_s0 + $0xff8] sm:$0xff] }
 0x575   :  { %1815 = vxpose.xlu1.b32.cont [15/16] %v765_v8, 128 }
 0x576   :  { %v1699_v52 = vpop.trf.xlu0 }
 0x577   :  { %2843 = vst [vmem:[#allocation2 + $0xd90] sm:$0xff] %v1699_v52 }
 0x579   :  { %v1731_v11 = vpop.trf.xlu1 }
 0x57a   :  { %1784 = vxpose.xlu0.b32.end [16/16] %v789_v53, 128  ;;  %2859 = vst [vmem:[#allocation2 + $0xe10] sm:$0xff] %v1731_v11  ;;  %v1762_v52 = vpop.trf.xlu2  ;;  %v419_v11 = vld [vmem:[%s5656_s0 + $0xcd0] sm:$0xff] }
 0x57b   :  { %2874 = vst [vmem:[#allocation2 + $0xe88] sm:$0xff] %v1762_v52  ;;  %1846 = vxpose.xlu2.b32.cont [14/16] %v741_v57, 128  ;;  %v421_v52 = vld [vmem:[%s5656_s0 + $0xce0] sm:$0xff] }
 0x57c   :  { %v545_v57 = vld [vmem:[%s5656_s0 + $0x10c0] sm:$0xff] }
 0x57d   :  { %1816 = vxpose.xlu1.b32.end [16/16] %v790_v14, 128 }
 0x57e   :  { %v1700_v58 = vpop.trf.xlu0 }
 0x57f   :  { %2844 = vst [vmem:[#allocation2 + $0xd98] sm:$0xff] %v1700_v58 }
 0x581   :  { %v1732_v17 = vpop.trf.xlu1 }
 0x582   :  { %1865 = vxpose.xlu0.b32.start [1/16] %v417_v59, 128  ;;  %2860 = vst [vmem:[#allocation2 + $0xe18] sm:$0xff] %v1732_v17  ;;  %v1763_v58 = vpop.trf.xlu2  ;;  %v444_v17 = vld [vmem:[%s5656_s0 + $0xd98] sm:$0xff] }
 0x583   :  { %2875 = vst [vmem:[#allocation2 + $0xe90] sm:$0xff] %v1763_v58  ;;  %1847 = vxpose.xlu2.b32.cont [15/16] %v766_v63, 128  ;;  %v446_v58 = vld [vmem:[%s5656_s0 + $0xda8] sm:$0xff] }
 0x584   :  { %v570_v63 = vld [vmem:[%s5656_s0 + $0x1188] sm:$0xff] }
 0x585   :  { %1897 = vxpose.xlu1.b32.start [1/16] %v418_v20, 128 }
 0x586   :  { %v1701_v0 = vpop.trf.xlu0 }
 0x587   :  { %2845 = vst [vmem:[#allocation2 + $0xda0] sm:$0xff] %v1701_v0 }
 0x589   :  { %v1733_v23 = vpop.trf.xlu1 }
 0x58a   :  { %1866 = vxpose.xlu0.b32.cont [2/16] %v442_v1, 128  ;;  %2861 = vst [vmem:[#allocation2 + $0xe20] sm:$0xff] %v1733_v23  ;;  %v1764_v0 = vpop.trf.xlu2  ;;  %v469_v23 = vld [vmem:[%s5656_s0 + $0xe60] sm:$0xff] }
 0x58b   :  { %2876 = vst [vmem:[#allocation2 + $0xe98] sm:$0xff] %v1764_v0  ;;  %1848 = vxpose.xlu2.b32.end [16/16] %v791_v5, 128  ;;  %v471_v0 = vld [vmem:[%s5656_s0 + $0xe70] sm:$0xff] }
 0x58c   :  { %v595_v5 = vld [vmem:[%s5656_s0 + $0x1250] sm:$0xff] }
 0x58d   :  { %1898 = vxpose.xlu1.b32.cont [2/16] %v443_v26, 128 }
 0x58e   :  { %v1702_v6 = vpop.trf.xlu0 }
 0x58f   :  { %2846 = vst [vmem:[#allocation2 + $0xda8] sm:$0xff] %v1702_v6 }
 0x591   :  { %v1734_v29 = vpop.trf.xlu1 }
 0x592   :  { %1867 = vxpose.xlu0.b32.cont [3/16] %v467_v7, 128  ;;  %2862 = vst [vmem:[#allocation2 + $0xe28] sm:$0xff] %v1734_v29  ;;  %v1765_v6 = vpop.trf.xlu2  ;;  %v494_v29 = vld [vmem:[%s5656_s0 + $0xf28] sm:$0xff] }
 0x593   :  { %2877 = vst [vmem:[#allocation2 + $0xea0] sm:$0xff] %v1765_v6  ;;  %1929 = vxpose.xlu2.b32.start [1/16] %v419_v11, 128  ;;  %v496_v6 = vld [vmem:[%s5656_s0 + $0xf38] sm:$0xff] }
 0x594   :  { %v620_v11 = vld [vmem:[%s5656_s0 + $0x1318] sm:$0xff] }
 0x595   :  { %1899 = vxpose.xlu1.b32.cont [3/16] %v468_v32, 128 }
 0x596   :  { %v1703_v12 = vpop.trf.xlu0 }
 0x597   :  { %2847 = vst [vmem:[#allocation2 + $0xdb0] sm:$0xff] %v1703_v12 }
 0x599   :  { %v1735_v35 = vpop.trf.xlu1 }
 0x59a   :  { %1868 = vxpose.xlu0.b32.cont [4/16] %v492_v13, 128  ;;  %2863 = vst [vmem:[#allocation2 + $0xe30] sm:$0xff] %v1735_v35  ;;  %v1766_v12 = vpop.trf.xlu2  ;;  %v519_v35 = vld [vmem:[%s5656_s0 + $0xff0] sm:$0xff] }
 0x59b   :  { %2878 = vst [vmem:[#allocation2 + $0xea8] sm:$0xff] %v1766_v12  ;;  %1930 = vxpose.xlu2.b32.cont [2/16] %v444_v17, 128  ;;  %v521_v12 = vld [vmem:[%s5656_s0 + $0x1000] sm:$0xff] }
 0x59c   :  { %v645_v17 = vld [vmem:[%s5656_s0 + $0x13e0] sm:$0xff] }
 0x59d   :  { %1900 = vxpose.xlu1.b32.cont [4/16] %v493_v38, 128 }
 0x59e   :  { %v1704_v18 = vpop.trf.xlu0 }
 0x59f   :  { %2848 = vst [vmem:[#allocation2 + $0xdb8] sm:$0xff] %v1704_v18 }
 0x5a1   :  { %v1736_v41 = vpop.trf.xlu1 }
 0x5a2   :  { %1869 = vxpose.xlu0.b32.cont [5/16] %v517_v19, 128  ;;  %2864 = vst [vmem:[#allocation2 + $0xe38] sm:$0xff] %v1736_v41  ;;  %v1767_v18 = vpop.trf.xlu2  ;;  %v544_v41 = vld [vmem:[%s5656_s0 + $0x10b8] sm:$0xff] }
 0x5a3   :  { %2879 = vst [vmem:[#allocation2 + $0xeb0] sm:$0xff] %v1767_v18  ;;  %1931 = vxpose.xlu2.b32.cont [3/16] %v469_v23, 128  ;;  %v546_v18 = vld [vmem:[%s5656_s0 + $0x10c8] sm:$0xff] }
 0x5a4   :  { %v670_v23 = vld [vmem:[%s5656_s0 + $0x14a8] sm:$0xff] }
 0x5a5   :  { %1901 = vxpose.xlu1.b32.cont [5/16] %v518_v44, 128 }
 0x5a6   :  { %v1785_v24 = vpop.trf.xlu0 }
 0x5a7   :  { %2881 = vst [vmem:[#allocation2 + $0xec0] sm:$0xff] %v1785_v24 }
 0x5a9   :  { %v1817_v47 = vpop.trf.xlu1 }
 0x5aa   :  { %1870 = vxpose.xlu0.b32.cont [6/16] %v542_v25, 128  ;;  %2897 = vst [vmem:[#allocation2 + $0xf40] sm:$0xff] %v1817_v47  ;;  %v1768_v24 = vpop.trf.xlu2  ;;  %v569_v47 = vld [vmem:[%s5656_s0 + $0x1180] sm:$0xff] }
 0x5ab   :  { %2880 = vst [vmem:[#allocation2 + $0xeb8] sm:$0xff] %v1768_v24  ;;  %1932 = vxpose.xlu2.b32.cont [4/16] %v494_v29, 128  ;;  %v571_v24 = vld [vmem:[%s5656_s0 + $0x1190] sm:$0xff] }
 0x5ac   :  { %v695_v29 = vld [vmem:[%s5656_s0 + $0x1570] sm:$0xff] }
 0x5ad   :  { %1902 = vxpose.xlu1.b32.cont [6/16] %v543_v50, 128 }
 0x5ae   :  { %v1786_v30 = vpop.trf.xlu0 }
 0x5af   :  { %2882 = vst [vmem:[#allocation2 + $0xec8] sm:$0xff] %v1786_v30 }
 0x5b1   :  { %v1818_v53 = vpop.trf.xlu1 }
 0x5b2   :  { %1871 = vxpose.xlu0.b32.cont [7/16] %v567_v31, 128  ;;  %2898 = vst [vmem:[#allocation2 + $0xf48] sm:$0xff] %v1818_v53  ;;  %v1849_v30 = vpop.trf.xlu2  ;;  %v594_v53 = vld [vmem:[%s5656_s0 + $0x1248] sm:$0xff] }
 0x5b3   :  { %2913 = vst [vmem:[#allocation2 + $0xfc0] sm:$0xff] %v1849_v30  ;;  %1933 = vxpose.xlu2.b32.cont [5/16] %v519_v35, 128  ;;  %v596_v30 = vld [vmem:[%s5656_s0 + $0x1258] sm:$0xff] }
 0x5b4   :  { %v720_v35 = vld [vmem:[%s5656_s0 + $0x1638] sm:$0xff] }
 0x5b5   :  { %1903 = vxpose.xlu1.b32.cont [7/16] %v568_v56, 128 }
 0x5b6   :  { %v1787_v36 = vpop.trf.xlu0 }
 0x5b7   :  { %2883 = vst [vmem:[#allocation2 + $0xed0] sm:$0xff] %v1787_v36 }
 0x5b9   :  { %v1819_v59 = vpop.trf.xlu1 }
 0x5ba   :  { %1872 = vxpose.xlu0.b32.cont [8/16] %v592_v37, 128  ;;  %2899 = vst [vmem:[#allocation2 + $0xf50] sm:$0xff] %v1819_v59  ;;  %v1850_v36 = vpop.trf.xlu2  ;;  %v619_v59 = vld [vmem:[%s5656_s0 + $0x1310] sm:$0xff] }
 0x5bb   :  { %2914 = vst [vmem:[#allocation2 + $0xfc8] sm:$0xff] %v1850_v36  ;;  %1934 = vxpose.xlu2.b32.cont [6/16] %v544_v41, 128  ;;  %v621_v36 = vld [vmem:[%s5656_s0 + $0x1320] sm:$0xff] }
 0x5bc   :  { %v745_v41 = vld [vmem:[%s5656_s0 + $0x1700] sm:$0xff] }
 0x5bd   :  { %1904 = vxpose.xlu1.b32.cont [8/16] %v593_v62, 128 }
 0x5be   :  { %v1788_v42 = vpop.trf.xlu0 }
 0x5bf   :  { %2884 = vst [vmem:[#allocation2 + $0xed8] sm:$0xff] %v1788_v42 }
 0x5c1   :  { %v1820_v1 = vpop.trf.xlu1 }
 0x5c2   :  { %1873 = vxpose.xlu0.b32.cont [9/16] %v617_v43, 128  ;;  %2900 = vst [vmem:[#allocation2 + $0xf58] sm:$0xff] %v1820_v1  ;;  %v1851_v42 = vpop.trf.xlu2  ;;  %v644_v1 = vld [vmem:[%s5656_s0 + $0x13d8] sm:$0xff] }
 0x5c3   :  { %2915 = vst [vmem:[#allocation2 + $0xfd0] sm:$0xff] %v1851_v42  ;;  %1935 = vxpose.xlu2.b32.cont [7/16] %v569_v47, 128  ;;  %v646_v42 = vld [vmem:[%s5656_s0 + $0x13e8] sm:$0xff] }
 0x5c4   :  { %v770_v47 = vld [vmem:[%s5656_s0 + $0x17c8] sm:$0xff] }
 0x5c5   :  { %1905 = vxpose.xlu1.b32.cont [9/16] %v618_v4, 128 }
 0x5c6   :  { %v1789_v48 = vpop.trf.xlu0 }
 0x5c7   :  { %2885 = vst [vmem:[#allocation2 + $0xee0] sm:$0xff] %v1789_v48 }
 0x5c9   :  { %v1821_v7 = vpop.trf.xlu1 }
 0x5ca   :  { %1874 = vxpose.xlu0.b32.cont [10/16] %v642_v49, 128  ;;  %2901 = vst [vmem:[#allocation2 + $0xf60] sm:$0xff] %v1821_v7  ;;  %v1852_v48 = vpop.trf.xlu2  ;;  %v669_v7 = vld [vmem:[%s5656_s0 + $0x14a0] sm:$0xff] }
 0x5cb   :  { %2916 = vst [vmem:[#allocation2 + $0xfd8] sm:$0xff] %v1852_v48  ;;  %1936 = vxpose.xlu2.b32.cont [8/16] %v594_v53, 128  ;;  %v671_v48 = vld [vmem:[%s5656_s0 + $0x14b0] sm:$0xff] }
 0x5cc   :  { %v795_v53 = vld [vmem:[%s5656_s0 + $0x1890] sm:$0xff] }
 0x5cd   :  { %1906 = vxpose.xlu1.b32.cont [10/16] %v643_v10, 128 }
 0x5ce   :  { %v1790_v54 = vpop.trf.xlu0 }
 0x5cf   :  { %2886 = vst [vmem:[#allocation2 + $0xee8] sm:$0xff] %v1790_v54 }
 0x5d1   :  { %v1822_v13 = vpop.trf.xlu1 }
 0x5d2   :  { %1875 = vxpose.xlu0.b32.cont [11/16] %v667_v55, 128  ;;  %2902 = vst [vmem:[#allocation2 + $0xf68] sm:$0xff] %v1822_v13  ;;  %v1853_v54 = vpop.trf.xlu2  ;;  %v694_v13 = vld [vmem:[%s5656_s0 + $0x1568] sm:$0xff] }
 0x5d3   :  { %2917 = vst [vmem:[#allocation2 + $0xfe0] sm:$0xff] %v1853_v54  ;;  %1937 = vxpose.xlu2.b32.cont [9/16] %v619_v59, 128  ;;  %v696_v54 = vld [vmem:[%s5656_s0 + $0x1578] sm:$0xff]  ;;  %v423_v59 = vld [vmem:[%s5656_s0 + $0xcf0] sm:$0xff] }
 0x5d5   :  { %1907 = vxpose.xlu1.b32.cont [11/16] %v668_v16, 128 }
 0x5d6   :  { %v1791_v60 = vpop.trf.xlu0 }
 0x5d7   :  { %2887 = vst [vmem:[#allocation2 + $0xef0] sm:$0xff] %v1791_v60 }
 0x5d9   :  { %v1823_v19 = vpop.trf.xlu1 }
 0x5da   :  { %1876 = vxpose.xlu0.b32.cont [12/16] %v692_v61, 128  ;;  %2903 = vst [vmem:[#allocation2 + $0xf70] sm:$0xff] %v1823_v19  ;;  %v1854_v60 = vpop.trf.xlu2  ;;  %v719_v19 = vld [vmem:[%s5656_s0 + $0x1630] sm:$0xff] }
 0x5db   :  { %2918 = vst [vmem:[#allocation2 + $0xfe8] sm:$0xff] %v1854_v60  ;;  %1938 = vxpose.xlu2.b32.cont [10/16] %v644_v1, 128  ;;  %v721_v60 = vld [vmem:[%s5656_s0 + $0x1640] sm:$0xff]  ;;  %v448_v1 = vld [vmem:[%s5656_s0 + $0xdb8] sm:$0xff] }
 0x5dd   :  { %1908 = vxpose.xlu1.b32.cont [12/16] %v693_v22, 128 }
 0x5de   :  { %v1792_v2 = vpop.trf.xlu0 }
 0x5df   :  { %2888 = vst [vmem:[#allocation2 + $0xef8] sm:$0xff] %v1792_v2 }
 0x5e1   :  { %v1824_v25 = vpop.trf.xlu1 }
 0x5e2   :  { %1877 = vxpose.xlu0.b32.cont [13/16] %v717_v3, 128  ;;  %2904 = vst [vmem:[#allocation2 + $0xf78] sm:$0xff] %v1824_v25  ;;  %v1855_v2 = vpop.trf.xlu2  ;;  %v744_v25 = vld [vmem:[%s5656_s0 + $0x16f8] sm:$0xff] }
 0x5e3   :  { %2919 = vst [vmem:[#allocation2 + $0xff0] sm:$0xff] %v1855_v2  ;;  %1939 = vxpose.xlu2.b32.cont [11/16] %v669_v7, 128  ;;  %v746_v2 = vld [vmem:[%s5656_s0 + $0x1708] sm:$0xff]  ;;  %v473_v7 = vld [vmem:[%s5656_s0 + $0xe80] sm:$0xff] }
 0x5e5   :  { %1909 = vxpose.xlu1.b32.cont [13/16] %v718_v28, 128 }
 0x5e6   :  { %v1793_v8 = vpop.trf.xlu0 }
 0x5e7   :  { %2889 = vst [vmem:[#allocation2 + $0xf00] sm:$0xff] %v1793_v8 }
 0x5e9   :  { %v1825_v31 = vpop.trf.xlu1 }
 0x5ea   :  { %1878 = vxpose.xlu0.b32.cont [14/16] %v742_v9, 128  ;;  %2905 = vst [vmem:[#allocation2 + $0xf80] sm:$0xff] %v1825_v31  ;;  %v1856_v8 = vpop.trf.xlu2  ;;  %v769_v31 = vld [vmem:[%s5656_s0 + $0x17c0] sm:$0xff] }
 0x5eb   :  { %2920 = vst [vmem:[#allocation2 + $0xff8] sm:$0xff] %v1856_v8  ;;  %1940 = vxpose.xlu2.b32.cont [12/16] %v694_v13, 128  ;;  %v771_v8 = vld [vmem:[%s5656_s0 + $0x17d0] sm:$0xff]  ;;  %v498_v13 = vld [vmem:[%s5656_s0 + $0xf48] sm:$0xff] }
 0x5ed   :  { %1910 = vxpose.xlu1.b32.cont [14/16] %v743_v34, 128 }
 0x5ee   :  { %v1794_v14 = vpop.trf.xlu0 }
 0x5ef   :  { %2890 = vst [vmem:[#allocation2 + $0xf08] sm:$0xff] %v1794_v14 }
 0x5f1   :  { %v1826_v37 = vpop.trf.xlu1 }
 0x5f2   :  { %1879 = vxpose.xlu0.b32.cont [15/16] %v767_v15, 128  ;;  %2906 = vst [vmem:[#allocation2 + $0xf88] sm:$0xff] %v1826_v37  ;;  %v1857_v14 = vpop.trf.xlu2  ;;  %v794_v37 = vld [vmem:[%s5656_s0 + $0x1888] sm:$0xff] }
 0x5f3   :  { %2921 = vst [vmem:[#allocation2 + $0x1000] sm:$0xff] %v1857_v14  ;;  %1941 = vxpose.xlu2.b32.cont [13/16] %v719_v19, 128  ;;  %v796_v14 = vld [vmem:[%s5656_s0 + $0x1898] sm:$0xff]  ;;  %v523_v19 = vld [vmem:[%s5656_s0 + $0x1010] sm:$0xff] }
 0x5f5   :  { %1911 = vxpose.xlu1.b32.cont [15/16] %v768_v40, 128 }
 0x5f6   :  { %v1795_v20 = vpop.trf.xlu0 }
 0x5f7   :  { %2891 = vst [vmem:[#allocation2 + $0xf10] sm:$0xff] %v1795_v20 }
 0x5f9   :  { %v1827_v43 = vpop.trf.xlu1 }
 0x5fa   :  { %1880 = vxpose.xlu0.b32.end [16/16] %v792_v21, 128  ;;  %2907 = vst [vmem:[#allocation2 + $0xf90] sm:$0xff] %v1827_v43  ;;  %v1858_v20 = vpop.trf.xlu2  ;;  %v422_v43 = vld [vmem:[%s5656_s0 + $0xce8] sm:$0xff] }
 0x5fb   :  { %2922 = vst [vmem:[#allocation2 + $0x1008] sm:$0xff] %v1858_v20  ;;  %1942 = vxpose.xlu2.b32.cont [14/16] %v744_v25, 128  ;;  %v424_v20 = vld [vmem:[%s5656_s0 + $0xcf8] sm:$0xff] }
 0x5fc   :  { %v548_v25 = vld [vmem:[%s5656_s0 + $0x10d8] sm:$0xff] }
 0x5fd   :  { %1912 = vxpose.xlu1.b32.end [16/16] %v793_v46, 128 }
 0x5fe   :  { %v1796_v26 = vpop.trf.xlu0 }
 0x5ff   :  { %2892 = vst [vmem:[#allocation2 + $0xf18] sm:$0xff] %v1796_v26 }
 0x601   :  { %v1828_v49 = vpop.trf.xlu1 }
 0x602   :  { %1961 = vxpose.xlu0.b32.start [1/16] %v420_v27, 128  ;;  %2908 = vst [vmem:[#allocation2 + $0xf98] sm:$0xff] %v1828_v49  ;;  %v1859_v26 = vpop.trf.xlu2  ;;  %v447_v49 = vld [vmem:[%s5656_s0 + $0xdb0] sm:$0xff] }
 0x603   :  { %2923 = vst [vmem:[#allocation2 + $0x1010] sm:$0xff] %v1859_v26  ;;  %1943 = vxpose.xlu2.b32.cont [15/16] %v769_v31, 128  ;;  %v449_v26 = vld [vmem:[%s5656_s0 + $0xdc0] sm:$0xff] }
 0x604   :  { %v573_v31 = vld [vmem:[%s5656_s0 + $0x11a0] sm:$0xff] }
 0x605   :  { %1993 = vxpose.xlu1.b32.start [1/16] %v421_v52, 128 }
 0x606   :  { %v1797_v32 = vpop.trf.xlu0 }
 0x607   :  { %2893 = vst [vmem:[#allocation2 + $0xf20] sm:$0xff] %v1797_v32 }
 0x609   :  { %v1829_v55 = vpop.trf.xlu1 }
 0x60a   :  { %1962 = vxpose.xlu0.b32.cont [2/16] %v445_v33, 128  ;;  %2909 = vst [vmem:[#allocation2 + $0xfa0] sm:$0xff] %v1829_v55  ;;  %v1860_v32 = vpop.trf.xlu2  ;;  %v472_v55 = vld [vmem:[%s5656_s0 + $0xe78] sm:$0xff] }
 0x60b   :  { %2924 = vst [vmem:[#allocation2 + $0x1018] sm:$0xff] %v1860_v32  ;;  %1944 = vxpose.xlu2.b32.end [16/16] %v794_v37, 128  ;;  %v474_v32 = vld [vmem:[%s5656_s0 + $0xe88] sm:$0xff] }
 0x60c   :  { %v598_v37 = vld [vmem:[%s5656_s0 + $0x1268] sm:$0xff] }
 0x60d   :  { %1994 = vxpose.xlu1.b32.cont [2/16] %v446_v58, 128 }
 0x60e   :  { %v1798_v38 = vpop.trf.xlu0 }
 0x60f   :  { %2894 = vst [vmem:[#allocation2 + $0xf28] sm:$0xff] %v1798_v38 }
 0x611   :  { %v1830_v61 = vpop.trf.xlu1 }
 0x612   :  { %1963 = vxpose.xlu0.b32.cont [3/16] %v470_v39, 128  ;;  %2910 = vst [vmem:[#allocation2 + $0xfa8] sm:$0xff] %v1830_v61  ;;  %v1861_v38 = vpop.trf.xlu2  ;;  %v497_v61 = vld [vmem:[%s5656_s0 + $0xf40] sm:$0xff] }
 0x613   :  { %2925 = vst [vmem:[#allocation2 + $0x1020] sm:$0xff] %v1861_v38  ;;  %2025 = vxpose.xlu2.b32.start [1/16] %v422_v43, 128  ;;  %v499_v38 = vld [vmem:[%s5656_s0 + $0xf50] sm:$0xff] }
 0x614   :  { %v623_v43 = vld [vmem:[%s5656_s0 + $0x1330] sm:$0xff] }
 0x615   :  { %1995 = vxpose.xlu1.b32.cont [3/16] %v471_v0, 128 }
 0x616   :  { %v1799_v44 = vpop.trf.xlu0 }
 0x617   :  { %2895 = vst [vmem:[#allocation2 + $0xf30] sm:$0xff] %v1799_v44 }
 0x619   :  { %v1831_v3 = vpop.trf.xlu1 }
 0x61a   :  { %1964 = vxpose.xlu0.b32.cont [4/16] %v495_v45, 128  ;;  %2911 = vst [vmem:[#allocation2 + $0xfb0] sm:$0xff] %v1831_v3  ;;  %v1862_v44 = vpop.trf.xlu2  ;;  %v522_v3 = vld [vmem:[%s5656_s0 + $0x1008] sm:$0xff] }
 0x61b   :  { %2926 = vst [vmem:[#allocation2 + $0x1028] sm:$0xff] %v1862_v44  ;;  %2026 = vxpose.xlu2.b32.cont [2/16] %v447_v49, 128  ;;  %v524_v44 = vld [vmem:[%s5656_s0 + $0x1018] sm:$0xff] }
 0x61c   :  { %v648_v49 = vld [vmem:[%s5656_s0 + $0x13f8] sm:$0xff] }
 0x61d   :  { %1996 = vxpose.xlu1.b32.cont [4/16] %v496_v6, 128 }
 0x61e   :  { %v1800_v50 = vpop.trf.xlu0 }
 0x61f   :  { %2896 = vst [vmem:[#allocation2 + $0xf38] sm:$0xff] %v1800_v50 }
 0x621   :  { %v1832_v9 = vpop.trf.xlu1 }
 0x622   :  { %1965 = vxpose.xlu0.b32.cont [5/16] %v520_v51, 128  ;;  %2912 = vst [vmem:[#allocation2 + $0xfb8] sm:$0xff] %v1832_v9  ;;  %v1863_v50 = vpop.trf.xlu2  ;;  %v547_v9 = vld [vmem:[%s5656_s0 + $0x10d0] sm:$0xff] }
 0x623   :  { %2927 = vst [vmem:[#allocation2 + $0x1030] sm:$0xff] %v1863_v50  ;;  %2027 = vxpose.xlu2.b32.cont [3/16] %v472_v55, 128  ;;  %v549_v50 = vld [vmem:[%s5656_s0 + $0x10e0] sm:$0xff] }
 0x624   :  { %v673_v55 = vld [vmem:[%s5656_s0 + $0x14c0] sm:$0xff] }
 0x625   :  { %1997 = vxpose.xlu1.b32.cont [5/16] %v521_v12, 128 }
 0x626   :  { %v1881_v56 = vpop.trf.xlu0 }
 0x627   :  { %2929 = vst [vmem:[#allocation2 + $0x1040] sm:$0xff] %v1881_v56 }
 0x629   :  { %v1913_v15 = vpop.trf.xlu1 }
 0x62a   :  { %1966 = vxpose.xlu0.b32.cont [6/16] %v545_v57, 128  ;;  %2945 = vst [vmem:[#allocation2 + $0x10c0] sm:$0xff] %v1913_v15  ;;  %v1864_v56 = vpop.trf.xlu2  ;;  %v572_v15 = vld [vmem:[%s5656_s0 + $0x1198] sm:$0xff] }
 0x62b   :  { %2928 = vst [vmem:[#allocation2 + $0x1038] sm:$0xff] %v1864_v56  ;;  %2028 = vxpose.xlu2.b32.cont [4/16] %v497_v61, 128  ;;  %v574_v56 = vld [vmem:[%s5656_s0 + $0x11a8] sm:$0xff] }
 0x62c   :  { %v698_v61 = vld [vmem:[%s5656_s0 + $0x1588] sm:$0xff] }
 0x62d   :  { %1998 = vxpose.xlu1.b32.cont [6/16] %v546_v18, 128 }
 0x62e   :  { %v1882_v62 = vpop.trf.xlu0 }
 0x62f   :  { %2930 = vst [vmem:[#allocation2 + $0x1048] sm:$0xff] %v1882_v62 }
 0x631   :  { %v1914_v21 = vpop.trf.xlu1 }
 0x632   :  { %1967 = vxpose.xlu0.b32.cont [7/16] %v570_v63, 128  ;;  %2946 = vst [vmem:[#allocation2 + $0x10c8] sm:$0xff] %v1914_v21  ;;  %v1945_v62 = vpop.trf.xlu2  ;;  %v597_v21 = vld [vmem:[%s5656_s0 + $0x1260] sm:$0xff] }
 0x633   :  { %2961 = vst [vmem:[#allocation2 + $0x1140] sm:$0xff] %v1945_v62  ;;  %2029 = vxpose.xlu2.b32.cont [5/16] %v522_v3, 128  ;;  %v599_v62 = vld [vmem:[%s5656_s0 + $0x1270] sm:$0xff] }
 0x634   :  { %v723_v3 = vld [vmem:[%s5656_s0 + $0x1650] sm:$0xff] }
 0x635   :  { %1999 = vxpose.xlu1.b32.cont [7/16] %v571_v24, 128 }
 0x636   :  { %v1883_v4 = vpop.trf.xlu0 }
 0x637   :  { %2931 = vst [vmem:[#allocation2 + $0x1050] sm:$0xff] %v1883_v4 }
 0x639   :  { %v1915_v27 = vpop.trf.xlu1 }
 0x63a   :  { %1968 = vxpose.xlu0.b32.cont [8/16] %v595_v5, 128  ;;  %2947 = vst [vmem:[#allocation2 + $0x10d0] sm:$0xff] %v1915_v27  ;;  %v1946_v4 = vpop.trf.xlu2  ;;  %v622_v27 = vld [vmem:[%s5656_s0 + $0x1328] sm:$0xff] }
 0x63b   :  { %2962 = vst [vmem:[#allocation2 + $0x1148] sm:$0xff] %v1946_v4  ;;  %2030 = vxpose.xlu2.b32.cont [6/16] %v547_v9, 128  ;;  %v624_v4 = vld [vmem:[%s5656_s0 + $0x1338] sm:$0xff] }
 0x63c   :  { %v748_v9 = vld [vmem:[%s5656_s0 + $0x1718] sm:$0xff] }
 0x63d   :  { %2000 = vxpose.xlu1.b32.cont [8/16] %v596_v30, 128 }
 0x63e   :  { %v1884_v10 = vpop.trf.xlu0 }
 0x63f   :  { %2932 = vst [vmem:[#allocation2 + $0x1058] sm:$0xff] %v1884_v10 }
 0x641   :  { %v1916_v33 = vpop.trf.xlu1 }
 0x642   :  { %1969 = vxpose.xlu0.b32.cont [9/16] %v620_v11, 128  ;;  %2948 = vst [vmem:[#allocation2 + $0x10d8] sm:$0xff] %v1916_v33  ;;  %v1947_v10 = vpop.trf.xlu2  ;;  %v647_v33 = vld [vmem:[%s5656_s0 + $0x13f0] sm:$0xff] }
 0x643   :  { %2963 = vst [vmem:[#allocation2 + $0x1150] sm:$0xff] %v1947_v10  ;;  %2031 = vxpose.xlu2.b32.cont [7/16] %v572_v15, 128  ;;  %v649_v10 = vld [vmem:[%s5656_s0 + $0x1400] sm:$0xff] }
 0x644   :  { %v773_v15 = vld [vmem:[%s5656_s0 + $0x17e0] sm:$0xff] }
 0x645   :  { %2001 = vxpose.xlu1.b32.cont [9/16] %v621_v36, 128 }
 0x646   :  { %v1885_v16 = vpop.trf.xlu0 }
 0x647   :  { %2933 = vst [vmem:[#allocation2 + $0x1060] sm:$0xff] %v1885_v16 }
 0x649   :  { %v1917_v39 = vpop.trf.xlu1 }
 0x64a   :  { %1970 = vxpose.xlu0.b32.cont [10/16] %v645_v17, 128  ;;  %2949 = vst [vmem:[#allocation2 + $0x10e0] sm:$0xff] %v1917_v39  ;;  %v1948_v16 = vpop.trf.xlu2  ;;  %v672_v39 = vld [vmem:[%s5656_s0 + $0x14b8] sm:$0xff] }
 0x64b   :  { %2964 = vst [vmem:[#allocation2 + $0x1158] sm:$0xff] %v1948_v16  ;;  %2032 = vxpose.xlu2.b32.cont [8/16] %v597_v21, 128  ;;  %v674_v16 = vld [vmem:[%s5656_s0 + $0x14c8] sm:$0xff] }
 0x64c   :  { %v798_v21 = vld [vmem:[%s5656_s0 + $0x18a8] sm:$0xff] }
 0x64d   :  { %2002 = vxpose.xlu1.b32.cont [10/16] %v646_v42, 128 }
 0x64e   :  { %v1886_v22 = vpop.trf.xlu0 }
 0x64f   :  { %2934 = vst [vmem:[#allocation2 + $0x1068] sm:$0xff] %v1886_v22 }
 0x651   :  { %v1918_v45 = vpop.trf.xlu1 }
 0x652   :  { %1971 = vxpose.xlu0.b32.cont [11/16] %v670_v23, 128  ;;  %2950 = vst [vmem:[#allocation2 + $0x10e8] sm:$0xff] %v1918_v45  ;;  %v1949_v22 = vpop.trf.xlu2  ;;  %v697_v45 = vld [vmem:[%s5656_s0 + $0x1580] sm:$0xff] }
 0x653   :  { %2965 = vst [vmem:[#allocation2 + $0x1160] sm:$0xff] %v1949_v22  ;;  %2033 = vxpose.xlu2.b32.cont [9/16] %v622_v27, 128  ;;  %v699_v22 = vld [vmem:[%s5656_s0 + $0x1590] sm:$0xff]  ;;  %v426_v27 = vld [vmem:[%s5656_s0 + $0xd08] sm:$0xff] }
 0x655   :  { %2003 = vxpose.xlu1.b32.cont [11/16] %v671_v48, 128 }
 0x656   :  { %v1887_v28 = vpop.trf.xlu0 }
 0x657   :  { %2935 = vst [vmem:[#allocation2 + $0x1070] sm:$0xff] %v1887_v28 }
 0x659   :  { %v1919_v51 = vpop.trf.xlu1 }
 0x65a   :  { %1972 = vxpose.xlu0.b32.cont [12/16] %v695_v29, 128  ;;  %2951 = vst [vmem:[#allocation2 + $0x10f0] sm:$0xff] %v1919_v51  ;;  %v1950_v28 = vpop.trf.xlu2  ;;  %v722_v51 = vld [vmem:[%s5656_s0 + $0x1648] sm:$0xff] }
 0x65b   :  { %2966 = vst [vmem:[#allocation2 + $0x1168] sm:$0xff] %v1950_v28  ;;  %2034 = vxpose.xlu2.b32.cont [10/16] %v647_v33, 128  ;;  %v724_v28 = vld [vmem:[%s5656_s0 + $0x1658] sm:$0xff]  ;;  %v451_v33 = vld [vmem:[%s5656_s0 + $0xdd0] sm:$0xff] }
 0x65d   :  { %2004 = vxpose.xlu1.b32.cont [12/16] %v696_v54, 128 }
 0x65e   :  { %v1888_v34 = vpop.trf.xlu0 }
 0x65f   :  { %2936 = vst [vmem:[#allocation2 + $0x1078] sm:$0xff] %v1888_v34 }
 0x661   :  { %v1920_v57 = vpop.trf.xlu1 }
 0x662   :  { %1973 = vxpose.xlu0.b32.cont [13/16] %v720_v35, 128  ;;  %2952 = vst [vmem:[#allocation2 + $0x10f8] sm:$0xff] %v1920_v57  ;;  %v1951_v34 = vpop.trf.xlu2  ;;  %v747_v57 = vld [vmem:[%s5656_s0 + $0x1710] sm:$0xff] }
 0x663   :  { %2967 = vst [vmem:[#allocation2 + $0x1170] sm:$0xff] %v1951_v34  ;;  %2035 = vxpose.xlu2.b32.cont [11/16] %v672_v39, 128  ;;  %v749_v34 = vld [vmem:[%s5656_s0 + $0x1720] sm:$0xff]  ;;  %v476_v39 = vld [vmem:[%s5656_s0 + $0xe98] sm:$0xff] }
 0x665   :  { %2005 = vxpose.xlu1.b32.cont [13/16] %v721_v60, 128 }
 0x666   :  { %v1889_v40 = vpop.trf.xlu0 }
 0x667   :  { %2937 = vst [vmem:[#allocation2 + $0x1080] sm:$0xff] %v1889_v40 }
 0x669   :  { %v1921_v63 = vpop.trf.xlu1 }
 0x66a   :  { %1974 = vxpose.xlu0.b32.cont [14/16] %v745_v41, 128  ;;  %2953 = vst [vmem:[#allocation2 + $0x1100] sm:$0xff] %v1921_v63  ;;  %v1952_v40 = vpop.trf.xlu2  ;;  %v772_v63 = vld [vmem:[%s5656_s0 + $0x17d8] sm:$0xff] }
 0x66b   :  { %2968 = vst [vmem:[#allocation2 + $0x1178] sm:$0xff] %v1952_v40  ;;  %2036 = vxpose.xlu2.b32.cont [12/16] %v697_v45, 128  ;;  %v774_v40 = vld [vmem:[%s5656_s0 + $0x17e8] sm:$0xff]  ;;  %v501_v45 = vld [vmem:[%s5656_s0 + $0xf60] sm:$0xff] }
 0x66d   :  { %2006 = vxpose.xlu1.b32.cont [14/16] %v746_v2, 128 }
 0x66e   :  { %v1890_v46 = vpop.trf.xlu0 }
 0x66f   :  { %2938 = vst [vmem:[#allocation2 + $0x1088] sm:$0xff] %v1890_v46 }
 0x671   :  { %v1922_v5 = vpop.trf.xlu1 }
 0x672   :  { %1975 = vxpose.xlu0.b32.cont [15/16] %v770_v47, 128  ;;  %2954 = vst [vmem:[#allocation2 + $0x1108] sm:$0xff] %v1922_v5  ;;  %v1953_v46 = vpop.trf.xlu2  ;;  %v797_v5 = vld [vmem:[%s5656_s0 + $0x18a0] sm:$0xff] }
 0x673   :  { %2969 = vst [vmem:[#allocation2 + $0x1180] sm:$0xff] %v1953_v46  ;;  %2037 = vxpose.xlu2.b32.cont [13/16] %v722_v51, 128  ;;  %v799_v46 = vld [vmem:[%s5656_s0 + $0x18b0] sm:$0xff]  ;;  %v526_v51 = vld [vmem:[%s5656_s0 + $0x1028] sm:$0xff] }
 0x675   :  { %2007 = vxpose.xlu1.b32.cont [15/16] %v771_v8, 128 }
 0x676   :  { %v1891_v52 = vpop.trf.xlu0 }
 0x677   :  { %2939 = vst [vmem:[#allocation2 + $0x1090] sm:$0xff] %v1891_v52 }
 0x679   :  { %v1923_v11 = vpop.trf.xlu1 }
 0x67a   :  { %1976 = vxpose.xlu0.b32.end [16/16] %v795_v53, 128  ;;  %2955 = vst [vmem:[#allocation2 + $0x1110] sm:$0xff] %v1923_v11  ;;  %v1954_v52 = vpop.trf.xlu2  ;;  %v425_v11 = vld [vmem:[%s5656_s0 + $0xd00] sm:$0xff] }
 0x67b   :  { %2970 = vst [vmem:[#allocation2 + $0x1188] sm:$0xff] %v1954_v52  ;;  %2038 = vxpose.xlu2.b32.cont [14/16] %v747_v57, 128  ;;  %v427_v52 = vld [vmem:[%s5656_s0 + $0xd10] sm:$0xff] }
 0x67c   :  { %v551_v57 = vld [vmem:[%s5656_s0 + $0x10f0] sm:$0xff] }
 0x67d   :  { %2008 = vxpose.xlu1.b32.end [16/16] %v796_v14, 128 }
 0x67e   :  { %v1892_v58 = vpop.trf.xlu0 }
 0x67f   :  { %2940 = vst [vmem:[#allocation2 + $0x1098] sm:$0xff] %v1892_v58 }
 0x681   :  { %v1924_v17 = vpop.trf.xlu1 }
 0x682   :  { %2057 = vxpose.xlu0.b32.start [1/16] %v423_v59, 128  ;;  %2956 = vst [vmem:[#allocation2 + $0x1118] sm:$0xff] %v1924_v17  ;;  %v1955_v58 = vpop.trf.xlu2  ;;  %v450_v17 = vld [vmem:[%s5656_s0 + $0xdc8] sm:$0xff] }
 0x683   :  { %2971 = vst [vmem:[#allocation2 + $0x1190] sm:$0xff] %v1955_v58  ;;  %2039 = vxpose.xlu2.b32.cont [15/16] %v772_v63, 128  ;;  %v452_v58 = vld [vmem:[%s5656_s0 + $0xdd8] sm:$0xff] }
 0x684   :  { %v576_v63 = vld [vmem:[%s5656_s0 + $0x11b8] sm:$0xff] }
 0x685   :  { %2089 = vxpose.xlu1.b32.start [1/16] %v424_v20, 128 }
 0x686   :  { %v1893_v0 = vpop.trf.xlu0 }
 0x687   :  { %2941 = vst [vmem:[#allocation2 + $0x10a0] sm:$0xff] %v1893_v0 }
 0x689   :  { %v1925_v23 = vpop.trf.xlu1 }
 0x68a   :  { %2058 = vxpose.xlu0.b32.cont [2/16] %v448_v1, 128  ;;  %2957 = vst [vmem:[#allocation2 + $0x1120] sm:$0xff] %v1925_v23  ;;  %v1956_v0 = vpop.trf.xlu2  ;;  %v475_v23 = vld [vmem:[%s5656_s0 + $0xe90] sm:$0xff] }
 0x68b   :  { %2972 = vst [vmem:[#allocation2 + $0x1198] sm:$0xff] %v1956_v0  ;;  %2040 = vxpose.xlu2.b32.end [16/16] %v797_v5, 128  ;;  %v477_v0 = vld [vmem:[%s5656_s0 + $0xea0] sm:$0xff] }
 0x68c   :  { %v601_v5 = vld [vmem:[%s5656_s0 + $0x1280] sm:$0xff] }
 0x68d   :  { %2090 = vxpose.xlu1.b32.cont [2/16] %v449_v26, 128 }
 0x68e   :  { %v1894_v6 = vpop.trf.xlu0 }
 0x68f   :  { %2942 = vst [vmem:[#allocation2 + $0x10a8] sm:$0xff] %v1894_v6 }
 0x691   :  { %v1926_v29 = vpop.trf.xlu1 }
 0x692   :  { %2059 = vxpose.xlu0.b32.cont [3/16] %v473_v7, 128  ;;  %2958 = vst [vmem:[#allocation2 + $0x1128] sm:$0xff] %v1926_v29  ;;  %v1957_v6 = vpop.trf.xlu2  ;;  %v500_v29 = vld [vmem:[%s5656_s0 + $0xf58] sm:$0xff] }
 0x693   :  { %2973 = vst [vmem:[#allocation2 + $0x11a0] sm:$0xff] %v1957_v6  ;;  %2121 = vxpose.xlu2.b32.start [1/16] %v425_v11, 128  ;;  %v502_v6 = vld [vmem:[%s5656_s0 + $0xf68] sm:$0xff] }
 0x694   :  { %v626_v11 = vld [vmem:[%s5656_s0 + $0x1348] sm:$0xff] }
 0x695   :  { %2091 = vxpose.xlu1.b32.cont [3/16] %v474_v32, 128 }
 0x696   :  { %v1895_v12 = vpop.trf.xlu0 }
 0x697   :  { %2943 = vst [vmem:[#allocation2 + $0x10b0] sm:$0xff] %v1895_v12 }
 0x699   :  { %v1927_v35 = vpop.trf.xlu1 }
 0x69a   :  { %2060 = vxpose.xlu0.b32.cont [4/16] %v498_v13, 128  ;;  %2959 = vst [vmem:[#allocation2 + $0x1130] sm:$0xff] %v1927_v35  ;;  %v1958_v12 = vpop.trf.xlu2  ;;  %v525_v35 = vld [vmem:[%s5656_s0 + $0x1020] sm:$0xff] }
 0x69b   :  { %2974 = vst [vmem:[#allocation2 + $0x11a8] sm:$0xff] %v1958_v12  ;;  %2122 = vxpose.xlu2.b32.cont [2/16] %v450_v17, 128  ;;  %v527_v12 = vld [vmem:[%s5656_s0 + $0x1030] sm:$0xff] }
 0x69c   :  { %v651_v17 = vld [vmem:[%s5656_s0 + $0x1410] sm:$0xff] }
 0x69d   :  { %2092 = vxpose.xlu1.b32.cont [4/16] %v499_v38, 128 }
 0x69e   :  { %v1896_v18 = vpop.trf.xlu0 }
 0x69f   :  { %2944 = vst [vmem:[#allocation2 + $0x10b8] sm:$0xff] %v1896_v18 }
 0x6a1   :  { %v1928_v41 = vpop.trf.xlu1 }
 0x6a2   :  { %2061 = vxpose.xlu0.b32.cont [5/16] %v523_v19, 128  ;;  %2960 = vst [vmem:[#allocation2 + $0x1138] sm:$0xff] %v1928_v41  ;;  %v1959_v18 = vpop.trf.xlu2  ;;  %v550_v41 = vld [vmem:[%s5656_s0 + $0x10e8] sm:$0xff] }
 0x6a3   :  { %2975 = vst [vmem:[#allocation2 + $0x11b0] sm:$0xff] %v1959_v18  ;;  %2123 = vxpose.xlu2.b32.cont [3/16] %v475_v23, 128  ;;  %v552_v18 = vld [vmem:[%s5656_s0 + $0x10f8] sm:$0xff] }
 0x6a4   :  { %v676_v23 = vld [vmem:[%s5656_s0 + $0x14d8] sm:$0xff] }
 0x6a5   :  { %2093 = vxpose.xlu1.b32.cont [5/16] %v524_v44, 128 }
 0x6a6   :  { %v1977_v24 = vpop.trf.xlu0 }
 0x6a7   :  { %2977 = vst [vmem:[#allocation2 + $0x11c0] sm:$0xff] %v1977_v24 }
 0x6a9   :  { %v2009_v47 = vpop.trf.xlu1 }
 0x6aa   :  { %2062 = vxpose.xlu0.b32.cont [6/16] %v548_v25, 128  ;;  %2993 = vst [vmem:[#allocation2 + $0x1240] sm:$0xff] %v2009_v47  ;;  %v1960_v24 = vpop.trf.xlu2  ;;  %v575_v47 = vld [vmem:[%s5656_s0 + $0x11b0] sm:$0xff] }
 0x6ab   :  { %2976 = vst [vmem:[#allocation2 + $0x11b8] sm:$0xff] %v1960_v24  ;;  %2124 = vxpose.xlu2.b32.cont [4/16] %v500_v29, 128  ;;  %v577_v24 = vld [vmem:[%s5656_s0 + $0x11c0] sm:$0xff] }
 0x6ac   :  { %v701_v29 = vld [vmem:[%s5656_s0 + $0x15a0] sm:$0xff] }
 0x6ad   :  { %2094 = vxpose.xlu1.b32.cont [6/16] %v549_v50, 128 }
 0x6ae   :  { %v1978_v30 = vpop.trf.xlu0 }
 0x6af   :  { %2978 = vst [vmem:[#allocation2 + $0x11c8] sm:$0xff] %v1978_v30 }
 0x6b1   :  { %v2010_v53 = vpop.trf.xlu1 }
 0x6b2   :  { %2063 = vxpose.xlu0.b32.cont [7/16] %v573_v31, 128  ;;  %2994 = vst [vmem:[#allocation2 + $0x1248] sm:$0xff] %v2010_v53  ;;  %v2041_v30 = vpop.trf.xlu2  ;;  %v600_v53 = vld [vmem:[%s5656_s0 + $0x1278] sm:$0xff] }
 0x6b3   :  { %3009 = vst [vmem:[#allocation2 + $0x12c0] sm:$0xff] %v2041_v30  ;;  %2125 = vxpose.xlu2.b32.cont [5/16] %v525_v35, 128  ;;  %v602_v30 = vld [vmem:[%s5656_s0 + $0x1288] sm:$0xff] }
 0x6b4   :  { %v726_v35 = vld [vmem:[%s5656_s0 + $0x1668] sm:$0xff] }
 0x6b5   :  { %2095 = vxpose.xlu1.b32.cont [7/16] %v574_v56, 128 }
 0x6b6   :  { %v1979_v36 = vpop.trf.xlu0 }
 0x6b7   :  { %2979 = vst [vmem:[#allocation2 + $0x11d0] sm:$0xff] %v1979_v36 }
 0x6b9   :  { %v2011_v59 = vpop.trf.xlu1 }
 0x6ba   :  { %2064 = vxpose.xlu0.b32.cont [8/16] %v598_v37, 128  ;;  %2995 = vst [vmem:[#allocation2 + $0x1250] sm:$0xff] %v2011_v59  ;;  %v2042_v36 = vpop.trf.xlu2  ;;  %v625_v59 = vld [vmem:[%s5656_s0 + $0x1340] sm:$0xff] }
 0x6bb   :  { %3010 = vst [vmem:[#allocation2 + $0x12c8] sm:$0xff] %v2042_v36  ;;  %2126 = vxpose.xlu2.b32.cont [6/16] %v550_v41, 128  ;;  %v627_v36 = vld [vmem:[%s5656_s0 + $0x1350] sm:$0xff] }
 0x6bc   :  { %v751_v41 = vld [vmem:[%s5656_s0 + $0x1730] sm:$0xff] }
 0x6bd   :  { %2096 = vxpose.xlu1.b32.cont [8/16] %v599_v62, 128 }
 0x6be   :  { %v1980_v42 = vpop.trf.xlu0 }
 0x6bf   :  { %2980 = vst [vmem:[#allocation2 + $0x11d8] sm:$0xff] %v1980_v42 }
 0x6c1   :  { %v2012_v1 = vpop.trf.xlu1 }
 0x6c2   :  { %2065 = vxpose.xlu0.b32.cont [9/16] %v623_v43, 128  ;;  %2996 = vst [vmem:[#allocation2 + $0x1258] sm:$0xff] %v2012_v1  ;;  %v2043_v42 = vpop.trf.xlu2  ;;  %v650_v1 = vld [vmem:[%s5656_s0 + $0x1408] sm:$0xff] }
 0x6c3   :  { %3011 = vst [vmem:[#allocation2 + $0x12d0] sm:$0xff] %v2043_v42  ;;  %2127 = vxpose.xlu2.b32.cont [7/16] %v575_v47, 128  ;;  %v652_v42 = vld [vmem:[%s5656_s0 + $0x1418] sm:$0xff] }
 0x6c4   :  { %v776_v47 = vld [vmem:[%s5656_s0 + $0x17f8] sm:$0xff] }
 0x6c5   :  { %2097 = vxpose.xlu1.b32.cont [9/16] %v624_v4, 128 }
 0x6c6   :  { %v1981_v48 = vpop.trf.xlu0 }
 0x6c7   :  { %2981 = vst [vmem:[#allocation2 + $0x11e0] sm:$0xff] %v1981_v48 }
 0x6c9   :  { %v2013_v7 = vpop.trf.xlu1 }
 0x6ca   :  { %2066 = vxpose.xlu0.b32.cont [10/16] %v648_v49, 128  ;;  %2997 = vst [vmem:[#allocation2 + $0x1260] sm:$0xff] %v2013_v7  ;;  %v2044_v48 = vpop.trf.xlu2  ;;  %v675_v7 = vld [vmem:[%s5656_s0 + $0x14d0] sm:$0xff] }
 0x6cb   :  { %3012 = vst [vmem:[#allocation2 + $0x12d8] sm:$0xff] %v2044_v48  ;;  %2128 = vxpose.xlu2.b32.cont [8/16] %v600_v53, 128  ;;  %v677_v48 = vld [vmem:[%s5656_s0 + $0x14e0] sm:$0xff] }
 0x6cc   :  { %v801_v53 = vld [vmem:[%s5656_s0 + $0x18c0] sm:$0xff] }
 0x6cd   :  { %2098 = vxpose.xlu1.b32.cont [10/16] %v649_v10, 128 }
 0x6ce   :  { %v1982_v54 = vpop.trf.xlu0 }
 0x6cf   :  { %2982 = vst [vmem:[#allocation2 + $0x11e8] sm:$0xff] %v1982_v54 }
 0x6d1   :  { %v2014_v13 = vpop.trf.xlu1 }
 0x6d2   :  { %2067 = vxpose.xlu0.b32.cont [11/16] %v673_v55, 128  ;;  %2998 = vst [vmem:[#allocation2 + $0x1268] sm:$0xff] %v2014_v13  ;;  %v2045_v54 = vpop.trf.xlu2  ;;  %v700_v13 = vld [vmem:[%s5656_s0 + $0x1598] sm:$0xff] }
 0x6d3   :  { %3013 = vst [vmem:[#allocation2 + $0x12e0] sm:$0xff] %v2045_v54  ;;  %2129 = vxpose.xlu2.b32.cont [9/16] %v625_v59, 128  ;;  %v702_v54 = vld [vmem:[%s5656_s0 + $0x15a8] sm:$0xff]  ;;  %v429_v59 = vld [vmem:[%s5656_s0 + $0xd20] sm:$0xff] }
 0x6d5   :  { %2099 = vxpose.xlu1.b32.cont [11/16] %v674_v16, 128 }
 0x6d6   :  { %v1983_v60 = vpop.trf.xlu0 }
 0x6d7   :  { %2983 = vst [vmem:[#allocation2 + $0x11f0] sm:$0xff] %v1983_v60 }
 0x6d9   :  { %v2015_v19 = vpop.trf.xlu1 }
 0x6da   :  { %2068 = vxpose.xlu0.b32.cont [12/16] %v698_v61, 128  ;;  %2999 = vst [vmem:[#allocation2 + $0x1270] sm:$0xff] %v2015_v19  ;;  %v2046_v60 = vpop.trf.xlu2  ;;  %v725_v19 = vld [vmem:[%s5656_s0 + $0x1660] sm:$0xff] }
 0x6db   :  { %3014 = vst [vmem:[#allocation2 + $0x12e8] sm:$0xff] %v2046_v60  ;;  %2130 = vxpose.xlu2.b32.cont [10/16] %v650_v1, 128  ;;  %v727_v60 = vld [vmem:[%s5656_s0 + $0x1670] sm:$0xff]  ;;  %v454_v1 = vld [vmem:[%s5656_s0 + $0xde8] sm:$0xff] }
 0x6dd   :  { %2100 = vxpose.xlu1.b32.cont [12/16] %v699_v22, 128 }
 0x6de   :  { %v1984_v2 = vpop.trf.xlu0 }
 0x6df   :  { %2984 = vst [vmem:[#allocation2 + $0x11f8] sm:$0xff] %v1984_v2 }
 0x6e1   :  { %v2016_v25 = vpop.trf.xlu1 }
 0x6e2   :  { %2069 = vxpose.xlu0.b32.cont [13/16] %v723_v3, 128  ;;  %3000 = vst [vmem:[#allocation2 + $0x1278] sm:$0xff] %v2016_v25  ;;  %v2047_v2 = vpop.trf.xlu2  ;;  %v750_v25 = vld [vmem:[%s5656_s0 + $0x1728] sm:$0xff] }
 0x6e3   :  { %3015 = vst [vmem:[#allocation2 + $0x12f0] sm:$0xff] %v2047_v2  ;;  %2131 = vxpose.xlu2.b32.cont [11/16] %v675_v7, 128  ;;  %v752_v2 = vld [vmem:[%s5656_s0 + $0x1738] sm:$0xff]  ;;  %v479_v7 = vld [vmem:[%s5656_s0 + $0xeb0] sm:$0xff] }
 0x6e5   :  { %2101 = vxpose.xlu1.b32.cont [13/16] %v724_v28, 128 }
 0x6e6   :  { %v1985_v8 = vpop.trf.xlu0 }
 0x6e7   :  { %2985 = vst [vmem:[#allocation2 + $0x1200] sm:$0xff] %v1985_v8 }
 0x6e9   :  { %v2017_v31 = vpop.trf.xlu1 }
 0x6ea   :  { %2070 = vxpose.xlu0.b32.cont [14/16] %v748_v9, 128  ;;  %3001 = vst [vmem:[#allocation2 + $0x1280] sm:$0xff] %v2017_v31  ;;  %v2048_v8 = vpop.trf.xlu2  ;;  %v775_v31 = vld [vmem:[%s5656_s0 + $0x17f0] sm:$0xff] }
 0x6eb   :  { %3016 = vst [vmem:[#allocation2 + $0x12f8] sm:$0xff] %v2048_v8  ;;  %2132 = vxpose.xlu2.b32.cont [12/16] %v700_v13, 128  ;;  %v777_v8 = vld [vmem:[%s5656_s0 + $0x1800] sm:$0xff]  ;;  %v504_v13 = vld [vmem:[%s5656_s0 + $0xf78] sm:$0xff] }
 0x6ed   :  { %2102 = vxpose.xlu1.b32.cont [14/16] %v749_v34, 128 }
 0x6ee   :  { %v1986_v14 = vpop.trf.xlu0 }
 0x6ef   :  { %2986 = vst [vmem:[#allocation2 + $0x1208] sm:$0xff] %v1986_v14 }
 0x6f1   :  { %v2018_v37 = vpop.trf.xlu1 }
 0x6f2   :  { %2071 = vxpose.xlu0.b32.cont [15/16] %v773_v15, 128  ;;  %3002 = vst [vmem:[#allocation2 + $0x1288] sm:$0xff] %v2018_v37  ;;  %v2049_v14 = vpop.trf.xlu2  ;;  %v800_v37 = vld [vmem:[%s5656_s0 + $0x18b8] sm:$0xff] }
 0x6f3   :  { %3017 = vst [vmem:[#allocation2 + $0x1300] sm:$0xff] %v2049_v14  ;;  %2133 = vxpose.xlu2.b32.cont [13/16] %v725_v19, 128  ;;  %v802_v14 = vld [vmem:[%s5656_s0 + $0x18c8] sm:$0xff]  ;;  %v529_v19 = vld [vmem:[%s5656_s0 + $0x1040] sm:$0xff] }
 0x6f5   :  { %2103 = vxpose.xlu1.b32.cont [15/16] %v774_v40, 128 }
 0x6f6   :  { %v1987_v20 = vpop.trf.xlu0 }
 0x6f7   :  { %2987 = vst [vmem:[#allocation2 + $0x1210] sm:$0xff] %v1987_v20 }
 0x6f9   :  { %v2019_v43 = vpop.trf.xlu1 }
 0x6fa   :  { %2072 = vxpose.xlu0.b32.end [16/16] %v798_v21, 128  ;;  %3003 = vst [vmem:[#allocation2 + $0x1290] sm:$0xff] %v2019_v43  ;;  %v2050_v20 = vpop.trf.xlu2  ;;  %v428_v43 = vld [vmem:[%s5656_s0 + $0xd18] sm:$0xff] }
 0x6fb   :  { %3018 = vst [vmem:[#allocation2 + $0x1308] sm:$0xff] %v2050_v20  ;;  %2134 = vxpose.xlu2.b32.cont [14/16] %v750_v25, 128  ;;  %v430_v20 = vld [vmem:[%s5656_s0 + $0xd28] sm:$0xff] }
 0x6fc   :  { %v554_v25 = vld [vmem:[%s5656_s0 + $0x1108] sm:$0xff] }
 0x6fd   :  { %2104 = vxpose.xlu1.b32.end [16/16] %v799_v46, 128 }
 0x6fe   :  { %v1988_v26 = vpop.trf.xlu0 }
 0x6ff   :  { %2988 = vst [vmem:[#allocation2 + $0x1218] sm:$0xff] %v1988_v26 }
 0x701   :  { %v2020_v49 = vpop.trf.xlu1 }
 0x702   :  { %2153 = vxpose.xlu0.b32.start [1/16] %v426_v27, 128  ;;  %3004 = vst [vmem:[#allocation2 + $0x1298] sm:$0xff] %v2020_v49  ;;  %v2051_v26 = vpop.trf.xlu2  ;;  %v453_v49 = vld [vmem:[%s5656_s0 + $0xde0] sm:$0xff] }
 0x703   :  { %3019 = vst [vmem:[#allocation2 + $0x1310] sm:$0xff] %v2051_v26  ;;  %2135 = vxpose.xlu2.b32.cont [15/16] %v775_v31, 128  ;;  %v455_v26 = vld [vmem:[%s5656_s0 + $0xdf0] sm:$0xff] }
 0x704   :  { %v579_v31 = vld [vmem:[%s5656_s0 + $0x11d0] sm:$0xff] }
 0x705   :  { %2185 = vxpose.xlu1.b32.start [1/16] %v427_v52, 128 }
 0x706   :  { %v1989_v32 = vpop.trf.xlu0 }
 0x707   :  { %2989 = vst [vmem:[#allocation2 + $0x1220] sm:$0xff] %v1989_v32 }
 0x709   :  { %v2021_v55 = vpop.trf.xlu1 }
 0x70a   :  { %2154 = vxpose.xlu0.b32.cont [2/16] %v451_v33, 128  ;;  %3005 = vst [vmem:[#allocation2 + $0x12a0] sm:$0xff] %v2021_v55  ;;  %v2052_v32 = vpop.trf.xlu2  ;;  %v478_v55 = vld [vmem:[%s5656_s0 + $0xea8] sm:$0xff] }
 0x70b   :  { %3020 = vst [vmem:[#allocation2 + $0x1318] sm:$0xff] %v2052_v32  ;;  %2136 = vxpose.xlu2.b32.end [16/16] %v800_v37, 128  ;;  %v480_v32 = vld [vmem:[%s5656_s0 + $0xeb8] sm:$0xff] }
 0x70c   :  { %v604_v37 = vld [vmem:[%s5656_s0 + $0x1298] sm:$0xff] }
 0x70d   :  { %2186 = vxpose.xlu1.b32.cont [2/16] %v452_v58, 128 }
 0x70e   :  { %v1990_v38 = vpop.trf.xlu0 }
 0x70f   :  { %2990 = vst [vmem:[#allocation2 + $0x1228] sm:$0xff] %v1990_v38 }
 0x711   :  { %v2022_v61 = vpop.trf.xlu1 }
 0x712   :  { %2155 = vxpose.xlu0.b32.cont [3/16] %v476_v39, 128  ;;  %3006 = vst [vmem:[#allocation2 + $0x12a8] sm:$0xff] %v2022_v61  ;;  %v2053_v38 = vpop.trf.xlu2  ;;  %v503_v61 = vld [vmem:[%s5656_s0 + $0xf70] sm:$0xff] }
 0x713   :  { %3021 = vst [vmem:[#allocation2 + $0x1320] sm:$0xff] %v2053_v38  ;;  %2217 = vxpose.xlu2.b32.start [1/16] %v428_v43, 128  ;;  %v505_v38 = vld [vmem:[%s5656_s0 + $0xf80] sm:$0xff] }
 0x714   :  { %v629_v43 = vld [vmem:[%s5656_s0 + $0x1360] sm:$0xff] }
 0x715   :  { %2187 = vxpose.xlu1.b32.cont [3/16] %v477_v0, 128 }
 0x716   :  { %v1991_v44 = vpop.trf.xlu0 }
 0x717   :  { %2991 = vst [vmem:[#allocation2 + $0x1230] sm:$0xff] %v1991_v44 }
 0x719   :  { %v2023_v3 = vpop.trf.xlu1 }
 0x71a   :  { %2156 = vxpose.xlu0.b32.cont [4/16] %v501_v45, 128  ;;  %3007 = vst [vmem:[#allocation2 + $0x12b0] sm:$0xff] %v2023_v3  ;;  %v2054_v44 = vpop.trf.xlu2  ;;  %v528_v3 = vld [vmem:[%s5656_s0 + $0x1038] sm:$0xff] }
 0x71b   :  { %3022 = vst [vmem:[#allocation2 + $0x1328] sm:$0xff] %v2054_v44  ;;  %2218 = vxpose.xlu2.b32.cont [2/16] %v453_v49, 128  ;;  %v530_v44 = vld [vmem:[%s5656_s0 + $0x1048] sm:$0xff] }
 0x71c   :  { %v654_v49 = vld [vmem:[%s5656_s0 + $0x1428] sm:$0xff] }
 0x71d   :  { %2188 = vxpose.xlu1.b32.cont [4/16] %v502_v6, 128 }
 0x71e   :  { %v1992_v50 = vpop.trf.xlu0 }
 0x71f   :  { %2992 = vst [vmem:[#allocation2 + $0x1238] sm:$0xff] %v1992_v50 }
 0x721   :  { %v2024_v9 = vpop.trf.xlu1 }
 0x722   :  { %2157 = vxpose.xlu0.b32.cont [5/16] %v526_v51, 128  ;;  %3008 = vst [vmem:[#allocation2 + $0x12b8] sm:$0xff] %v2024_v9  ;;  %v2055_v50 = vpop.trf.xlu2  ;;  %v553_v9 = vld [vmem:[%s5656_s0 + $0x1100] sm:$0xff] }
 0x723   :  { %3023 = vst [vmem:[#allocation2 + $0x1330] sm:$0xff] %v2055_v50  ;;  %2219 = vxpose.xlu2.b32.cont [3/16] %v478_v55, 128  ;;  %v555_v50 = vld [vmem:[%s5656_s0 + $0x1110] sm:$0xff] }
 0x724   :  { %v679_v55 = vld [vmem:[%s5656_s0 + $0x14f0] sm:$0xff] }
 0x725   :  { %2189 = vxpose.xlu1.b32.cont [5/16] %v527_v12, 128 }
 0x726   :  { %v2073_v56 = vpop.trf.xlu0 }
 0x727   :  { %3025 = vst [vmem:[#allocation2 + $0x1340] sm:$0xff] %v2073_v56 }
 0x729   :  { %v2105_v15 = vpop.trf.xlu1 }
 0x72a   :  { %2158 = vxpose.xlu0.b32.cont [6/16] %v551_v57, 128  ;;  %3041 = vst [vmem:[#allocation2 + $0x13c0] sm:$0xff] %v2105_v15  ;;  %v2056_v56 = vpop.trf.xlu2  ;;  %v578_v15 = vld [vmem:[%s5656_s0 + $0x11c8] sm:$0xff] }
 0x72b   :  { %3024 = vst [vmem:[#allocation2 + $0x1338] sm:$0xff] %v2056_v56  ;;  %2220 = vxpose.xlu2.b32.cont [4/16] %v503_v61, 128  ;;  %v580_v56 = vld [vmem:[%s5656_s0 + $0x11d8] sm:$0xff] }
 0x72c   :  { %v704_v61 = vld [vmem:[%s5656_s0 + $0x15b8] sm:$0xff] }
 0x72d   :  { %2190 = vxpose.xlu1.b32.cont [6/16] %v552_v18, 128 }
 0x72e   :  { %v2074_v62 = vpop.trf.xlu0 }
 0x72f   :  { %3026 = vst [vmem:[#allocation2 + $0x1348] sm:$0xff] %v2074_v62 }
 0x731   :  { %v2106_v21 = vpop.trf.xlu1 }
 0x732   :  { %2159 = vxpose.xlu0.b32.cont [7/16] %v576_v63, 128  ;;  %3042 = vst [vmem:[#allocation2 + $0x13c8] sm:$0xff] %v2106_v21  ;;  %v2137_v62 = vpop.trf.xlu2  ;;  %v603_v21 = vld [vmem:[%s5656_s0 + $0x1290] sm:$0xff] }
 0x733   :  { %3057 = vst [vmem:[#allocation2 + $0x1440] sm:$0xff] %v2137_v62  ;;  %2221 = vxpose.xlu2.b32.cont [5/16] %v528_v3, 128  ;;  %v605_v62 = vld [vmem:[%s5656_s0 + $0x12a0] sm:$0xff] }
 0x734   :  { %v729_v3 = vld [vmem:[%s5656_s0 + $0x1680] sm:$0xff] }
 0x735   :  { %2191 = vxpose.xlu1.b32.cont [7/16] %v577_v24, 128 }
 0x736   :  { %v2075_v4 = vpop.trf.xlu0 }
 0x737   :  { %3027 = vst [vmem:[#allocation2 + $0x1350] sm:$0xff] %v2075_v4 }
 0x739   :  { %v2107_v27 = vpop.trf.xlu1 }
 0x73a   :  { %2160 = vxpose.xlu0.b32.cont [8/16] %v601_v5, 128  ;;  %3043 = vst [vmem:[#allocation2 + $0x13d0] sm:$0xff] %v2107_v27  ;;  %v2138_v4 = vpop.trf.xlu2  ;;  %v628_v27 = vld [vmem:[%s5656_s0 + $0x1358] sm:$0xff] }
 0x73b   :  { %3058 = vst [vmem:[#allocation2 + $0x1448] sm:$0xff] %v2138_v4  ;;  %2222 = vxpose.xlu2.b32.cont [6/16] %v553_v9, 128  ;;  %v630_v4 = vld [vmem:[%s5656_s0 + $0x1368] sm:$0xff] }
 0x73c   :  { %v754_v9 = vld [vmem:[%s5656_s0 + $0x1748] sm:$0xff] }
 0x73d   :  { %2192 = vxpose.xlu1.b32.cont [8/16] %v602_v30, 128 }
 0x73e   :  { %v2076_v10 = vpop.trf.xlu0 }
 0x73f   :  { %3028 = vst [vmem:[#allocation2 + $0x1358] sm:$0xff] %v2076_v10 }
 0x741   :  { %v2108_v33 = vpop.trf.xlu1 }
 0x742   :  { %2161 = vxpose.xlu0.b32.cont [9/16] %v626_v11, 128  ;;  %3044 = vst [vmem:[#allocation2 + $0x13d8] sm:$0xff] %v2108_v33  ;;  %v2139_v10 = vpop.trf.xlu2  ;;  %v653_v33 = vld [vmem:[%s5656_s0 + $0x1420] sm:$0xff] }
 0x743   :  { %3059 = vst [vmem:[#allocation2 + $0x1450] sm:$0xff] %v2139_v10  ;;  %2223 = vxpose.xlu2.b32.cont [7/16] %v578_v15, 128  ;;  %v655_v10 = vld [vmem:[%s5656_s0 + $0x1430] sm:$0xff] }
 0x744   :  { %v779_v15 = vld [vmem:[%s5656_s0 + $0x1810] sm:$0xff] }
 0x745   :  { %2193 = vxpose.xlu1.b32.cont [9/16] %v627_v36, 128 }
 0x746   :  { %v2077_v16 = vpop.trf.xlu0 }
 0x747   :  { %3029 = vst [vmem:[#allocation2 + $0x1360] sm:$0xff] %v2077_v16 }
 0x749   :  { %v2109_v39 = vpop.trf.xlu1 }
 0x74a   :  { %2162 = vxpose.xlu0.b32.cont [10/16] %v651_v17, 128  ;;  %3045 = vst [vmem:[#allocation2 + $0x13e0] sm:$0xff] %v2109_v39  ;;  %v2140_v16 = vpop.trf.xlu2  ;;  %v678_v39 = vld [vmem:[%s5656_s0 + $0x14e8] sm:$0xff] }
 0x74b   :  { %3060 = vst [vmem:[#allocation2 + $0x1458] sm:$0xff] %v2140_v16  ;;  %2224 = vxpose.xlu2.b32.cont [8/16] %v603_v21, 128  ;;  %v680_v16 = vld [vmem:[%s5656_s0 + $0x14f8] sm:$0xff] }
 0x74c   :  { %v804_v21 = vld [vmem:[%s5656_s0 + $0x18d8] sm:$0xff] }
 0x74d   :  { %2194 = vxpose.xlu1.b32.cont [10/16] %v652_v42, 128 }
 0x74e   :  { %v2078_v22 = vpop.trf.xlu0 }
 0x74f   :  { %3030 = vst [vmem:[#allocation2 + $0x1368] sm:$0xff] %v2078_v22 }
 0x751   :  { %v2110_v45 = vpop.trf.xlu1 }
 0x752   :  { %2163 = vxpose.xlu0.b32.cont [11/16] %v676_v23, 128  ;;  %3046 = vst [vmem:[#allocation2 + $0x13e8] sm:$0xff] %v2110_v45  ;;  %v2141_v22 = vpop.trf.xlu2  ;;  %v703_v45 = vld [vmem:[%s5656_s0 + $0x15b0] sm:$0xff] }
 0x753   :  { %3061 = vst [vmem:[#allocation2 + $0x1460] sm:$0xff] %v2141_v22  ;;  %2225 = vxpose.xlu2.b32.cont [9/16] %v628_v27, 128  ;;  %v705_v22 = vld [vmem:[%s5656_s0 + $0x15c0] sm:$0xff]  ;;  %v432_v27 = vld [vmem:[%s5656_s0 + $0xd38] sm:$0xff] }
 0x755   :  { %2195 = vxpose.xlu1.b32.cont [11/16] %v677_v48, 128 }
 0x756   :  { %v2079_v28 = vpop.trf.xlu0 }
 0x757   :  { %3031 = vst [vmem:[#allocation2 + $0x1370] sm:$0xff] %v2079_v28 }
 0x759   :  { %v2111_v51 = vpop.trf.xlu1 }
 0x75a   :  { %2164 = vxpose.xlu0.b32.cont [12/16] %v701_v29, 128  ;;  %3047 = vst [vmem:[#allocation2 + $0x13f0] sm:$0xff] %v2111_v51  ;;  %v2142_v28 = vpop.trf.xlu2  ;;  %v728_v51 = vld [vmem:[%s5656_s0 + $0x1678] sm:$0xff] }
 0x75b   :  { %3062 = vst [vmem:[#allocation2 + $0x1468] sm:$0xff] %v2142_v28  ;;  %2226 = vxpose.xlu2.b32.cont [10/16] %v653_v33, 128  ;;  %v730_v28 = vld [vmem:[%s5656_s0 + $0x1688] sm:$0xff]  ;;  %v457_v33 = vld [vmem:[%s5656_s0 + $0xe00] sm:$0xff] }
 0x75d   :  { %2196 = vxpose.xlu1.b32.cont [12/16] %v702_v54, 128 }
 0x75e   :  { %v2080_v34 = vpop.trf.xlu0 }
 0x75f   :  { %3032 = vst [vmem:[#allocation2 + $0x1378] sm:$0xff] %v2080_v34 }
 0x761   :  { %v2112_v57 = vpop.trf.xlu1 }
 0x762   :  { %2165 = vxpose.xlu0.b32.cont [13/16] %v726_v35, 128  ;;  %3048 = vst [vmem:[#allocation2 + $0x13f8] sm:$0xff] %v2112_v57  ;;  %v2143_v34 = vpop.trf.xlu2  ;;  %v753_v57 = vld [vmem:[%s5656_s0 + $0x1740] sm:$0xff] }
 0x763   :  { %3063 = vst [vmem:[#allocation2 + $0x1470] sm:$0xff] %v2143_v34  ;;  %2227 = vxpose.xlu2.b32.cont [11/16] %v678_v39, 128  ;;  %v755_v34 = vld [vmem:[%s5656_s0 + $0x1750] sm:$0xff]  ;;  %v482_v39 = vld [vmem:[%s5656_s0 + $0xec8] sm:$0xff] }
 0x765   :  { %2197 = vxpose.xlu1.b32.cont [13/16] %v727_v60, 128 }
 0x766   :  { %v2081_v40 = vpop.trf.xlu0 }
 0x767   :  { %3033 = vst [vmem:[#allocation2 + $0x1380] sm:$0xff] %v2081_v40 }
 0x769   :  { %v2113_v63 = vpop.trf.xlu1 }
 0x76a   :  { %2166 = vxpose.xlu0.b32.cont [14/16] %v751_v41, 128  ;;  %3049 = vst [vmem:[#allocation2 + $0x1400] sm:$0xff] %v2113_v63  ;;  %v2144_v40 = vpop.trf.xlu2  ;;  %v778_v63 = vld [vmem:[%s5656_s0 + $0x1808] sm:$0xff] }
 0x76b   :  { %3064 = vst [vmem:[#allocation2 + $0x1478] sm:$0xff] %v2144_v40  ;;  %2228 = vxpose.xlu2.b32.cont [12/16] %v703_v45, 128  ;;  %v780_v40 = vld [vmem:[%s5656_s0 + $0x1818] sm:$0xff]  ;;  %v507_v45 = vld [vmem:[%s5656_s0 + $0xf90] sm:$0xff] }
 0x76d   :  { %2198 = vxpose.xlu1.b32.cont [14/16] %v752_v2, 128 }
 0x76e   :  { %v2082_v46 = vpop.trf.xlu0 }
 0x76f   :  { %3034 = vst [vmem:[#allocation2 + $0x1388] sm:$0xff] %v2082_v46 }
 0x771   :  { %v2114_v5 = vpop.trf.xlu1 }
 0x772   :  { %2167 = vxpose.xlu0.b32.cont [15/16] %v776_v47, 128  ;;  %3050 = vst [vmem:[#allocation2 + $0x1408] sm:$0xff] %v2114_v5  ;;  %v2145_v46 = vpop.trf.xlu2  ;;  %v803_v5 = vld [vmem:[%s5656_s0 + $0x18d0] sm:$0xff] }
 0x773   :  { %3065 = vst [vmem:[#allocation2 + $0x1480] sm:$0xff] %v2145_v46  ;;  %2229 = vxpose.xlu2.b32.cont [13/16] %v728_v51, 128  ;;  %v805_v46 = vld [vmem:[%s5656_s0 + $0x18e0] sm:$0xff]  ;;  %v532_v51 = vld [vmem:[%s5656_s0 + $0x1058] sm:$0xff] }
 0x775   :  { %2199 = vxpose.xlu1.b32.cont [15/16] %v777_v8, 128 }
 0x776   :  { %v2083_v52 = vpop.trf.xlu0 }
 0x777   :  { %3035 = vst [vmem:[#allocation2 + $0x1390] sm:$0xff] %v2083_v52 }
 0x779   :  { %v2115_v11 = vpop.trf.xlu1 }
 0x77a   :  { %2168 = vxpose.xlu0.b32.end [16/16] %v801_v53, 128  ;;  %3051 = vst [vmem:[#allocation2 + $0x1410] sm:$0xff] %v2115_v11  ;;  %v2146_v52 = vpop.trf.xlu2  ;;  %v431_v11 = vld [vmem:[%s5656_s0 + $0xd30] sm:$0xff] }
 0x77b   :  { %3066 = vst [vmem:[#allocation2 + $0x1488] sm:$0xff] %v2146_v52  ;;  %2230 = vxpose.xlu2.b32.cont [14/16] %v753_v57, 128  ;;  %v433_v52 = vld [vmem:[%s5656_s0 + $0xd40] sm:$0xff] }
 0x77c   :  { %v557_v57 = vld [vmem:[%s5656_s0 + $0x1120] sm:$0xff] }
 0x77d   :  { %2200 = vxpose.xlu1.b32.end [16/16] %v802_v14, 128 }
 0x77e   :  { %v2084_v58 = vpop.trf.xlu0 }
 0x77f   :  { %3036 = vst [vmem:[#allocation2 + $0x1398] sm:$0xff] %v2084_v58 }
 0x781   :  { %v2116_v17 = vpop.trf.xlu1 }
 0x782   :  { %2249 = vxpose.xlu0.b32.start [1/16] %v429_v59, 128  ;;  %3052 = vst [vmem:[#allocation2 + $0x1418] sm:$0xff] %v2116_v17  ;;  %v2147_v58 = vpop.trf.xlu2  ;;  %v456_v17 = vld [vmem:[%s5656_s0 + $0xdf8] sm:$0xff] }
 0x783   :  { %3067 = vst [vmem:[#allocation2 + $0x1490] sm:$0xff] %v2147_v58  ;;  %2231 = vxpose.xlu2.b32.cont [15/16] %v778_v63, 128  ;;  %v458_v58 = vld [vmem:[%s5656_s0 + $0xe08] sm:$0xff] }
 0x784   :  { %v582_v63 = vld [vmem:[%s5656_s0 + $0x11e8] sm:$0xff] }
 0x785   :  { %2281 = vxpose.xlu1.b32.start [1/16] %v430_v20, 128 }
 0x786   :  { %v2085_v0 = vpop.trf.xlu0 }
 0x787   :  { %3037 = vst [vmem:[#allocation2 + $0x13a0] sm:$0xff] %v2085_v0 }
 0x789   :  { %v2117_v23 = vpop.trf.xlu1 }
 0x78a   :  { %2250 = vxpose.xlu0.b32.cont [2/16] %v454_v1, 128  ;;  %3053 = vst [vmem:[#allocation2 + $0x1420] sm:$0xff] %v2117_v23  ;;  %v2148_v0 = vpop.trf.xlu2  ;;  %v481_v23 = vld [vmem:[%s5656_s0 + $0xec0] sm:$0xff] }
 0x78b   :  { %3068 = vst [vmem:[#allocation2 + $0x1498] sm:$0xff] %v2148_v0  ;;  %2232 = vxpose.xlu2.b32.end [16/16] %v803_v5, 128  ;;  %v483_v0 = vld [vmem:[%s5656_s0 + $0xed0] sm:$0xff] }
 0x78c   :  { %v607_v5 = vld [vmem:[%s5656_s0 + $0x12b0] sm:$0xff] }
 0x78d   :  { %2282 = vxpose.xlu1.b32.cont [2/16] %v455_v26, 128 }
 0x78e   :  { %v2086_v6 = vpop.trf.xlu0 }
 0x78f   :  { %3038 = vst [vmem:[#allocation2 + $0x13a8] sm:$0xff] %v2086_v6 }
 0x791   :  { %v2118_v29 = vpop.trf.xlu1 }
 0x792   :  { %2251 = vxpose.xlu0.b32.cont [3/16] %v479_v7, 128  ;;  %3054 = vst [vmem:[#allocation2 + $0x1428] sm:$0xff] %v2118_v29  ;;  %v2149_v6 = vpop.trf.xlu2  ;;  %v506_v29 = vld [vmem:[%s5656_s0 + $0xf88] sm:$0xff] }
 0x793   :  { %3069 = vst [vmem:[#allocation2 + $0x14a0] sm:$0xff] %v2149_v6  ;;  %2313 = vxpose.xlu2.b32.start [1/16] %v431_v11, 128  ;;  %v508_v6 = vld [vmem:[%s5656_s0 + $0xf98] sm:$0xff] }
 0x794   :  { %v632_v11 = vld [vmem:[%s5656_s0 + $0x1378] sm:$0xff] }
 0x795   :  { %2283 = vxpose.xlu1.b32.cont [3/16] %v480_v32, 128 }
 0x796   :  { %v2087_v12 = vpop.trf.xlu0 }
 0x797   :  { %3039 = vst [vmem:[#allocation2 + $0x13b0] sm:$0xff] %v2087_v12 }
 0x799   :  { %v2119_v35 = vpop.trf.xlu1 }
 0x79a   :  { %2252 = vxpose.xlu0.b32.cont [4/16] %v504_v13, 128  ;;  %3055 = vst [vmem:[#allocation2 + $0x1430] sm:$0xff] %v2119_v35  ;;  %v2150_v12 = vpop.trf.xlu2  ;;  %v531_v35 = vld [vmem:[%s5656_s0 + $0x1050] sm:$0xff] }
 0x79b   :  { %3070 = vst [vmem:[#allocation2 + $0x14a8] sm:$0xff] %v2150_v12  ;;  %2314 = vxpose.xlu2.b32.cont [2/16] %v456_v17, 128  ;;  %v533_v12 = vld [vmem:[%s5656_s0 + $0x1060] sm:$0xff] }
 0x79c   :  { %v657_v17 = vld [vmem:[%s5656_s0 + $0x1440] sm:$0xff] }
 0x79d   :  { %2284 = vxpose.xlu1.b32.cont [4/16] %v505_v38, 128 }
 0x79e   :  { %v2088_v18 = vpop.trf.xlu0 }
 0x79f   :  { %3040 = vst [vmem:[#allocation2 + $0x13b8] sm:$0xff] %v2088_v18 }
 0x7a1   :  { %v2120_v41 = vpop.trf.xlu1 }
 0x7a2   :  { %2253 = vxpose.xlu0.b32.cont [5/16] %v529_v19, 128  ;;  %3056 = vst [vmem:[#allocation2 + $0x1438] sm:$0xff] %v2120_v41  ;;  %v2151_v18 = vpop.trf.xlu2  ;;  %v556_v41 = vld [vmem:[%s5656_s0 + $0x1118] sm:$0xff] }
 0x7a3   :  { %3071 = vst [vmem:[#allocation2 + $0x14b0] sm:$0xff] %v2151_v18  ;;  %2315 = vxpose.xlu2.b32.cont [3/16] %v481_v23, 128  ;;  %v558_v18 = vld [vmem:[%s5656_s0 + $0x1128] sm:$0xff] }
 0x7a4   :  { %v682_v23 = vld [vmem:[%s5656_s0 + $0x1508] sm:$0xff] }
 0x7a5   :  { %2285 = vxpose.xlu1.b32.cont [5/16] %v530_v44, 128 }
 0x7a6   :  { %v2169_v24 = vpop.trf.xlu0 }
 0x7a7   :  { %3073 = vst [vmem:[#allocation2 + $0x14c0] sm:$0xff] %v2169_v24 }
 0x7a9   :  { %v2201_v47 = vpop.trf.xlu1 }
 0x7aa   :  { %2254 = vxpose.xlu0.b32.cont [6/16] %v554_v25, 128  ;;  %3089 = vst [vmem:[#allocation2 + $0x1540] sm:$0xff] %v2201_v47  ;;  %v2152_v24 = vpop.trf.xlu2  ;;  %v581_v47 = vld [vmem:[%s5656_s0 + $0x11e0] sm:$0xff] }
 0x7ab   :  { %3072 = vst [vmem:[#allocation2 + $0x14b8] sm:$0xff] %v2152_v24  ;;  %2316 = vxpose.xlu2.b32.cont [4/16] %v506_v29, 128  ;;  %v583_v24 = vld [vmem:[%s5656_s0 + $0x11f0] sm:$0xff] }
 0x7ac   :  { %v707_v29 = vld [vmem:[%s5656_s0 + $0x15d0] sm:$0xff] }
 0x7ad   :  { %2286 = vxpose.xlu1.b32.cont [6/16] %v555_v50, 128 }
 0x7ae   :  { %v2170_v30 = vpop.trf.xlu0 }
 0x7af   :  { %3074 = vst [vmem:[#allocation2 + $0x14c8] sm:$0xff] %v2170_v30 }
 0x7b1   :  { %v2202_v53 = vpop.trf.xlu1 }
 0x7b2   :  { %2255 = vxpose.xlu0.b32.cont [7/16] %v579_v31, 128  ;;  %3090 = vst [vmem:[#allocation2 + $0x1548] sm:$0xff] %v2202_v53  ;;  %v2233_v30 = vpop.trf.xlu2  ;;  %v606_v53 = vld [vmem:[%s5656_s0 + $0x12a8] sm:$0xff] }
 0x7b3   :  { %3105 = vst [vmem:[#allocation2 + $0x15c0] sm:$0xff] %v2233_v30  ;;  %2317 = vxpose.xlu2.b32.cont [5/16] %v531_v35, 128  ;;  %v608_v30 = vld [vmem:[%s5656_s0 + $0x12b8] sm:$0xff] }
 0x7b4   :  { %v732_v35 = vld [vmem:[%s5656_s0 + $0x1698] sm:$0xff] }
 0x7b5   :  { %2287 = vxpose.xlu1.b32.cont [7/16] %v580_v56, 128 }
 0x7b6   :  { %v2171_v36 = vpop.trf.xlu0 }
 0x7b7   :  { %3075 = vst [vmem:[#allocation2 + $0x14d0] sm:$0xff] %v2171_v36 }
 0x7b9   :  { %v2203_v59 = vpop.trf.xlu1 }
 0x7ba   :  { %2256 = vxpose.xlu0.b32.cont [8/16] %v604_v37, 128  ;;  %3091 = vst [vmem:[#allocation2 + $0x1550] sm:$0xff] %v2203_v59  ;;  %v2234_v36 = vpop.trf.xlu2  ;;  %v631_v59 = vld [vmem:[%s5656_s0 + $0x1370] sm:$0xff] }
 0x7bb   :  { %3106 = vst [vmem:[#allocation2 + $0x15c8] sm:$0xff] %v2234_v36  ;;  %2318 = vxpose.xlu2.b32.cont [6/16] %v556_v41, 128  ;;  %v633_v36 = vld [vmem:[%s5656_s0 + $0x1380] sm:$0xff] }
 0x7bc   :  { %v757_v41 = vld [vmem:[%s5656_s0 + $0x1760] sm:$0xff] }
 0x7bd   :  { %2288 = vxpose.xlu1.b32.cont [8/16] %v605_v62, 128 }
 0x7be   :  { %v2172_v42 = vpop.trf.xlu0 }
 0x7bf   :  { %3076 = vst [vmem:[#allocation2 + $0x14d8] sm:$0xff] %v2172_v42 }
 0x7c1   :  { %v2204_v1 = vpop.trf.xlu1 }
 0x7c2   :  { %2257 = vxpose.xlu0.b32.cont [9/16] %v629_v43, 128  ;;  %3092 = vst [vmem:[#allocation2 + $0x1558] sm:$0xff] %v2204_v1  ;;  %v2235_v42 = vpop.trf.xlu2  ;;  %v656_v1 = vld [vmem:[%s5656_s0 + $0x1438] sm:$0xff] }
 0x7c3   :  { %3107 = vst [vmem:[#allocation2 + $0x15d0] sm:$0xff] %v2235_v42  ;;  %2319 = vxpose.xlu2.b32.cont [7/16] %v581_v47, 128  ;;  %v658_v42 = vld [vmem:[%s5656_s0 + $0x1448] sm:$0xff]  ;;  %v683_v47 = vld [vmem:[%s5656_s0 + $0x1510] sm:$0xff] }
 0x7c5   :  { %2289 = vxpose.xlu1.b32.cont [9/16] %v630_v4, 128 }
 0x7c6   :  { %v2173_v48 = vpop.trf.xlu0 }
 0x7c7   :  { %3077 = vst [vmem:[#allocation2 + $0x14e0] sm:$0xff] %v2173_v48 }
 0x7c9   :  { %v2205_v7 = vpop.trf.xlu1 }
 0x7ca   :  { %2258 = vxpose.xlu0.b32.cont [10/16] %v654_v49, 128  ;;  %3093 = vst [vmem:[#allocation2 + $0x1560] sm:$0xff] %v2205_v7  ;;  %v2236_v48 = vpop.trf.xlu2  ;;  %v681_v7 = vld [vmem:[%s5656_s0 + $0x1500] sm:$0xff] }
 0x7cb   :  { %3108 = vst [vmem:[#allocation2 + $0x15d8] sm:$0xff] %v2236_v48  ;;  %2320 = vxpose.xlu2.b32.cont [8/16] %v606_v53, 128 }
 0x7cd   :  { %2290 = vxpose.xlu1.b32.cont [10/16] %v655_v10, 128 }
 0x7ce   :  { %v2174_v54 = vpop.trf.xlu0 }
 0x7cf   :  { %3078 = vst [vmem:[#allocation2 + $0x14e8] sm:$0xff] %v2174_v54 }
 0x7d1   :  { %v2206_v13 = vpop.trf.xlu1 }
 0x7d2   :  { %2259 = vxpose.xlu0.b32.cont [11/16] %v679_v55, 128  ;;  %3094 = vst [vmem:[#allocation2 + $0x1568] sm:$0xff] %v2206_v13  ;;  %v2237_v54 = vpop.trf.xlu2  ;;  %v706_v13 = vld [vmem:[%s5656_s0 + $0x15c8] sm:$0xff] }
 0x7d3   :  { %3109 = vst [vmem:[#allocation2 + $0x15e0] sm:$0xff] %v2237_v54  ;;  %2321 = vxpose.xlu2.b32.cont [9/16] %v631_v59, 128 }
 0x7d5   :  { %2291 = vxpose.xlu1.b32.cont [11/16] %v680_v16, 128 }
 0x7d6   :  { %v2175_v60 = vpop.trf.xlu0 }
 0x7d7   :  { %3079 = vst [vmem:[#allocation2 + $0x14f0] sm:$0xff] %v2175_v60 }
 0x7d9   :  { %v2207_v19 = vpop.trf.xlu1 }
 0x7da   :  { %2260 = vxpose.xlu0.b32.cont [12/16] %v704_v61, 128  ;;  %3095 = vst [vmem:[#allocation2 + $0x1570] sm:$0xff] %v2207_v19  ;;  %v2238_v60 = vpop.trf.xlu2  ;;  %v731_v19 = vld [vmem:[%s5656_s0 + $0x1690] sm:$0xff] }
 0x7db   :  { %3110 = vst [vmem:[#allocation2 + $0x15e8] sm:$0xff] %v2238_v60  ;;  %2322 = vxpose.xlu2.b32.cont [10/16] %v656_v1, 128  ;;  %v758_v60 = vld [vmem:[%s5656_s0 + $0x1768] sm:$0xff] }
 0x7dd   :  { %2292 = vxpose.xlu1.b32.cont [12/16] %v705_v22, 128 }
 0x7de   :  { %v2176_v2 = vpop.trf.xlu0 }
 0x7df   :  { %3080 = vst [vmem:[#allocation2 + $0x14f8] sm:$0xff] %v2176_v2 }
 0x7e1   :  { %v2208_v25 = vpop.trf.xlu1 }
 0x7e2   :  { %2261 = vxpose.xlu0.b32.cont [13/16] %v729_v3, 128  ;;  %3096 = vst [vmem:[#allocation2 + $0x1578] sm:$0xff] %v2208_v25  ;;  %v2239_v2 = vpop.trf.xlu2  ;;  %v756_v25 = vld [vmem:[%s5656_s0 + $0x1758] sm:$0xff] }
 0x7e3   :  { %3111 = vst [vmem:[#allocation2 + $0x15f0] sm:$0xff] %v2239_v2  ;;  %2323 = vxpose.xlu2.b32.cont [11/16] %v681_v7, 128 }
 0x7e5   :  { %2293 = vxpose.xlu1.b32.cont [13/16] %v730_v28, 128 }
 0x7e6   :  { %v2177_v8 = vpop.trf.xlu0 }
 0x7e7   :  { %3081 = vst [vmem:[#allocation2 + $0x1500] sm:$0xff] %v2177_v8 }
 0x7e9   :  { %v2209_v31 = vpop.trf.xlu1 }
 0x7ea   :  { %2262 = vxpose.xlu0.b32.cont [14/16] %v754_v9, 128  ;;  %3097 = vst [vmem:[#allocation2 + $0x1580] sm:$0xff] %v2209_v31  ;;  %v2240_v8 = vpop.trf.xlu2  ;;  %v781_v31 = vld [vmem:[%s5656_s0 + $0x1820] sm:$0xff] }
 0x7eb   :  { %3112 = vst [vmem:[#allocation2 + $0x15f8] sm:$0xff] %v2240_v8  ;;  %2324 = vxpose.xlu2.b32.cont [12/16] %v706_v13, 128 }
 0x7ed   :  { %2294 = vxpose.xlu1.b32.cont [14/16] %v755_v34, 128 }
 0x7ee   :  { %v2178_v14 = vpop.trf.xlu0 }
 0x7ef   :  { %3082 = vst [vmem:[#allocation2 + $0x1508] sm:$0xff] %v2178_v14 }
 0x7f1   :  { %v2210_v37 = vpop.trf.xlu1 }
 0x7f2   :  { %2263 = vxpose.xlu0.b32.cont [15/16] %v779_v15, 128  ;;  %3098 = vst [vmem:[#allocation2 + $0x1588] sm:$0xff] %v2210_v37  ;;  %v2241_v14 = vpop.trf.xlu2  ;;  %v806_v37 = vld [vmem:[%s5656_s0 + $0x18e8] sm:$0xff] }
 0x7f3   :  { %3113 = vst [vmem:[#allocation2 + $0x1600] sm:$0xff] %v2241_v14  ;;  %2325 = vxpose.xlu2.b32.cont [13/16] %v731_v19, 128 }
 0x7f5   :  { %2295 = vxpose.xlu1.b32.cont [15/16] %v780_v40, 128 }
 0x7f6   :  { %v2179_v20 = vpop.trf.xlu0 }
 0x7f7   :  { %3083 = vst [vmem:[#allocation2 + $0x1510] sm:$0xff] %v2179_v20 }
 0x7f9   :  { %v2211_v43 = vpop.trf.xlu1 }
 0x7fa   :  { %2264 = vxpose.xlu0.b32.end [16/16] %v804_v21, 128  ;;  %3099 = vst [vmem:[#allocation2 + $0x1590] sm:$0xff] %v2211_v43  ;;  %v2242_v20 = vpop.trf.xlu2 }
 0x7fb   :  { %3114 = vst [vmem:[#allocation2 + $0x1608] sm:$0xff] %v2242_v20  ;;  %2326 = vxpose.xlu2.b32.cont [14/16] %v756_v25, 128 }
 0x7fd   :  { %2296 = vxpose.xlu1.b32.end [16/16] %v805_v46, 128  ;;  %v782_v46 = vld [vmem:[%s5656_s0 + $0x1828] sm:$0xff] }
 0x7fe   :  { %v2180_v26 = vpop.trf.xlu0 }
 0x7ff   :  { %3084 = vst [vmem:[#allocation2 + $0x1518] sm:$0xff] %v2180_v26 }
 0x801   :  { %v2212_v49 = vpop.trf.xlu1 }
 0x802   :  { %2345 = vxpose.xlu0.b32.start [1/16] %v432_v27, 128  ;;  %3100 = vst [vmem:[#allocation2 + $0x1598] sm:$0xff] %v2212_v49  ;;  %v2243_v26 = vpop.trf.xlu2 }
 0x803   :  { %3115 = vst [vmem:[#allocation2 + $0x1610] sm:$0xff] %v2243_v26  ;;  %2327 = vxpose.xlu2.b32.cont [15/16] %v781_v31, 128 }
 0x805   :  { %2377 = vxpose.xlu1.b32.start [1/16] (narrow) %v433_v52, 64  ;;  %v708_v52 = vld [vmem:[%s5656_s0 + $0x15d8] sm:$0xff] }
 0x806   :  { %v2181_v32 = vpop.trf.xlu0 }
 0x807   :  { %3085 = vst [vmem:[#allocation2 + $0x1520] sm:$0xff] %v2181_v32 }
 0x809   :  { %v2213_v55 = vpop.trf.xlu1 }
 0x80a   :  { %2346 = vxpose.xlu0.b32.cont [2/16] %v457_v33, 128  ;;  %3101 = vst [vmem:[#allocation2 + $0x15a0] sm:$0xff] %v2213_v55  ;;  %v2244_v32 = vpop.trf.xlu2 }
 0x80b   :  { %3116 = vst [vmem:[#allocation2 + $0x1618] sm:$0xff] %v2244_v32  ;;  %2328 = vxpose.xlu2.b32.end [16/16] %v806_v37, 128 }
 0x80d   :  { %2378 = vxpose.xlu1.b32.cont [2/16] (narrow) %v458_v58, 64 }
 0x80e   :  { %v2182_v38 = vpop.trf.xlu0 }
 0x80f   :  { %3086 = vst [vmem:[#allocation2 + $0x1528] sm:$0xff] %v2182_v38 }
 0x811   :  { %v2214_v61 = vpop.trf.xlu1 }
 0x812   :  { %2347 = vxpose.xlu0.b32.cont [3/16] %v482_v39, 128  ;;  %3102 = vst [vmem:[#allocation2 + $0x15a8] sm:$0xff] %v2214_v61  ;;  %v2245_v38 = vpop.trf.xlu2 }
 0x813   :  { %3117 = vst [vmem:[#allocation2 + $0x1620] sm:$0xff] %v2245_v38 }
 0x815   :  { %2379 = vxpose.xlu1.b32.cont [3/16] (narrow) %v483_v0, 64  ;;  %v783_v0 = vld [vmem:[%s5656_s0 + $0x1830] sm:$0xff] }
 0x816   :  { %v2183_v44 = vpop.trf.xlu0 }
 0x817   :  { %3087 = vst [vmem:[#allocation2 + $0x1530] sm:$0xff] %v2183_v44 }
 0x819   :  { %v2215_v3 = vpop.trf.xlu1 }
 0x81a   :  { %2348 = vxpose.xlu0.b32.cont [4/16] %v507_v45, 128  ;;  %3103 = vst [vmem:[#allocation2 + $0x15b0] sm:$0xff] %v2215_v3  ;;  %v2246_v43 = vpop.trf.xlu2 }
 0x81b   :  { %3118 = vst [vmem:[#allocation2 + $0x1628] sm:$0xff] %v2246_v43 }
 0x81d   :  { %2380 = vxpose.xlu1.b32.cont [4/16] (narrow) %v508_v6, 64 }
 0x81e   :  { %v2184_v50 = vpop.trf.xlu0 }
 0x81f   :  { %3088 = vst [vmem:[#allocation2 + $0x1538] sm:$0xff] %v2184_v50 }
 0x821   :  { %v2216_v9 = vpop.trf.xlu1 }
 0x822   :  { %2349 = vxpose.xlu0.b32.cont [5/16] %v532_v51, 128  ;;  %3104 = vst [vmem:[#allocation2 + $0x15b8] sm:$0xff] %v2216_v9  ;;  %v2247_v48 = vpop.trf.xlu2  ;;  %v807_v51 = vld [vmem:[%s5656_s0 + $0x18f0] sm:$0xff] }
 0x823   :  { %3119 = vst [vmem:[#allocation2 + $0x1630] sm:$0xff] %v2247_v48 }
 0x825   :  { %2381 = vxpose.xlu1.b32.cont [5/16] (narrow) %v533_v12, 64 }
 0x826   :  { %v2265_v56 = vpop.trf.xlu0 }
 0x827   :  { %3121 = vst [vmem:[#allocation2 + $0x1640] sm:$0xff] %v2265_v56  ;;  %v733_v56 = vld [vmem:[%s5656_s0 + $0x16a0] sm:$0xff] }
 0x829   :  { %v2297_v15 = vpop.trf.xlu1 }
 0x82a   :  { %2350 = vxpose.xlu0.b32.cont [6/16] %v557_v57, 128  ;;  %3137 = vst [vmem:[#allocation2 + $0x16c0] sm:$0xff] %v2297_v15  ;;  %v2248_v53 = vpop.trf.xlu2 }
 0x82b   :  { %3120 = vst [vmem:[#allocation2 + $0x1638] sm:$0xff] %v2248_v53 }
 0x82d   :  { %2382 = vxpose.xlu1.b32.cont [6/16] (narrow) %v558_v18, 64 }
 0x82e   :  { %v2266_v62 = vpop.trf.xlu0 }
 0x82f   :  { %3122 = vst [vmem:[#allocation2 + $0x1648] sm:$0xff] %v2266_v62 }
 0x831   :  { %v2298_v21 = vpop.trf.xlu1 }
 0x832   :  { %2351 = vxpose.xlu0.b32.cont [7/16] %v582_v63, 128  ;;  %3138 = vst [vmem:[#allocation2 + $0x16c8] sm:$0xff] %v2298_v21  ;;  %v2329_v57 = vpop.trf.xlu2 }
 0x833   :  { %3153 = vst [vmem:[#allocation2 + $0x1740] sm:$0xff] %v2329_v57 }
 0x835   :  { %2383 = vxpose.xlu1.b32.cont [7/16] (narrow) %v583_v24, 64 }
 0x836   :  { %v2267_v4 = vpop.trf.xlu0 }
 0x837   :  { %3123 = vst [vmem:[#allocation2 + $0x1650] sm:$0xff] %v2267_v4  ;;  %v808_v4 = vld [vmem:[%s5656_s0 + $0x18f8] sm:$0xff]  ;;  %s3240_s0 = smov [#allocation2]  }
 0x838   :  { %s3197_s11 = sshll.u32 %s3240_s0, 4  ;;  %s3198_s11 = int_to_ptr.vmem [resolvable:$true] %s3197_s11 }
 0x839   :  { %v2299_v27 = vpop.trf.xlu1 }
 0x83a   :  { %2352 = vxpose.xlu0.b32.cont [8/16] %v607_v5, 128  ;;  %3139 = vst [vmem:[#allocation2 + $0x16d0] sm:$0xff] %v2299_v27  ;;  %v2330_v61 = vpop.trf.xlu2 }
 0x83b   :  { %3154 = vst [vmem:[#allocation2 + $0x1748] sm:$0xff] %v2330_v61 }
 0x83d   :  { %2384 = vxpose.xlu1.b32.cont [8/16] (narrow) %v608_v30, 64 }
 0x83e   :  { %v2268_v10 = vpop.trf.xlu0 }
 0x83f   :  { %3124 = vst [vmem:[#allocation2 + $0x1658] sm:$0xff] %v2268_v10 }
 0x841   :  { %v2300_v33 = vpop.trf.xlu1 }
 0x842   :  { %2353 = vxpose.xlu0.b32.cont [9/16] %v632_v11, 128  ;;  %3140 = vst [vmem:[#allocation2 + $0x16d8] sm:$0xff] %v2300_v33  ;;  %v2331_v1 = vpop.trf.xlu2 }
 0x843   :  { %3155 = vst [vmem:[#allocation2 + $0x1750] sm:$0xff] %v2331_v1 }
 0x845   :  { %2385 = vxpose.xlu1.b32.cont [9/16] (narrow) %v633_v36, 64 }
 0x846   :  { %v2269_v16 = vpop.trf.xlu0 }
 0x847   :  { %3125 = vst [vmem:[#allocation2 + $0x1660] sm:$0xff] %v2269_v16 }
 0x849   :  { %v2301_v39 = vpop.trf.xlu1 }
 0x84a   :  { %2354 = vxpose.xlu0.b32.cont [10/16] %v657_v17, 128  ;;  %3141 = vst [vmem:[#allocation2 + $0x16e0] sm:$0xff] %v2301_v39  ;;  %v2332_v5 = vpop.trf.xlu2 }
 0x84b   :  { %3156 = vst [vmem:[#allocation2 + $0x1758] sm:$0xff] %v2332_v5 }
 0x84d   :  { %2386 = vxpose.xlu1.b32.cont [10/16] (narrow) %v658_v42, 64 }
 0x84e   :  { %v2270_v22 = vpop.trf.xlu0 }
 0x84f   :  { %3126 = vst [vmem:[#allocation2 + $0x1668] sm:$0xff] %v2270_v22 }
 0x851   :  { %v2302_v44 = vpop.trf.xlu1 }
 0x852   :  { %2355 = vxpose.xlu0.b32.cont [11/16] %v682_v23, 128  ;;  %3142 = vst [vmem:[#allocation2 + $0x16e8] sm:$0xff] %v2302_v44  ;;  %v2333_v8 = vpop.trf.xlu2 }
 0x853   :  { %3157 = vst [vmem:[#allocation2 + $0x1760] sm:$0xff] %v2333_v8 }
 0x855   :  { %2387 = vxpose.xlu1.b32.cont [11/16] (narrow) %v683_v47, 64 }
 0x856   :  { %v2271_v28 = vpop.trf.xlu0 }
 0x857   :  { %3127 = vst [vmem:[#allocation2 + $0x1670] sm:$0xff] %v2271_v28 }
 0x859   :  { %v2303_v49 = vpop.trf.xlu1 }
 0x85a   :  { %2356 = vxpose.xlu0.b32.cont [12/16] %v707_v29, 128  ;;  %3143 = vst [vmem:[#allocation2 + $0x16f0] sm:$0xff] %v2303_v49  ;;  %v2334_v11 = vpop.trf.xlu2 }
 0x85b   :  { %3158 = vst [vmem:[#allocation2 + $0x1768] sm:$0xff] %v2334_v11 }
 0x85d   :  { %2388 = vxpose.xlu1.b32.cont [12/16] (narrow) %v708_v52, 64 }
 0x85e   :  { %v2272_v34 = vpop.trf.xlu0 }
 0x85f   :  { %3128 = vst [vmem:[#allocation2 + $0x1678] sm:$0xff] %v2272_v34 }
 0x861   :  { %v2304_v54 = vpop.trf.xlu1 }
 0x862   :  { %2357 = vxpose.xlu0.b32.cont [13/16] %v732_v35, 128  ;;  %3144 = vst [vmem:[#allocation2 + $0x16f8] sm:$0xff] %v2304_v54  ;;  %v2335_v14 = vpop.trf.xlu2 }
 0x863   :  { %3159 = vst [vmem:[#allocation2 + $0x1770] sm:$0xff] %v2335_v14 }
 0x865   :  { %2389 = vxpose.xlu1.b32.cont [13/16] (narrow) %v733_v56, 64 }
 0x866   :  { %v2273_v40 = vpop.trf.xlu0 }
 0x867   :  { %3129 = vst [vmem:[#allocation2 + $0x1680] sm:$0xff] %v2273_v40 }
 0x869   :  { %v2305_v58 = vpop.trf.xlu1 }
 0x86a   :  { %2358 = vxpose.xlu0.b32.cont [14/16] %v757_v41, 128  ;;  %3145 = vst [vmem:[#allocation2 + $0x1700] sm:$0xff] %v2305_v58  ;;  %v2336_v17 = vpop.trf.xlu2 }
 0x86b   :  { %3160 = vst [vmem:[#allocation2 + $0x1778] sm:$0xff] %v2336_v17 }
 0x86d   :  { %2390 = vxpose.xlu1.b32.cont [14/16] (narrow) %v758_v60, 64 }
 0x86e   :  { %v2274_v45 = vpop.trf.xlu0 }
 0x86f   :  { %3130 = vst [vmem:[#allocation2 + $0x1688] sm:$0xff] %v2274_v45 }
 0x871   :  { %v2306_v62 = vpop.trf.xlu1 }
 0x872   :  { %2359 = vxpose.xlu0.b32.cont [15/16] %v782_v46, 128  ;;  %3146 = vst [vmem:[#allocation2 + $0x1708] sm:$0xff] %v2306_v62  ;;  %v2337_v20 = vpop.trf.xlu2 }
 0x873   :  { %3161 = vst [vmem:[#allocation2 + $0x1780] sm:$0xff] %v2337_v20 }
 0x875   :  { %2391 = vxpose.xlu1.b32.cont [15/16] (narrow) %v783_v0, 64 }
 0x876   :  { %v2275_v50 = vpop.trf.xlu0 }
 0x877   :  { %3131 = vst [vmem:[#allocation2 + $0x1690] sm:$0xff] %v2275_v50 }
 0x879   :  { %v2307_v2 = vpop.trf.xlu1 }
 0x87a   :  { %2360 = vxpose.xlu0.b32.end [16/16] %v807_v51, 128  ;;  %3147 = vst [vmem:[#allocation2 + $0x1710] sm:$0xff] %v2307_v2  ;;  %v2338_v23 = vpop.trf.xlu2 }
 0x87b   :  { %3162 = vst [vmem:[#allocation2 + $0x1788] sm:$0xff] %v2338_v23 }
 0x87d   :  { %2392 = vxpose.xlu1.b32.end [16/16] (narrow) %v808_v4, 64 }
 0x87e   :  { %v2276_v55 = vpop.trf.xlu0 }
 0x87f   :  { %3132 = vst [vmem:[#allocation2 + $0x1698] sm:$0xff] %v2276_v55 }
 0x881   :  { %v2308_v6 = vpop.trf.xlu1 }
 0x882   :  { %3148 = vst [vmem:[#allocation2 + $0x1718] sm:$0xff] %v2308_v6  ;;  %v2339_v26 = vpop.trf.xlu2 }
 0x883   :  { %3163 = vst [vmem:[#allocation2 + $0x1790] sm:$0xff] %v2339_v26 }
 0x886   :  { %v2277_v59 = vpop.trf.xlu0 }
 0x887   :  { %3133 = vst [vmem:[#allocation2 + $0x16a0] sm:$0xff] %v2277_v59 }
 0x889   :  { %v2309_v9 = vpop.trf.xlu1 }
 0x88a   :  { %3149 = vst [vmem:[#allocation2 + $0x1720] sm:$0xff] %v2309_v9  ;;  %v2340_v29 = vpop.trf.xlu2 }
 0x88b   :  { %3164 = vst [vmem:[#allocation2 + $0x1798] sm:$0xff] %v2340_v29 }
 0x88e   :  { %v2278_v63 = vpop.trf.xlu0 }
 0x88f   :  { %3134 = vst [vmem:[#allocation2 + $0x16a8] sm:$0xff] %v2278_v63 }
 0x891   :  { %v2310_v12 = vpop.trf.xlu1 }
 0x892   :  { %3150 = vst [vmem:[#allocation2 + $0x1728] sm:$0xff] %v2310_v12  ;;  %v2341_v32 = vpop.trf.xlu2 }
 0x893   :  { %3165 = vst [vmem:[#allocation2 + $0x17a0] sm:$0xff] %v2341_v32 }
 0x896   :  { %v2279_v3 = vpop.trf.xlu0 }
 0x897   :  { %3135 = vst [vmem:[#allocation2 + $0x16b0] sm:$0xff] %v2279_v3 }
 0x899   :  { %v2311_v15 = vpop.trf.xlu1 }
 0x89a   :  { %3151 = vst [vmem:[#allocation2 + $0x1730] sm:$0xff] %v2311_v15  ;;  %v2342_v35 = vpop.trf.xlu2 }
 0x89b   :  { %3166 = vst [vmem:[#allocation2 + $0x17a8] sm:$0xff] %v2342_v35 }
 0x89e   :  { %v2280_v7 = vpop.trf.xlu0 }
 0x89f   :  { %3136 = vst [vmem:[#allocation2 + $0x16b8] sm:$0xff] %v2280_v7 }
 0x8a1   :  { %v2312_v18 = vpop.trf.xlu1 }
 0x8a2   :  { %3152 = vst [vmem:[#allocation2 + $0x1738] sm:$0xff] %v2312_v18  ;;  %v2343_v38 = vpop.trf.xlu2 }
 0x8a3   :  { %3167 = vst [vmem:[#allocation2 + $0x17b0] sm:$0xff] %v2343_v38 }
 0x8a6   :  { %v2361_v10 = vpop.trf.xlu0 }
 0x8a7   :  { %3169 = vst [vmem:[#allocation2 + $0x17c0] sm:$0xff] %v2361_v10 }
 0x8a9   :  { %v2393_v21 = vpop.trf.xlu1 }
 0x8aa   :  { %3185 = vst [vmem:[#allocation2 + $0x1840] sm:$0xff] %v2393_v21  ;;  %v2344_v41 = vpop.trf.xlu2 }
 0x8ab   :  { %3168 = vst [vmem:[#allocation2 + $0x17b8] sm:$0xff] %v2344_v41 }
 0x8ae   :  { %v2362_v13 = vpop.trf.xlu0 }
 0x8af   :  { %3170 = vst [vmem:[#allocation2 + $0x17c8] sm:$0xff] %v2362_v13 }
 0x8b1   :  { %v2394_v24 = vpop.trf.xlu1 }
 0x8b2   :  { %3186 = vst [vmem:[#allocation2 + $0x1848] sm:$0xff] %v2394_v24 }
 0x8b6   :  { %v2363_v16 = vpop.trf.xlu0 }
 0x8b7   :  { %3171 = vst [vmem:[#allocation2 + $0x17d0] sm:$0xff] %v2363_v16 }
 0x8b9   :  { %v2395_v27 = vpop.trf.xlu1 }
 0x8ba   :  { %3187 = vst [vmem:[#allocation2 + $0x1850] sm:$0xff] %v2395_v27 }
 0x8be   :  { %v2364_v19 = vpop.trf.xlu0 }
 0x8bf   :  { %3172 = vst [vmem:[#allocation2 + $0x17d8] sm:$0xff] %v2364_v19 }
 0x8c1   :  { %v2396_v30 = vpop.trf.xlu1 }
 0x8c2   :  { %3188 = vst [vmem:[#allocation2 + $0x1858] sm:$0xff] %v2396_v30 }
 0x8c6   :  { %v2365_v22 = vpop.trf.xlu0 }
 0x8c7   :  { %3173 = vst [vmem:[#allocation2 + $0x17e0] sm:$0xff] %v2365_v22 }
 0x8c9   :  { %v2397_v33 = vpop.trf.xlu1 }
 0x8ca   :  { %3189 = vst [vmem:[#allocation2 + $0x1860] sm:$0xff] %v2397_v33 }
 0x8ce   :  { %v2366_v25 = vpop.trf.xlu0 }
 0x8cf   :  { %3174 = vst [vmem:[#allocation2 + $0x17e8] sm:$0xff] %v2366_v25 }
 0x8d1   :  { %v2398_v36 = vpop.trf.xlu1 }
 0x8d2   :  { %3190 = vst [vmem:[#allocation2 + $0x1868] sm:$0xff] %v2398_v36 }
 0x8d6   :  { %v2367_v28 = vpop.trf.xlu0 }
 0x8d7   :  { %3175 = vst [vmem:[#allocation2 + $0x17f0] sm:$0xff] %v2367_v28 }
 0x8d9   :  { %v2399_v39 = vpop.trf.xlu1 }
 0x8da   :  { %3191 = vst [vmem:[#allocation2 + $0x1870] sm:$0xff] %v2399_v39 }
 0x8de   :  { %v2368_v31 = vpop.trf.xlu0 }
 0x8df   :  { %3176 = vst [vmem:[#allocation2 + $0x17f8] sm:$0xff] %v2368_v31 }
 0x8e1   :  { %v2400_v42 = vpop.trf.xlu1 }
 0x8e2   :  { %3192 = vst [vmem:[#allocation2 + $0x1878] sm:$0xff] %v2400_v42 }
 0x8e6   :  { %v2369_v34 = vpop.trf.xlu0 }
 0x8e7   :  { %3177 = vst [vmem:[#allocation2 + $0x1800] sm:$0xff] %v2369_v34 }
 0x8ee   :  { %v2370_v37 = vpop.trf.xlu0 }
 0x8ef   :  { %3178 = vst [vmem:[#allocation2 + $0x1808] sm:$0xff] %v2370_v37 }
 0x8f6   :  { %v2371_v40 = vpop.trf.xlu0 }
 0x8f7   :  { %3179 = vst [vmem:[#allocation2 + $0x1810] sm:$0xff] %v2371_v40 }
 0x8fe   :  { %v2372_v43 = vpop.trf.xlu0 }
 0x8ff   :  { %3180 = vst [vmem:[#allocation2 + $0x1818] sm:$0xff] %v2372_v43 }
 0x906   :  { %v2373_v44 = vpop.trf.xlu0 }
 0x907   :  { %3181 = vst [vmem:[#allocation2 + $0x1820] sm:$0xff] %v2373_v44 }
 0x90e   :  { %v2374_v45 = vpop.trf.xlu0 }
 0x90f   :  { %3182 = vst [vmem:[#allocation2 + $0x1828] sm:$0xff] %v2374_v45 }
 0x916   :  { %v2375_v46 = vpop.trf.xlu0 }
 0x917   :  { %3183 = vst [vmem:[#allocation2 + $0x1830] sm:$0xff] %v2375_v46 }
 0x91e   :  { %v2376_v47 = vpop.trf.xlu0 }
 0x91f   :  { %3184 = vst [vmem:[#allocation2 + $0x1838] sm:$0xff] %v2376_v47 }
 0x920   :  { %3205 = dma.vmem_to_hbm [thread:$0]  %s3198_s11, 100352, %s3200_s14, [#allocation3], %s3241_s15, %s3241_s15, %s3242_s16  }
 0x921   :  { %3238 = dma.done.wait [#allocation3], 100352  }
 0x922   :  { %3239 = vsyncadd [#allocation3], 4294866944 }
 0x923   :  { %3210 = vsyncpa [#allocation3], 1 }

</bundles_post_ra>
